<compile_context>
chip_gen: v5e
topology: v5e:2x2
jax: 0.10.0
libtpu: 0.0.40
codegen_flags: <defaults>
</compile_context>

<pallas_src>
import functools

import numpy as np
import jax
import jax.numpy as jnp
from jax import lax
from jax.experimental import pallas as pl
from jax.experimental.pallas import tpu as pltpu

# Set True on v6e/v7x for ~2x MXU throughput (bf16 operands, f32 accumulate).
USE_BF16 = False

# ---------------------------------------------------------------------------
# Model configuration (matches the PyTorch CNNModel instantiation)
# ---------------------------------------------------------------------------
CONV_ACTIVATIONS = ["relu", "tanh", "sigmoid", "relu", "tanh"]
DENSE_ACTIVATION = "relu"
NUM_FILTERS = [8, 8, 16, 16, 32]
CONV_FILTER_SIZES = [3, 3, 3, 3, 1]
POOL_FILTER_SIZES = [2, 2, 2, 2, 2]
BATCH_NORM = True
DENSE_LAYER = 32
IMG_SHAPE = (3, 64, 64)          # (C, H, W) -> final conv map pools to 32x1x1
NUM_CLASSES = 10


# ---------------------------------------------------------------------------
# Helpers
# ---------------------------------------------------------------------------
def _apply_act(y, act):
    if act == "relu":
        return jnp.maximum(y, 0.0)
    if act == "tanh":
        return jnp.tanh(y)
    if act == "sigmoid":
        return jax.nn.sigmoid(y)
    raise NotImplementedError(f"activation {act}")


def _fold_bn(b, bn):
    """Eval-mode BatchNorm folded into a per-channel (scale, shift)."""
    if bn is None:
        return jnp.ones_like(b, dtype=jnp.float32), b.astype(jnp.float32)
    gamma, beta, mean, var, eps = bn
    scale = gamma / jnp.sqrt(var + eps)
    return scale, (b - mean) * scale + beta


def _banded_weight(w, scale, win, k):
    """Banded conv weight for the 'wide rows' layout.

    Input rows are image rows with lanes packed as (w_in, cin).  Output lanes
    are corner-blocked along W: lane = dx*(Wp*Cout) + n*Cout + co for output
    column j = 2*n + dx (only the columns the 2x2/stride-2 pool consumes).
    Returns [k, win*cin, 2*Wp*Cout] with the BN scale folded into the columns.
    """
    cout, cin, _, _ = w.shape
    wp = (win - k + 1) // 2
    place = np.zeros((k, win, 2, wp), np.float32)         # (kw, w_in, dx, n)
    for kw in range(k):
        for dx in range(2):
            for n in range(wp):
                place[kw, 2 * n + dx + kw, dx, n] = 1.0
    w_sc = w.astype(jnp.float32) * scale[:, None, None, None]   # [co, ci, kh, kw]
    bw = jnp.einsum("qwdn,ochq->hwcdno", place, w_sc)            # [kh,w,ci,dx,n,co]
    return bw.reshape(k, win * cin, 2 * wp * cout)


# ---------------------------------------------------------------------------
# The single fused Pallas kernel (one grid step = one image)
# ---------------------------------------------------------------------------
def _fused_cnn_kernel(x_ref,
                      bw1_ref, bw2_ref, bw3_ref, bw4_ref, bw5_ref,
                      sh1_ref, sh2_ref, sh3_ref, sh4_ref, sh5_ref,
                      w1_ref, b1_ref, w2_ref, b2_ref,
                      out_ref,
                      o1_scr, o2_scr, o3_scr, o4_scr,
                      *, layer_cfg, dense_act):
    bw_refs = (bw1_ref, bw2_ref, bw3_ref, bw4_ref, bw5_ref)
    sh_refs = (sh1_ref, sh2_ref, sh3_ref, sh4_ref, sh5_ref)
    out_scrs = (o1_scr, o2_scr, o3_scr, o4_scr)

    def conv_block(a_ref, bw_ref, sh_ref, cfg):
        hin, win, cin, cout, k, act = cfg
        hp, wp = (hin - k + 1) // 2, (win - k + 1) // 2
        nw = wp * cout
        # Valid conv over exactly the 2*hp rows that the pool consumes.  Output
        # lanes are corner-blocked along W (see _banded_weight), so pooling
        # below needs NO strided VMEM access.
        y = None
        for kh in range(k):
            lhs = a_ref[kh:kh + 2 * hp, :].astype(bw_ref.dtype)
            t = jnp.dot(lhs, bw_ref[kh], preferred_element_type=jnp.float32)
            y = t if y is None else y + t                        # [2*hp, 2*nw]
        yw = jnp.maximum(y[:, :nw], y[:, nw:])                   # W-direction pool
        # H-direction pool: pick even / odd pre-pool rows with tiny 0/1
        # selection matmuls (stride-free), then take the pairwise max.
        r = lax.broadcasted_iota(jnp.int32, (hp, 2 * hp), 0)
        c = lax.broadcasted_iota(jnp.int32, (hp, 2 * hp), 1)
        p_even = (c == 2 * r).astype(jnp.float32)
        p_odd = (c == 2 * r + 1).astype(jnp.float32)
        oh = jnp.maximum(
            jnp.dot(p_even, yw, preferred_element_type=jnp.float32),
            jnp.dot(p_odd, yw, preferred_element_type=jnp.float32))
        # Conv-bias/BN shift is constant across each pooling window and the
        # activation is monotone, so act(max + shift) == max(act(. + shift)).
        return _apply_act(oh + sh_ref[...], act)                 # [hp, wp*cout]

    a_ref = x_ref
    feat = None
    for i, cfg in enumerate(layer_cfg):
        o = conv_block(a_ref, bw_refs[i], sh_refs[i], cfg)
        if i < len(out_scrs):
            out_scrs[i][...] = o          # activation stays resident in VMEM
            a_ref = out_scrs[i]
        else:
            feat = o                      # [1, 32] flattened features

    # flatten -> fc1 -> act -> dropout(identity, eval) -> fc2
    h = jnp.dot(feat.astype(w1_ref.dtype), w1_ref[...],
                preferred_element_type=jnp.float32) + b1_ref[...]
    h = _apply_act(h, dense_act)
    # TODO(synk): training-mode dropout mask (pltpu.prng_random_bits) not implemented.
    logits = jnp.dot(h.astype(w2_ref.dtype), w2_ref[...],
                     preferred_element_type=jnp.float32) + b2_ref[...]
    out_ref[...] = logits.astype(out_ref.dtype)


# ---------------------------------------------------------------------------
# Forward pass: one pallas_call for the whole network
# ---------------------------------------------------------------------------
def cnn_forward(params, x):
    """x: NCHW float32 -> logits [B, 10]."""
    C, H, W = IMG_SHAPE
    B = x.shape[0]
    # Single layout change at the model boundary: NCHW -> per-image rows of
    # [H, W*C] with (w, c) packed into lanes.  Everything after stays in VMEM.
    xw = jnp.transpose(x, (0, 2, 3, 1)).reshape(B, H, W * C).astype(jnp.float32)

    weight_dtype = jnp.bfloat16 if USE_BF16 else jnp.float32
    layer_cfg, bws, shs, scratch = [], [], [], []
    hin, win, cin = H, W, C
    for i in range(5):
        cout, k, act = NUM_FILTERS[i], CONV_FILTER_SIZES[i], CONV_ACTIVATIONS[i]
        # max-before-activation pooling is exact only for monotone activations
        # and 2x2 / stride-2 pooling.
        assert act in ("relu", "tanh", "sigmoid"), "pooling trick needs monotone act"
        assert POOL_FILTER_SIZES[i] == 2, "kernel assumes MaxPool2d(2, stride=2)"
        layer = params["conv"][i]
        scale, shift = _fold_bn(layer["b"], layer["bn"])
        bw = _banded_weight(layer["w"], scale, win, k).astype(weight_dtype)
        hp, wp = (hin - k + 1) // 2, (win - k + 1) // 2
        shw = jnp.tile(shift.astype(jnp.float32), wp).reshape(1, wp * cout)
        bws.append(bw)
        shs.append(shw)
        layer_cfg.append((hin, win, cin, cout, k, act))
        if i < 4:
            scratch.append(pltpu.VMEM((hp, wp * cout), jnp.float32))
        hin, win, cin = hp, wp, cout
    assert (hin, win, cin) == (1, 1, NUM_FILTERS[-1]), "head assumes 1x1 final map"

    w1 = params["fc1_w"].T.astype(weight_dtype)                   # [32, 32]
    b1 = params["fc1_b"].astype(jnp.float32).reshape(1, -1)
    w2 = params["fc2_w"].T.astype(weight_dtype)                   # [32, 10]
    b2 = params["fc2_b"].astype(jnp.float32).reshape(1, -1)

    def _full(shape):
        nd = len(shape)
        return pl.BlockSpec(tuple(int(s) for s in shape),
                            lambda b, _nd=nd: (0,) * _nd)

    in_specs = ([pl.BlockSpec((None, H, W * C), lambda b: (b, 0, 0))]
                + [_full(a.shape) for a in bws]
                + [_full(a.shape) for a in shs]
                + [_full(w1.shape), _full(b1.shape),
                   _full(w2.shape), _full(b2.shape)])

    out = pl.pallas_call(
        functools.partial(_fused_cnn_kernel,
                          layer_cfg=tuple(layer_cfg),
                          dense_act=DENSE_ACTIVATION),
        out_shape=jax.ShapeDtypeStruct((B, 1, NUM_CLASSES), jnp.float32),
        grid=(B,),
        in_specs=in_specs,
        out_specs=pl.BlockSpec((None, 1, NUM_CLASSES), lambda b: (b, 0, 0)),
        scratch_shapes=scratch,
        compiler_params=pltpu.CompilerParams(
            dimension_semantics=("parallel",),
            vmem_limit_bytes=32 * 1024 * 1024),
    )(xw, *bws, *shs, w1, b1, w2, b2)
    return out.reshape(B, NUM_CLASSES)


# ---------------------------------------------------------------------------
# Parameter init (PyTorch-default-like) and driver
# ---------------------------------------------------------------------------
def init_params(key):
    params = {"conv": []}
    cin = IMG_SHAPE[0]
    for i in range(5):
        cout, k = NUM_FILTERS[i], CONV_FILTER_SIZES[i]
        key, k1, k2 = jax.random.split(key, 3)
        bound = 1.0 / float(np.sqrt(cin * k * k))
        w = jax.random.uniform(k1, (cout, cin, k, k), jnp.float32, -bound, bound)
        b = jax.random.uniform(k2, (cout,), jnp.float32, -bound, bound)
        bn = None
        if BATCH_NORM:
            # PyTorch BatchNorm2d defaults (eval mode): gamma=1, beta=0,
            # running_mean=0, running_var=1, eps=1e-5.
            bn = (jnp.ones((cout,), jnp.float32), jnp.zeros((cout,), jnp.float32),
                  jnp.zeros((cout,), jnp.float32), jnp.ones((cout,), jnp.float32),
                  1e-5)
        params["conv"].append({"w": w, "b": b, "bn": bn})
        cin = cout
    flattened_dim = NUM_FILTERS[-1] * 1 * 1
    key, k1, k2, k3, k4 = jax.random.split(key, 5)
    b1 = 1.0 / float(np.sqrt(flattened_dim))
    params["fc1_w"] = jax.random.uniform(k1, (DENSE_LAYER, flattened_dim),
                                         jnp.float32, -b1, b1)
    params["fc1_b"] = jax.random.uniform(k2, (DENSE_LAYER,), jnp.float32, -b1, b1)
    b2 = 1.0 / float(np.sqrt(DENSE_LAYER))
    params["fc2_w"] = jax.random.uniform(k3, (NUM_CLASSES, DENSE_LAYER),
                                         jnp.float32, -b2, b2)
    params["fc2_b"] = jax.random.uniform(k4, (NUM_CLASSES,), jnp.float32, -b2, b2)
    return params


if __name__ == "__main__":
    key = jax.random.PRNGKey(0)
    pkey, xkey = jax.random.split(key)
    params = init_params(pkey)
    x = jax.random.normal(xkey, (2, *IMG_SHAPE), jnp.float32)   # NCHW, batch=2
    logits = jax.jit(cnn_forward)(params, x)
    jax.block_until_ready(logits)
    assert logits.shape == (2, NUM_CLASSES) and logits.dtype == jnp.float32
    assert bool(jnp.all(jnp.isfinite(logits)))
    print("KERNEL_OK")
</pallas_src>

<mosaic_0001>
module attributes {stable_mosaic.version = 11 : i64} {
  func.func @_fused_cnn_kernel(%arg0: i32, %arg1: memref<1x64x192xf32, #tpu.memory_space<vmem>>, %arg2: memref<3x192x496xf32, #tpu.memory_space<vmem>>, %arg3: memref<3x248x224xf32, #tpu.memory_space<vmem>>, %arg4: memref<3x112x192xf32, #tpu.memory_space<vmem>>, %arg5: memref<3x96x64xf32, #tpu.memory_space<vmem>>, %arg6: memref<1x32x64xf32, #tpu.memory_space<vmem>>, %arg7: memref<1x248xf32, #tpu.memory_space<vmem>>, %arg8: memref<1x112xf32, #tpu.memory_space<vmem>>, %arg9: memref<1x96xf32, #tpu.memory_space<vmem>>, %arg10: memref<1x32xf32, #tpu.memory_space<vmem>>, %arg11: memref<1x32xf32, #tpu.memory_space<vmem>>, %arg12: memref<32x32xf32, #tpu.memory_space<vmem>>, %arg13: memref<1x32xf32, #tpu.memory_space<vmem>>, %arg14: memref<32x10xf32, #tpu.memory_space<vmem>>, %arg15: memref<1x10xf32, #tpu.memory_space<vmem>>, %arg16: memref<1x1x10xf32, #tpu.memory_space<vmem>>, %arg17: memref<31x248xf32, #tpu.memory_space<vmem>>, %arg18: memref<14x112xf32, #tpu.memory_space<vmem>>, %arg19: memref<6x96xf32, #tpu.memory_space<vmem>>, %arg20: memref<2x32xf32, #tpu.memory_space<vmem>>) attributes {dimension_semantics = [#tpu.dimension_semantics<parallel>], iteration_bounds = array<i64: 2>, scalar_prefetch = 0 : i64, scratch_operands = 4 : i64, tpu.core_type = #tpu.core_type<tc>, window_params = [{transform_indices = @transform_0, window_bounds = array<i64: 1, 64, 192>}, {pipeline_mode = #tpu.pipeline_mode<synchronous>, transform_indices = @transform_1, window_bounds = array<i64: 3, 192, 496>}, {pipeline_mode = #tpu.pipeline_mode<synchronous>, transform_indices = @transform_2, window_bounds = array<i64: 3, 248, 224>}, {pipeline_mode = #tpu.pipeline_mode<synchronous>, transform_indices = @transform_3, window_bounds = array<i64: 3, 112, 192>}, {pipeline_mode = #tpu.pipeline_mode<synchronous>, transform_indices = @transform_4, window_bounds = array<i64: 3, 96, 64>}, {pipeline_mode = #tpu.pipeline_mode<synchronous>, transform_indices = @transform_5, window_bounds = array<i64: 1, 32, 64>}, {pipeline_mode = #tpu.pipeline_mode<synchronous>, transform_indices = @transform_6, window_bounds = array<i64: 1, 248>}, {pipeline_mode = #tpu.pipeline_mode<synchronous>, transform_indices = @transform_7, window_bounds = array<i64: 1, 112>}, {pipeline_mode = #tpu.pipeline_mode<synchronous>, transform_indices = @transform_8, window_bounds = array<i64: 1, 96>}, {pipeline_mode = #tpu.pipeline_mode<synchronous>, transform_indices = @transform_9, window_bounds = array<i64: 1, 32>}, {pipeline_mode = #tpu.pipeline_mode<synchronous>, transform_indices = @transform_10, window_bounds = array<i64: 1, 32>}, {pipeline_mode = #tpu.pipeline_mode<synchronous>, transform_indices = @transform_11, window_bounds = array<i64: 32, 32>}, {pipeline_mode = #tpu.pipeline_mode<synchronous>, transform_indices = @transform_12, window_bounds = array<i64: 1, 32>}, {pipeline_mode = #tpu.pipeline_mode<synchronous>, transform_indices = @transform_13, window_bounds = array<i64: 32, 10>}, {pipeline_mode = #tpu.pipeline_mode<synchronous>, transform_indices = @transform_14, window_bounds = array<i64: 1, 10>}, {transform_indices = @transform_15, window_bounds = array<i64: 1, 1, 10>}]} {
    %c0 = arith.constant 0 : index
    %c0_0 = arith.constant 0 : index
    %c0_1 = arith.constant 0 : index
    %0 = vector.load %arg1[%c0, %c0_0, %c0_1] : memref<1x64x192xf32, #tpu.memory_space<vmem>>, vector<1x62x192xf32>
    %1 = vector.shape_cast %0 : vector<1x62x192xf32> to vector<62x192xf32>
    %c0_2 = arith.constant 0 : index
    %c0_3 = arith.constant 0 : index
    %c0_4 = arith.constant 0 : index
    %2 = vector.load %arg2[%c0_2, %c0_3, %c0_4] : memref<3x192x496xf32, #tpu.memory_space<vmem>>, vector<1x192x496xf32>
    %3 = vector.shape_cast %2 : vector<1x192x496xf32> to vector<192x496xf32>
    %cst = arith.constant dense<0.000000e+00> : vector<62x496xf32>
    %4 = tpu.matmul %1, %3, %cst {dimension_numbers = #tpu.dot_dimension_numbers<[1], [0], [0], [1], [0, 0, 1, 1], [], []>} : vector<62x192xf32>, vector<192x496xf32>, vector<62x496xf32> -> vector<62x496xf32>
    %c0_5 = arith.constant 0 : index
    %c1 = arith.constant 1 : index
    %c0_6 = arith.constant 0 : index
    %5 = vector.load %arg1[%c0_5, %c1, %c0_6] : memref<1x64x192xf32, #tpu.memory_space<vmem>>, vector<1x62x192xf32>
    %6 = vector.shape_cast %5 : vector<1x62x192xf32> to vector<62x192xf32>
    %c1_7 = arith.constant 1 : index
    %c0_8 = arith.constant 0 : index
    %c0_9 = arith.constant 0 : index
    %7 = vector.load %arg2[%c1_7, %c0_8, %c0_9] : memref<3x192x496xf32, #tpu.memory_space<vmem>>, vector<1x192x496xf32>
    %8 = vector.shape_cast %7 : vector<1x192x496xf32> to vector<192x496xf32>
    %cst_10 = arith.constant dense<0.000000e+00> : vector<62x496xf32>
    %9 = tpu.matmul %6, %8, %cst_10 {dimension_numbers = #tpu.dot_dimension_numbers<[1], [0], [0], [1], [0, 0, 1, 1], [], []>} : vector<62x192xf32>, vector<192x496xf32>, vector<62x496xf32> -> vector<62x496xf32>
    %10 = arith.addf %4, %9 : vector<62x496xf32>
    %c0_11 = arith.constant 0 : index
    %c2 = arith.constant 2 : index
    %c0_12 = arith.constant 0 : index
    %11 = vector.load %arg1[%c0_11, %c2, %c0_12] : memref<1x64x192xf32, #tpu.memory_space<vmem>>, vector<1x62x192xf32>
    %12 = vector.shape_cast %11 : vector<1x62x192xf32> to vector<62x192xf32>
    %c2_13 = arith.constant 2 : index
    %c0_14 = arith.constant 0 : index
    %c0_15 = arith.constant 0 : index
    %13 = vector.load %arg2[%c2_13, %c0_14, %c0_15] : memref<3x192x496xf32, #tpu.memory_space<vmem>>, vector<1x192x496xf32>
    %14 = vector.shape_cast %13 : vector<1x192x496xf32> to vector<192x496xf32>
    %cst_16 = arith.constant dense<0.000000e+00> : vector<62x496xf32>
    %15 = tpu.matmul %12, %14, %cst_16 {dimension_numbers = #tpu.dot_dimension_numbers<[1], [0], [0], [1], [0, 0, 1, 1], [], []>} : vector<62x192xf32>, vector<192x496xf32>, vector<62x496xf32> -> vector<62x496xf32>
    %16 = arith.addf %10, %15 : vector<62x496xf32>
    %17 = vector.extract_strided_slice %16 {offsets = [0, 0], sizes = [62, 248], strides = [1, 1]} : vector<62x496xf32> to vector<62x248xf32>
    %18 = vector.extract_strided_slice %16 {offsets = [0, 248], sizes = [62, 248], strides = [1, 1]} : vector<62x496xf32> to vector<62x248xf32>
    %19 = arith.maximumf %17, %18 : vector<62x248xf32>
    %20 = tpu.iota {dimensions = array<i32: 0>} : vector<31x62xi32>
    %21 = tpu.iota {dimensions = array<i32: 1>} : vector<31x62xi32>
    %c2_i32 = arith.constant 2 : i32
    %22 = vector.broadcast %c2_i32 : i32 to vector<31x62xi32>
    %23 = arith.muli %22, %20 : vector<31x62xi32>
    %24 = arith.cmpi eq, %21, %23 : vector<31x62xi32>
    %25 = arith.extui %24 : vector<31x62xi1> to vector<31x62xi32>
    %26 = arith.sitofp %25 : vector<31x62xi32> to vector<31x62xf32>
    %c2_i32_17 = arith.constant 2 : i32
    %27 = vector.broadcast %c2_i32_17 : i32 to vector<31x62xi32>
    %28 = arith.muli %27, %20 : vector<31x62xi32>
    %c1_i32 = arith.constant 1 : i32
    %29 = vector.broadcast %c1_i32 : i32 to vector<31x62xi32>
    %30 = arith.addi %28, %29 : vector<31x62xi32>
    %31 = arith.cmpi eq, %21, %30 : vector<31x62xi32>
    %32 = arith.extui %31 : vector<31x62xi1> to vector<31x62xi32>
    %33 = arith.sitofp %32 : vector<31x62xi32> to vector<31x62xf32>
    %cst_18 = arith.constant dense<0.000000e+00> : vector<31x248xf32>
    %34 = tpu.matmul %26, %19, %cst_18 {dimension_numbers = #tpu.dot_dimension_numbers<[1], [0], [0], [1], [0, 0, 1, 1], [], []>} : vector<31x62xf32>, vector<62x248xf32>, vector<31x248xf32> -> vector<31x248xf32>
    %cst_19 = arith.constant dense<0.000000e+00> : vector<31x248xf32>
    %35 = tpu.matmul %33, %19, %cst_19 {dimension_numbers = #tpu.dot_dimension_numbers<[1], [0], [0], [1], [0, 0, 1, 1], [], []>} : vector<31x62xf32>, vector<62x248xf32>, vector<31x248xf32> -> vector<31x248xf32>
    %36 = arith.maximumf %34, %35 : vector<31x248xf32>
    %c0_20 = arith.constant 0 : index
    %c0_21 = arith.constant 0 : index
    %37 = vector.load %arg7[%c0_20, %c0_21] : memref<1x248xf32, #tpu.memory_space<vmem>>, vector<1x248xf32>
    %38 = vector.broadcast %37 : vector<1x248xf32> to vector<31x248xf32>
    %39 = arith.addf %36, %38 : vector<31x248xf32>
    %cst_22 = arith.constant 0.000000e+00 : f32
    %40 = vector.broadcast %cst_22 : f32 to vector<31x248xf32>
    %41 = arith.maximumf %39, %40 : vector<31x248xf32>
    %c0_23 = arith.constant 0 : index
    %c0_24 = arith.constant 0 : index
    %42 = vector.load %arg17[%c0_23, %c0_24] : memref<31x248xf32, #tpu.memory_space<vmem>>, vector<31x248xf32>
    tpu.vector_store %arg17[%c0_23, %c0_24], %41 {strides = array<i32>} : memref<31x248xf32, #tpu.memory_space<vmem>>, vector<31x248xf32>,
    %c0_25 = arith.constant 0 : index
    %c0_26 = arith.constant 0 : index
    %43 = vector.load %arg17[%c0_25, %c0_26] : memref<31x248xf32, #tpu.memory_space<vmem>>, vector<28x248xf32>
    %c0_27 = arith.constant 0 : index
    %c0_28 = arith.constant 0 : index
    %c0_29 = arith.constant 0 : index
    %44 = vector.load %arg3[%c0_27, %c0_28, %c0_29] : memref<3x248x224xf32, #tpu.memory_space<vmem>>, vector<1x248x224xf32>
    %45 = vector.shape_cast %44 : vector<1x248x224xf32> to vector<248x224xf32>
    %cst_30 = arith.constant dense<0.000000e+00> : vector<28x224xf32>
    %46 = tpu.matmul %43, %45, %cst_30 {dimension_numbers = #tpu.dot_dimension_numbers<[1], [0], [0], [1], [0, 0, 1, 1], [], []>} : vector<28x248xf32>, vector<248x224xf32>, vector<28x224xf32> -> vector<28x224xf32>
    %c1_31 = arith.constant 1 : index
    %c0_32 = arith.constant 0 : index
    %47 = vector.load %arg17[%c1_31, %c0_32] : memref<31x248xf32, #tpu.memory_space<vmem>>, vector<28x248xf32>
    %c1_33 = arith.constant 1 : index
    %c0_34 = arith.constant 0 : index
    %c0_35 = arith.constant 0 : index
    %48 = vector.load %arg3[%c1_33, %c0_34, %c0_35] : memref<3x248x224xf32, #tpu.memory_space<vmem>>, vector<1x248x224xf32>
    %49 = vector.shape_cast %48 : vector<1x248x224xf32> to vector<248x224xf32>
    %cst_36 = arith.constant dense<0.000000e+00> : vector<28x224xf32>
    %50 = tpu.matmul %47, %49, %cst_36 {dimension_numbers = #tpu.dot_dimension_numbers<[1], [0], [0], [1], [0, 0, 1, 1], [], []>} : vector<28x248xf32>, vector<248x224xf32>, vector<28x224xf32> -> vector<28x224xf32>
    %51 = arith.addf %46, %50 : vector<28x224xf32>
    %c2_37 = arith.constant 2 : index
    %c0_38 = arith.constant 0 : index
    %52 = vector.load %arg17[%c2_37, %c0_38] : memref<31x248xf32, #tpu.memory_space<vmem>>, vector<28x248xf32>
    %c2_39 = arith.constant 2 : index
    %c0_40 = arith.constant 0 : index
    %c0_41 = arith.constant 0 : index
    %53 = vector.load %arg3[%c2_39, %c0_40, %c0_41] : memref<3x248x224xf32, #tpu.memory_space<vmem>>, vector<1x248x224xf32>
    %54 = vector.shape_cast %53 : vector<1x248x224xf32> to vector<248x224xf32>
    %cst_42 = arith.constant dense<0.000000e+00> : vector<28x224xf32>
    %55 = tpu.matmul %52, %54, %cst_42 {dimension_numbers = #tpu.dot_dimension_numbers<[1], [0], [0], [1], [0, 0, 1, 1], [], []>} : vector<28x248xf32>, vector<248x224xf32>, vector<28x224xf32> -> vector<28x224xf32>
    %56 = arith.addf %51, %55 : vector<28x224xf32>
    %57 = vector.extract_strided_slice %56 {offsets = [0, 0], sizes = [28, 112], strides = [1, 1]} : vector<28x224xf32> to vector<28x112xf32>
    %58 = vector.extract_strided_slice %56 {offsets = [0, 112], sizes = [28, 112], strides = [1, 1]} : vector<28x224xf32> to vector<28x112xf32>
    %59 = arith.maximumf %57, %58 : vector<28x112xf32>
    %60 = tpu.iota {dimensions = array<i32: 0>} : vector<14x28xi32>
    %61 = tpu.iota {dimensions = array<i32: 1>} : vector<14x28xi32>
    %c2_i32_43 = arith.constant 2 : i32
    %62 = vector.broadcast %c2_i32_43 : i32 to vector<14x28xi32>
    %63 = arith.muli %62, %60 : vector<14x28xi32>
    %64 = arith.cmpi eq, %61, %63 : vector<14x28xi32>
    %65 = arith.extui %64 : vector<14x28xi1> to vector<14x28xi32>
    %66 = arith.sitofp %65 : vector<14x28xi32> to vector<14x28xf32>
    %c2_i32_44 = arith.constant 2 : i32
    %67 = vector.broadcast %c2_i32_44 : i32 to vector<14x28xi32>
    %68 = arith.muli %67, %60 : vector<14x28xi32>
    %c1_i32_45 = arith.constant 1 : i32
    %69 = vector.broadcast %c1_i32_45 : i32 to vector<14x28xi32>
    %70 = arith.addi %68, %69 : vector<14x28xi32>
    %71 = arith.cmpi eq, %61, %70 : vector<14x28xi32>
    %72 = arith.extui %71 : vector<14x28xi1> to vector<14x28xi32>
    %73 = arith.sitofp %72 : vector<14x28xi32> to vector<14x28xf32>
    %cst_46 = arith.constant dense<0.000000e+00> : vector<14x112xf32>
    %74 = tpu.matmul %66, %59, %cst_46 {dimension_numbers = #tpu.dot_dimension_numbers<[1], [0], [0], [1], [0, 0, 1, 1], [], []>} : vector<14x28xf32>, vector<28x112xf32>, vector<14x112xf32> -> vector<14x112xf32>
    %cst_47 = arith.constant dense<0.000000e+00> : vector<14x112xf32>
    %75 = tpu.matmul %73, %59, %cst_47 {dimension_numbers = #tpu.dot_dimension_numbers<[1], [0], [0], [1], [0, 0, 1, 1], [], []>} : vector<14x28xf32>, vector<28x112xf32>, vector<14x112xf32> -> vector<14x112xf32>
    %76 = arith.maximumf %74, %75 : vector<14x112xf32>
    %c0_48 = arith.constant 0 : index
    %c0_49 = arith.constant 0 : index
    %77 = vector.load %arg8[%c0_48, %c0_49] : memref<1x112xf32, #tpu.memory_space<vmem>>, vector<1x112xf32>
    %78 = vector.broadcast %77 : vector<1x112xf32> to vector<14x112xf32>
    %79 = arith.addf %76, %78 : vector<14x112xf32>
    %80 = math.tanh %79 : vector<14x112xf32>
    %c0_50 = arith.constant 0 : index
    %c0_51 = arith.constant 0 : index
    %81 = vector.load %arg18[%c0_50, %c0_51] : memref<14x112xf32, #tpu.memory_space<vmem>>, vector<14x112xf32>
    tpu.vector_store %arg18[%c0_50, %c0_51], %80 {strides = array<i32>} : memref<14x112xf32, #tpu.memory_space<vmem>>, vector<14x112xf32>,
    %c0_52 = arith.constant 0 : index
    %c0_53 = arith.constant 0 : index
    %82 = vector.load %arg18[%c0_52, %c0_53] : memref<14x112xf32, #tpu.memory_space<vmem>>, vector<12x112xf32>
    %c0_54 = arith.constant 0 : index
    %c0_55 = arith.constant 0 : index
    %c0_56 = arith.constant 0 : index
    %83 = vector.load %arg4[%c0_54, %c0_55, %c0_56] : memref<3x112x192xf32, #tpu.memory_space<vmem>>, vector<1x112x192xf32>
    %84 = vector.shape_cast %83 : vector<1x112x192xf32> to vector<112x192xf32>
    %cst_57 = arith.constant dense<0.000000e+00> : vector<12x192xf32>
    %85 = tpu.matmul %82, %84, %cst_57 {dimension_numbers = #tpu.dot_dimension_numbers<[1], [0], [0], [1], [0, 0, 1, 1], [], []>} : vector<12x112xf32>, vector<112x192xf32>, vector<12x192xf32> -> vector<12x192xf32>
    %c1_58 = arith.constant 1 : index
    %c0_59 = arith.constant 0 : index
    %86 = vector.load %arg18[%c1_58, %c0_59] : memref<14x112xf32, #tpu.memory_space<vmem>>, vector<12x112xf32>
    %c1_60 = arith.constant 1 : index
    %c0_61 = arith.constant 0 : index
    %c0_62 = arith.constant 0 : index
    %87 = vector.load %arg4[%c1_60, %c0_61, %c0_62] : memref<3x112x192xf32, #tpu.memory_space<vmem>>, vector<1x112x192xf32>
    %88 = vector.shape_cast %87 : vector<1x112x192xf32> to vector<112x192xf32>
    %cst_63 = arith.constant dense<0.000000e+00> : vector<12x192xf32>
    %89 = tpu.matmul %86, %88, %cst_63 {dimension_numbers = #tpu.dot_dimension_numbers<[1], [0], [0], [1], [0, 0, 1, 1], [], []>} : vector<12x112xf32>, vector<112x192xf32>, vector<12x192xf32> -> vector<12x192xf32>
    %90 = arith.addf %85, %89 : vector<12x192xf32>
    %c2_64 = arith.constant 2 : index
    %c0_65 = arith.constant 0 : index
    %91 = vector.load %arg18[%c2_64, %c0_65] : memref<14x112xf32, #tpu.memory_space<vmem>>, vector<12x112xf32>
    %c2_66 = arith.constant 2 : index
    %c0_67 = arith.constant 0 : index
    %c0_68 = arith.constant 0 : index
    %92 = vector.load %arg4[%c2_66, %c0_67, %c0_68] : memref<3x112x192xf32, #tpu.memory_space<vmem>>, vector<1x112x192xf32>
    %93 = vector.shape_cast %92 : vector<1x112x192xf32> to vector<112x192xf32>
    %cst_69 = arith.constant dense<0.000000e+00> : vector<12x192xf32>
    %94 = tpu.matmul %91, %93, %cst_69 {dimension_numbers = #tpu.dot_dimension_numbers<[1], [0], [0], [1], [0, 0, 1, 1], [], []>} : vector<12x112xf32>, vector<112x192xf32>, vector<12x192xf32> -> vector<12x192xf32>
    %95 = arith.addf %90, %94 : vector<12x192xf32>
    %96 = vector.extract_strided_slice %95 {offsets = [0, 0], sizes = [12, 96], strides = [1, 1]} : vector<12x192xf32> to vector<12x96xf32>
    %97 = vector.extract_strided_slice %95 {offsets = [0, 96], sizes = [12, 96], strides = [1, 1]} : vector<12x192xf32> to vector<12x96xf32>
    %98 = arith.maximumf %96, %97 : vector<12x96xf32>
    %99 = tpu.iota {dimensions = array<i32: 0>} : vector<6x12xi32>
    %100 = tpu.iota {dimensions = array<i32: 1>} : vector<6x12xi32>
    %c2_i32_70 = arith.constant 2 : i32
    %101 = vector.broadcast %c2_i32_70 : i32 to vector<6x12xi32>
    %102 = arith.muli %101, %99 : vector<6x12xi32>
    %103 = arith.cmpi eq, %100, %102 : vector<6x12xi32>
    %104 = arith.extui %103 : vector<6x12xi1> to vector<6x12xi32>
    %105 = arith.sitofp %104 : vector<6x12xi32> to vector<6x12xf32>
    %c2_i32_71 = arith.constant 2 : i32
    %106 = vector.broadcast %c2_i32_71 : i32 to vector<6x12xi32>
    %107 = arith.muli %106, %99 : vector<6x12xi32>
    %c1_i32_72 = arith.constant 1 : i32
    %108 = vector.broadcast %c1_i32_72 : i32 to vector<6x12xi32>
    %109 = arith.addi %107, %108 : vector<6x12xi32>
    %110 = arith.cmpi eq, %100, %109 : vector<6x12xi32>
    %111 = arith.extui %110 : vector<6x12xi1> to vector<6x12xi32>
    %112 = arith.sitofp %111 : vector<6x12xi32> to vector<6x12xf32>
    %cst_73 = arith.constant dense<0.000000e+00> : vector<6x96xf32>
    %113 = tpu.matmul %105, %98, %cst_73 {dimension_numbers = #tpu.dot_dimension_numbers<[1], [0], [0], [1], [0, 0, 1, 1], [], []>} : vector<6x12xf32>, vector<12x96xf32>, vector<6x96xf32> -> vector<6x96xf32>
    %cst_74 = arith.constant dense<0.000000e+00> : vector<6x96xf32>
    %114 = tpu.matmul %112, %98, %cst_74 {dimension_numbers = #tpu.dot_dimension_numbers<[1], [0], [0], [1], [0, 0, 1, 1], [], []>} : vector<6x12xf32>, vector<12x96xf32>, vector<6x96xf32> -> vector<6x96xf32>
    %115 = arith.maximumf %113, %114 : vector<6x96xf32>
    %c0_75 = arith.constant 0 : index
    %c0_76 = arith.constant 0 : index
    %116 = vector.load %arg9[%c0_75, %c0_76] : memref<1x96xf32, #tpu.memory_space<vmem>>, vector<1x96xf32>
    %117 = vector.broadcast %116 : vector<1x96xf32> to vector<6x96xf32>
    %118 = arith.addf %115, %117 : vector<6x96xf32>
    %119 = arith.negf %118 : vector<6x96xf32>
    %120 = math.exp %119 : vector<6x96xf32>
    %cst_77 = arith.constant 1.000000e+00 : f32
    %121 = vector.broadcast %cst_77 : f32 to vector<6x96xf32>
    %122 = arith.addf %121, %120 : vector<6x96xf32>
    %123 = arith.divf %121, %122 : vector<6x96xf32>
    %c0_78 = arith.constant 0 : index
    %c0_79 = arith.constant 0 : index
    %124 = vector.load %arg19[%c0_78, %c0_79] : memref<6x96xf32, #tpu.memory_space<vmem>>, vector<6x96xf32>
    tpu.vector_store %arg19[%c0_78, %c0_79], %123 {strides = array<i32>} : memref<6x96xf32, #tpu.memory_space<vmem>>, vector<6x96xf32>,
    %c0_80 = arith.constant 0 : index
    %c0_81 = arith.constant 0 : index
    %125 = vector.load %arg19[%c0_80, %c0_81] : memref<6x96xf32, #tpu.memory_space<vmem>>, vector<4x96xf32>
    %c0_82 = arith.constant 0 : index
    %c0_83 = arith.constant 0 : index
    %c0_84 = arith.constant 0 : index
    %126 = vector.load %arg5[%c0_82, %c0_83, %c0_84] : memref<3x96x64xf32, #tpu.memory_space<vmem>>, vector<1x96x64xf32>
    %127 = vector.shape_cast %126 : vector<1x96x64xf32> to vector<96x64xf32>
    %cst_85 = arith.constant dense<0.000000e+00> : vector<4x64xf32>
    %128 = tpu.matmul %125, %127, %cst_85 {dimension_numbers = #tpu.dot_dimension_numbers<[1], [0], [0], [1], [0, 0, 1, 1], [], []>} : vector<4x96xf32>, vector<96x64xf32>, vector<4x64xf32> -> vector<4x64xf32>
    %c1_86 = arith.constant 1 : index
    %c0_87 = arith.constant 0 : index
    %129 = vector.load %arg19[%c1_86, %c0_87] : memref<6x96xf32, #tpu.memory_space<vmem>>, vector<4x96xf32>
    %c1_88 = arith.constant 1 : index
    %c0_89 = arith.constant 0 : index
    %c0_90 = arith.constant 0 : index
    %130 = vector.load %arg5[%c1_88, %c0_89, %c0_90] : memref<3x96x64xf32, #tpu.memory_space<vmem>>, vector<1x96x64xf32>
    %131 = vector.shape_cast %130 : vector<1x96x64xf32> to vector<96x64xf32>
    %cst_91 = arith.constant dense<0.000000e+00> : vector<4x64xf32>
    %132 = tpu.matmul %129, %131, %cst_91 {dimension_numbers = #tpu.dot_dimension_numbers<[1], [0], [0], [1], [0, 0, 1, 1], [], []>} : vector<4x96xf32>, vector<96x64xf32>, vector<4x64xf32> -> vector<4x64xf32>
    %133 = arith.addf %128, %132 : vector<4x64xf32>
    %c2_92 = arith.constant 2 : index
    %c0_93 = arith.constant 0 : index
    %134 = vector.load %arg19[%c2_92, %c0_93] : memref<6x96xf32, #tpu.memory_space<vmem>>, vector<4x96xf32>
    %c2_94 = arith.constant 2 : index
    %c0_95 = arith.constant 0 : index
    %c0_96 = arith.constant 0 : index
    %135 = vector.load %arg5[%c2_94, %c0_95, %c0_96] : memref<3x96x64xf32, #tpu.memory_space<vmem>>, vector<1x96x64xf32>
    %136 = vector.shape_cast %135 : vector<1x96x64xf32> to vector<96x64xf32>
    %cst_97 = arith.constant dense<0.000000e+00> : vector<4x64xf32>
    %137 = tpu.matmul %134, %136, %cst_97 {dimension_numbers = #tpu.dot_dimension_numbers<[1], [0], [0], [1], [0, 0, 1, 1], [], []>} : vector<4x96xf32>, vector<96x64xf32>, vector<4x64xf32> -> vector<4x64xf32>
    %138 = arith.addf %133, %137 : vector<4x64xf32>
    %139 = vector.extract_strided_slice %138 {offsets = [0, 0], sizes = [4, 32], strides = [1, 1]} : vector<4x64xf32> to vector<4x32xf32>
    %140 = vector.extract_strided_slice %138 {offsets = [0, 32], sizes = [4, 32], strides = [1, 1]} : vector<4x64xf32> to vector<4x32xf32>
    %141 = arith.maximumf %139, %140 : vector<4x32xf32>
    %142 = tpu.iota {dimensions = array<i32: 0>} : vector<2x4xi32>
    %143 = tpu.iota {dimensions = array<i32: 1>} : vector<2x4xi32>
    %c2_i32_98 = arith.constant 2 : i32
    %144 = vector.broadcast %c2_i32_98 : i32 to vector<2x4xi32>
    %145 = arith.muli %144, %142 : vector<2x4xi32>
    %146 = arith.cmpi eq, %143, %145 : vector<2x4xi32>
    %147 = arith.extui %146 : vector<2x4xi1> to vector<2x4xi32>
    %148 = arith.sitofp %147 : vector<2x4xi32> to vector<2x4xf32>
    %c2_i32_99 = arith.constant 2 : i32
    %149 = vector.broadcast %c2_i32_99 : i32 to vector<2x4xi32>
    %150 = arith.muli %149, %142 : vector<2x4xi32>
    %c1_i32_100 = arith.constant 1 : i32
    %151 = vector.broadcast %c1_i32_100 : i32 to vector<2x4xi32>
    %152 = arith.addi %150, %151 : vector<2x4xi32>
    %153 = arith.cmpi eq, %143, %152 : vector<2x4xi32>
    %154 = arith.extui %153 : vector<2x4xi1> to vector<2x4xi32>
    %155 = arith.sitofp %154 : vector<2x4xi32> to vector<2x4xf32>
    %cst_101 = arith.constant dense<0.000000e+00> : vector<2x32xf32>
    %156 = tpu.matmul %148, %141, %cst_101 {dimension_numbers = #tpu.dot_dimension_numbers<[1], [0], [0], [1], [0, 0, 1, 1], [], []>} : vector<2x4xf32>, vector<4x32xf32>, vector<2x32xf32> -> vector<2x32xf32>
    %cst_102 = arith.constant dense<0.000000e+00> : vector<2x32xf32>
    %157 = tpu.matmul %155, %141, %cst_102 {dimension_numbers = #tpu.dot_dimension_numbers<[1], [0], [0], [1], [0, 0, 1, 1], [], []>} : vector<2x4xf32>, vector<4x32xf32>, vector<2x32xf32> -> vector<2x32xf32>
    %158 = arith.maximumf %156, %157 : vector<2x32xf32>
    %c0_103 = arith.constant 0 : index
    %c0_104 = arith.constant 0 : index
    %159 = vector.load %arg10[%c0_103, %c0_104] : memref<1x32xf32, #tpu.memory_space<vmem>>, vector<1x32xf32>
    %160 = vector.broadcast %159 : vector<1x32xf32> to vector<2x32xf32>
    %161 = arith.addf %158, %160 : vector<2x32xf32>
    %cst_105 = arith.constant 0.000000e+00 : f32
    %162 = vector.broadcast %cst_105 : f32 to vector<2x32xf32>
    %163 = arith.maximumf %161, %162 : vector<2x32xf32>
    %c0_106 = arith.constant 0 : index
    %c0_107 = arith.constant 0 : index
    %164 = vector.load %arg20[%c0_106, %c0_107] : memref<2x32xf32, #tpu.memory_space<vmem>>, vector<2x32xf32>
    tpu.vector_store %arg20[%c0_106, %c0_107], %163 {strides = array<i32>} : memref<2x32xf32, #tpu.memory_space<vmem>>, vector<2x32xf32>,
    %c0_108 = arith.constant 0 : index
    %c0_109 = arith.constant 0 : index
    %165 = vector.load %arg20[%c0_108, %c0_109] : memref<2x32xf32, #tpu.memory_space<vmem>>, vector<2x32xf32>
    %c0_110 = arith.constant 0 : index
    %c0_111 = arith.constant 0 : index
    %c0_112 = arith.constant 0 : index
    %166 = vector.load %arg6[%c0_110, %c0_111, %c0_112] : memref<1x32x64xf32, #tpu.memory_space<vmem>>, vector<1x32x64xf32>
    %167 = vector.shape_cast %166 : vector<1x32x64xf32> to vector<32x64xf32>
    %cst_113 = arith.constant dense<0.000000e+00> : vector<2x64xf32>
    %168 = tpu.matmul %165, %167, %cst_113 {dimension_numbers = #tpu.dot_dimension_numbers<[1], [0], [0], [1], [0, 0, 1, 1], [], []>} : vector<2x32xf32>, vector<32x64xf32>, vector<2x64xf32> -> vector<2x64xf32>
    %169 = vector.extract_strided_slice %168 {offsets = [0, 0], sizes = [2, 32], strides = [1, 1]} : vector<2x64xf32> to vector<2x32xf32>
    %170 = vector.extract_strided_slice %168 {offsets = [0, 32], sizes = [2, 32], strides = [1, 1]} : vector<2x64xf32> to vector<2x32xf32>
    %171 = arith.maximumf %169, %170 : vector<2x32xf32>
    %172 = tpu.iota {dimensions = array<i32: 0>} : vector<1x2xi32>
    %173 = tpu.iota {dimensions = array<i32: 1>} : vector<1x2xi32>
    %c2_i32_114 = arith.constant 2 : i32
    %174 = vector.broadcast %c2_i32_114 : i32 to vector<1x2xi32>
    %175 = arith.muli %174, %172 : vector<1x2xi32>
    %176 = arith.cmpi eq, %173, %175 : vector<1x2xi32>
    %177 = arith.extui %176 : vector<1x2xi1> to vector<1x2xi32>
    %178 = arith.sitofp %177 : vector<1x2xi32> to vector<1x2xf32>
    %c2_i32_115 = arith.constant 2 : i32
    %179 = vector.broadcast %c2_i32_115 : i32 to vector<1x2xi32>
    %180 = arith.muli %179, %172 : vector<1x2xi32>
    %c1_i32_116 = arith.constant 1 : i32
    %181 = vector.broadcast %c1_i32_116 : i32 to vector<1x2xi32>
    %182 = arith.addi %180, %181 : vector<1x2xi32>
    %183 = arith.cmpi eq, %173, %182 : vector<1x2xi32>
    %184 = arith.extui %183 : vector<1x2xi1> to vector<1x2xi32>
    %185 = arith.sitofp %184 : vector<1x2xi32> to vector<1x2xf32>
    %cst_117 = arith.constant dense<0.000000e+00> : vector<1x32xf32>
    %186 = tpu.matmul %178, %171, %cst_117 {dimension_numbers = #tpu.dot_dimension_numbers<[1], [0], [0], [1], [0, 0, 1, 1], [], []>} : vector<1x2xf32>, vector<2x32xf32>, vector<1x32xf32> -> vector<1x32xf32>
    %cst_118 = arith.constant dense<0.000000e+00> : vector<1x32xf32>
    %187 = tpu.matmul %185, %171, %cst_118 {dimension_numbers = #tpu.dot_dimension_numbers<[1], [0], [0], [1], [0, 0, 1, 1], [], []>} : vector<1x2xf32>, vector<2x32xf32>, vector<1x32xf32> -> vector<1x32xf32>
    %188 = arith.maximumf %186, %187 : vector<1x32xf32>
    %c0_119 = arith.constant 0 : index
    %c0_120 = arith.constant 0 : index
    %189 = vector.load %arg11[%c0_119, %c0_120] : memref<1x32xf32, #tpu.memory_space<vmem>>, vector<1x32xf32>
    %190 = arith.addf %188, %189 : vector<1x32xf32>
    %191 = math.tanh %190 : vector<1x32xf32>
    %c0_121 = arith.constant 0 : index
    %c0_122 = arith.constant 0 : index
    %192 = vector.load %arg12[%c0_121, %c0_122] : memref<32x32xf32, #tpu.memory_space<vmem>>, vector<32x32xf32>
    %cst_123 = arith.constant dense<0.000000e+00> : vector<1x32xf32>
    %193 = tpu.matmul %191, %192, %cst_123 {dimension_numbers = #tpu.dot_dimension_numbers<[1], [0], [0], [1], [0, 0, 1, 1], [], []>} : vector<1x32xf32>, vector<32x32xf32>, vector<1x32xf32> -> vector<1x32xf32>
    %c0_124 = arith.constant 0 : index
    %c0_125 = arith.constant 0 : index
    %194 = vector.load %arg13[%c0_124, %c0_125] : memref<1x32xf32, #tpu.memory_space<vmem>>, vector<1x32xf32>
    %195 = arith.addf %193, %194 : vector<1x32xf32>
    %cst_126 = arith.constant 0.000000e+00 : f32
    %196 = vector.broadcast %cst_126 : f32 to vector<1x32xf32>
    %197 = arith.maximumf %195, %196 : vector<1x32xf32>
    %c0_127 = arith.constant 0 : index
    %c0_128 = arith.constant 0 : index
    %198 = vector.load %arg14[%c0_127, %c0_128] : memref<32x10xf32, #tpu.memory_space<vmem>>, vector<32x10xf32>
    %cst_129 = arith.constant dense<0.000000e+00> : vector<1x10xf32>
    %199 = tpu.matmul %197, %198, %cst_129 {dimension_numbers = #tpu.dot_dimension_numbers<[1], [0], [0], [1], [0, 0, 1, 1], [], []>} : vector<1x32xf32>, vector<32x10xf32>, vector<1x10xf32> -> vector<1x10xf32>
    %c0_130 = arith.constant 0 : index
    %c0_131 = arith.constant 0 : index
    %200 = vector.load %arg15[%c0_130, %c0_131] : memref<1x10xf32, #tpu.memory_space<vmem>>, vector<1x10xf32>
    %201 = arith.addf %199, %200 : vector<1x10xf32>
    %c0_132 = arith.constant 0 : index
    %c0_133 = arith.constant 0 : index
    %c0_134 = arith.constant 0 : index
    %202 = vector.load %arg16[%c0_132, %c0_133, %c0_134] : memref<1x1x10xf32, #tpu.memory_space<vmem>>, vector<1x1x10xf32>
    %203 = vector.shape_cast %202 : vector<1x1x10xf32> to vector<1x10xf32>
    %204 = vector.shape_cast %201 : vector<1x10xf32> to vector<1x1x10xf32>
    tpu.vector_store %arg16[%c0_132, %c0_133, %c0_134], %204 {strides = array<i32>} : memref<1x1x10xf32, #tpu.memory_space<vmem>>, vector<1x1x10xf32>,
    return
  }
  func.func @transform_0(%arg0: i32) -> (i32, i32, i32) {
    %c0_i32 = arith.constant 0 : i32
    %c0_i32_0 = arith.constant 0 : i32
    %c0_i32_1 = arith.constant 0 : i32
    return %arg0, %c0_i32, %c0_i32_0 : i32, i32, i32
  }
  func.func @transform_1(%arg0: i32) -> (i32, i32, i32) {
    %c0_i32 = arith.constant 0 : i32
    %c0_i32_0 = arith.constant 0 : i32
    %c0_i32_1 = arith.constant 0 : i32
    %c0_i32_2 = arith.constant 0 : i32
    return %c0_i32, %c0_i32_0, %c0_i32_1 : i32, i32, i32
  }
  func.func @transform_2(%arg0: i32) -> (i32, i32, i32) {
    %c0_i32 = arith.constant 0 : i32
    %c0_i32_0 = arith.constant 0 : i32
    %c0_i32_1 = arith.constant 0 : i32
    %c0_i32_2 = arith.constant 0 : i32
    return %c0_i32, %c0_i32_0, %c0_i32_1 : i32, i32, i32
  }
  func.func @transform_3(%arg0: i32) -> (i32, i32, i32) {
    %c0_i32 = arith.constant 0 : i32
    %c0_i32_0 = arith.constant 0 : i32
    %c0_i32_1 = arith.constant 0 : i32
    %c0_i32_2 = arith.constant 0 : i32
    return %c0_i32, %c0_i32_0, %c0_i32_1 : i32, i32, i32
  }
  func.func @transform_4(%arg0: i32) -> (i32, i32, i32) {
    %c0_i32 = arith.constant 0 : i32
    %c0_i32_0 = arith.constant 0 : i32
    %c0_i32_1 = arith.constant 0 : i32
    %c0_i32_2 = arith.constant 0 : i32
    return %c0_i32, %c0_i32_0, %c0_i32_1 : i32, i32, i32
  }
  func.func @transform_5(%arg0: i32) -> (i32, i32, i32) {
    %c0_i32 = arith.constant 0 : i32
    %c0_i32_0 = arith.constant 0 : i32
    %c0_i32_1 = arith.constant 0 : i32
    %c0_i32_2 = arith.constant 0 : i32
    return %c0_i32, %c0_i32_0, %c0_i32_1 : i32, i32, i32
  }
  func.func @transform_6(%arg0: i32) -> (i32, i32) {
    %c0_i32 = arith.constant 0 : i32
    %c0_i32_0 = arith.constant 0 : i32
    %c0_i32_1 = arith.constant 0 : i32
    return %c0_i32, %c0_i32_0 : i32, i32
  }
  func.func @transform_7(%arg0: i32) -> (i32, i32) {
    %c0_i32 = arith.constant 0 : i32
    %c0_i32_0 = arith.constant 0 : i32
    %c0_i32_1 = arith.constant 0 : i32
    return %c0_i32, %c0_i32_0 : i32, i32
  }
  func.func @transform_8(%arg0: i32) -> (i32, i32) {
    %c0_i32 = arith.constant 0 : i32
    %c0_i32_0 = arith.constant 0 : i32
    %c0_i32_1 = arith.constant 0 : i32
    return %c0_i32, %c0_i32_0 : i32, i32
  }
  func.func @transform_9(%arg0: i32) -> (i32, i32) {
    %c0_i32 = arith.constant 0 : i32
    %c0_i32_0 = arith.constant 0 : i32
    %c0_i32_1 = arith.constant 0 : i32
    return %c0_i32, %c0_i32_0 : i32, i32
  }
  func.func @transform_10(%arg0: i32) -> (i32, i32) {
    %c0_i32 = arith.constant 0 : i32
    %c0_i32_0 = arith.constant 0 : i32
    %c0_i32_1 = arith.constant 0 : i32
    return %c0_i32, %c0_i32_0 : i32, i32
  }
  func.func @transform_11(%arg0: i32) -> (i32, i32) {
    %c0_i32 = arith.constant 0 : i32
    %c0_i32_0 = arith.constant 0 : i32
    %c0_i32_1 = arith.constant 0 : i32
    return %c0_i32, %c0_i32_0 : i32, i32
  }
  func.func @transform_12(%arg0: i32) -> (i32, i32) {
    %c0_i32 = arith.constant 0 : i32
    %c0_i32_0 = arith.constant 0 : i32
    %c0_i32_1 = arith.constant 0 : i32
    return %c0_i32, %c0_i32_0 : i32, i32
  }
  func.func @transform_13(%arg0: i32) -> (i32, i32) {
    %c0_i32 = arith.constant 0 : i32
    %c0_i32_0 = arith.constant 0 : i32
    %c0_i32_1 = arith.constant 0 : i32
    return %c0_i32, %c0_i32_0 : i32, i32
  }
  func.func @transform_14(%arg0: i32) -> (i32, i32) {
    %c0_i32 = arith.constant 0 : i32
    %c0_i32_0 = arith.constant 0 : i32
    %c0_i32_1 = arith.constant 0 : i32
    return %c0_i32, %c0_i32_0 : i32, i32
  }
  func.func @transform_15(%arg0: i32) -> (i32, i32, i32) {
    %c0_i32 = arith.constant 0 : i32
    %c0_i32_0 = arith.constant 0 : i32
    %c0_i32_1 = arith.constant 0 : i32
    return %arg0, %c0_i32, %c0_i32_0 : i32, i32, i32
  }
}

</mosaic_0001>

<bundles_post_ra>
// kernel: tile.24
= control target key start
LH: loop header
LB: loop body
LE: loop exit
PB: predicated region body
PF: predicated region fallthrough
CT: control target
= control target key end

     0   :  { %s40_s0 = inlined_call_operand.vmem [shape: f32[8], index: 0, kind: input, shape index: {}]   ;;  %s41_s1 = inlined_call_operand.vmem [shape: f32[31,8], index: 1, kind: output, shape index: {}]  }
   0x1   :  { %v4_v0 = vld [vmem:[%s40_s0] ss:$0 sm:$0xff] }
   0x2   :  { %5 = vst [vmem:[%s41_s1] sm:$0xff] %v4_v0 }
   0x3   :  { %12 = vst [vmem:[%s41_s1 + $0x8] sm:$0xff] %v4_v0 }
   0x4   :  { %13 = vst [vmem:[%s41_s1 + $0x10] sm:$0xff] %v4_v0 }
   0x5   :  { %14 = vst [vmem:[%s41_s1 + $0x18] sm:$0xff] %v4_v0 }

// kernel: tile.25
= control target key start
LH: loop header
LB: loop body
LE: loop exit
PB: predicated region body
PF: predicated region fallthrough
CT: control target
= control target key end

     0   :  { %s20_s8 = smov 3  ;;  %s153_s9 = smov 120   ;;  %vm4_vm0 = vcmask 64512   ;;  %vm10_vm1 = vcmask 1048512   ;;  %vm17_vm2 = vcmask 982912   ;;  %vm24_vm3 = vcmask 917312   ;;  %s232_s0 = inlined_call_operand.vmem [shape: f32[31,8], index: 0, kind: input, shape index: {}]   ;;  %s233_s1 = inlined_call_operand.vmem [shape: f32[1,248], index: 1, kind: output, shape index: {}]  }
   0x1   :  { %v122_v0 = vld [vmem:[%s232_s0 + $0xf] sm:$0x1]   ;;  %v124_v1 = vld [vmem:[%s232_s0 + $0xd] ss:$16 sm:%s20_s8]   ;;  %s154_s12 = smov 104   ;;  %s13_s13 = smov 3 }
   0x2   :  { %8 = vrot.lane.b32.xlu0 %v122_v0, %s153_s9  ;;  %22 = vrot.lane.b32.xlu1 %v124_v1, %s154_s12  ;;  %s27_s14 = smov 3  ;;  %v123_v2 = vld [vmem:[%s232_s0 + $0xe] ss:$16 sm:%s13_s13]   ;;  %s34_s19 = smov 3  ;;  %vm31_vm4 = vcmask 851712   ;;  %vm38_vm5 = vcmask 786112  }
   0x3   :  { %v125_v3 = vld [vmem:[%s232_s0 + $0xc] ss:$16 sm:%s27_s14]   ;;  %v126_v4 = vld [vmem:[%s232_s0 + $0xb] ss:$16 sm:%s34_s19]   ;;  %s155_s22 = smov 112   ;;  %s156_s23 = smov 88  }
   0x4   :  { %36 = vrot.lane.b32.xlu2 %v126_v4, %s156_s23  ;;  %s157_s24 = smov 96   ;;  %s48_s25 = smov 3  ;;  %vm45_vm6 = vcmask 720512   ;;  %vm52_vm7 = vcmask 654912   ;;  %vm59_vm8 = vcmask 589312   ;;  %vm66_vm9 = vcmask 523712  }
   0x5   :  { %s41_s26 = smov 3  ;;  %s55_s27 = smov 3  ;;  %v128_v5 = vld [vmem:[%s232_s0 + $0x9] ss:$16 sm:%s48_s25]   ;;  %vm73_vm10 = vcmask 458112   ;;  %vm80_vm11 = vcmask 392512  }
   0x6   :  { %v127_v6 = vld [vmem:[%s232_s0 + $0xa] ss:$16 sm:%s41_s26]   ;;  %v129_v7 = vld [vmem:[%s232_s0 + $0x8] ss:$16 sm:%s55_s27]   ;;  %s158_s5 = smov 72   ;;  %s159_s6 = smov 80  }
   0x7   :  { %s160_s7 = smov 64   ;;  %s69_s8 = smov 3  ;;  %vm87_vm12 = vcmask 326912   ;;  %vm94_vm13 = vcmask 261312   ;;  %vm101_vm14 = vcmask 195712   ;;  %vm108_vm15 = vcmask 130112  }
   0x8   :  { %s62_s9 = smov 3  ;;  %s76_s10 = smov 3  ;;  %v131_v8 = vld [vmem:[%s232_s0 + $0x6] ss:$16 sm:%s69_s8]  }
   0x9   :  { %v130_v9 = vld [vmem:[%s232_s0 + $0x7] ss:$16 sm:%s62_s9]   ;;  %v132_v10 = vld [vmem:[%s232_s0 + $0x5] ss:$16 sm:%s76_s10]   ;;  %s161_s17 = smov 48   ;;  %s162_s18 = smov 56  }
   0xa   :  { %15 = vrot.lane.b32.xlu0 %v123_v2, %s155_s22  ;;  %29 = vrot.lane.b32.xlu1 %v125_v3, %s157_s24  ;;  %s163_s19 = smov 40   ;;  %s90_s20 = smov 3 }
   0xb   :  { %s83_s21 = smov 3  ;;  %s97_s22 = smov 3  ;;  %v134_v11 = vld [vmem:[%s232_s0 + $0x3] ss:$16 sm:%s90_s20]  }
   0xc   :  { %43 = vrot.lane.b32.xlu2 %v127_v6, %s159_s6  ;;  %v133_v12 = vld [vmem:[%s232_s0 + $0x4] ss:$16 sm:%s83_s21]   ;;  %s164_s29 = smov 24   ;;  %s165_s30 = smov 32  }
   0xd   :  { %v135_v13 = vld [vmem:[%s232_s0 + $0x2] ss:$16 sm:%s97_s22]   ;;  %s166_s2 = smov 16   ;;  %s104_s3 = smov 3 }
   0xe   :  { %v136_v14 = vld [vmem:[%s232_s0 + $0x1] ss:$16 sm:%s104_s3]   ;;  %s167_s6 = smov 8  }
  0x12   :  { %50 = vrot.lane.b32.xlu0 %v128_v5, %s158_s5  ;;  %57 = vrot.lane.b32.xlu1 %v129_v7, %s160_s7  ;;  %s2_s7 = smov 3 }
  0x13   :  { %v3_v15 = vld [vmem:[%s232_s0] ss:$16 sm:%s2_s7]  }
  0x14   :  { %64 = vrot.lane.b32.xlu2 %v130_v9, %s162_s18  ;;  %5 = vst.msk [vmem:[#allocation0] ss:$8 sm:$0x3] %vm4_vm0, %v3_v15  }
  0x1a   :  { %71 = vrot.lane.b32.xlu0 %v131_v8, %s161_s17  ;;  %78 = vrot.lane.b32.xlu1 %v132_v10, %s163_s19 }
  0x1c   :  { %85 = vrot.lane.b32.xlu2 %v133_v12, %s165_s30 }
  0x22   :  { %92 = vrot.lane.b32.xlu0 %v134_v11, %s164_s29  ;;  %99 = vrot.lane.b32.xlu1 %v135_v13, %s166_s2 }
  0x24   :  { %106 = vrot.lane.b32.xlu2 %v136_v14, %s167_s6 }
  0x5e   :  { %v37_v16 = vpop.permute.xlu2 %36  }
  0x66   :  { %v44_v17 = vpop.permute.xlu2 %43  }
  0x6e   :  { %v65_v19 = vpop.permute.xlu2 %64  }
  0x74   :  { %v9_v18 = vpop.permute.xlu0 %8   ;;  %v23_v20 = vpop.permute.xlu1 %22  }
  0x75   :  { %11 = vst.msk [vmem:[#allocation0] sm:$0x1] %vm10_vm1, %v9_v18  }
  0x76   :  { %v86_v22 = vpop.permute.xlu2 %85  }
  0x7c   :  { %v16_v21 = vpop.permute.xlu0 %15   ;;  %v30_v23 = vpop.permute.xlu1 %29  }
  0x7d   :  { %18 = vst.msk [vmem:[#allocation0] ss:$8 sm:$0x3] %vm17_vm2, %v16_v21  }
  0x7e   :  { %25 = vst.msk [vmem:[#allocation0] ss:$8 sm:$0x3] %vm24_vm3, %v23_v20   ;;  %v107_v25 = vpop.permute.xlu2 %106  }
  0x7f   :  { %32 = vst.msk [vmem:[#allocation0] ss:$8 sm:$0x3] %vm31_vm4, %v30_v23  }
  0x80   :  { %39 = vst.msk [vmem:[#allocation0] ss:$8 sm:$0x3] %vm38_vm5, %v37_v16  }
  0x81   :  { %46 = vst.msk [vmem:[#allocation0] ss:$8 sm:$0x3] %vm45_vm6, %v44_v17  }
  0x84   :  { %v51_v24 = vpop.permute.xlu0 %50   ;;  %v58_v26 = vpop.permute.xlu1 %57  }
  0x85   :  { %53 = vst.msk [vmem:[#allocation0] ss:$8 sm:$0x3] %vm52_vm7, %v51_v24  }
  0x86   :  { %60 = vst.msk [vmem:[#allocation0] ss:$8 sm:$0x3] %vm59_vm8, %v58_v26  }
  0x87   :  { %67 = vst.msk [vmem:[#allocation0] ss:$8 sm:$0x3] %vm66_vm9, %v65_v19  }
  0x8c   :  { %v72_v27 = vpop.permute.xlu0 %71   ;;  %v79_v28 = vpop.permute.xlu1 %78  }
  0x8d   :  { %74 = vst.msk [vmem:[#allocation0] ss:$8 sm:$0x3] %vm73_vm10, %v72_v27  }
  0x8e   :  { %81 = vst.msk [vmem:[#allocation0] ss:$8 sm:$0x3] %vm80_vm11, %v79_v28  }
  0x8f   :  { %88 = vst.msk [vmem:[#allocation0] ss:$8 sm:$0x3] %vm87_vm12, %v86_v22  }
  0x94   :  { %v93_v29 = vpop.permute.xlu0 %92   ;;  %v100_v30 = vpop.permute.xlu1 %99  }
  0x95   :  { %95 = vst.msk [vmem:[#allocation0] ss:$8 sm:$0x3] %vm94_vm13, %v93_v29  }
  0x96   :  { %102 = vst.msk [vmem:[#allocation0] ss:$8 sm:$0x3] %vm101_vm14, %v100_v30  }
  0x97   :  { %109 = vst.msk [vmem:[#allocation0] ss:$8 sm:$0x3] %vm108_vm15, %v107_v25  }
  0x9e   :  { %v112_v31 = vld [vmem:[#allocation0] sm:$0x1]  ;;  %v117_v32 = vld [vmem:[#allocation0 + $0x8] sm:$0x1] }
  0x9f   :  { %115 = vst [vmem:[%s233_s1] sm:$0x1] %v112_v31 }
  0xa0   :  { %137 = vst [vmem:[%s233_s1 + $0x1] sm:$0x1] %v117_v32 }

// kernel: tile.29
= control target key start
LH: loop header
LB: loop body
LE: loop exit
PB: predicated region body
PF: predicated region fallthrough
CT: control target
= control target key end

     0   :  { %s28_s0 = inlined_call_operand.vmem [shape: f32[8], index: 0, kind: input, shape index: {}]   ;;  %s29_s1 = inlined_call_operand.vmem [shape: f32[14,8], index: 1, kind: output, shape index: {}]  }
   0x1   :  { %v4_v0 = vld [vmem:[%s28_s0] ss:$0 sm:$0xff] }
   0x2   :  { %5 = vst [vmem:[%s29_s1] sm:$0xff] %v4_v0 }
   0x3   :  { %8 = vst [vmem:[%s29_s1 + $0x8] sm:$0xff] %v4_v0 }

// kernel: tile.30
= control target key start
LH: loop header
LB: loop body
LE: loop exit
PB: predicated region body
PF: predicated region fallthrough
CT: control target
= control target key end

     0   :  { %s115_s10 = smov 104   ;;  %s116_s11 = smov 88   ;;  %vm3_vm0 = vcmask 64512   ;;  %vm9_vm1 = vcmask 917312   ;;  %vm15_vm2 = vcmask 851712   ;;  %vm21_vm3 = vcmask 786112   ;;  %s183_s0 = inlined_call_operand.vmem [shape: f32[14,8], index: 0, kind: input, shape index: {}]   ;;  %s184_s1 = inlined_call_operand.vmem [shape: f32[1,112], index: 1, kind: output, shape index: {}]  }
   0x1   :  { %v89_v0 = vld [vmem:[%s183_s0 + $0xd] sm:$0x1]   ;;  %v91_v1 = vld [vmem:[%s183_s0 + $0xb] sm:$0x1]   ;;  %v93_v2 = vld [vmem:[%s183_s0 + $0x9] sm:$0x1]  }
   0x2   :  { %7 = vrot.lane.b32.xlu0 %v89_v0, %s115_s10  ;;  %19 = vrot.lane.b32.xlu1 %v91_v1, %s116_s11  ;;  %s117_s14 = smov 72   ;;  %v90_v3 = vld [vmem:[%s183_s0 + $0xc] sm:$0x1]   ;;  %v92_v4 = vld [vmem:[%s183_s0 + $0xa] sm:$0x1]   ;;  %s118_s19 = smov 96  }
   0x3   :  { %31 = vrot.lane.b32.xlu2 %v93_v2, %s117_s14  ;;  %s119_s20 = smov 80   ;;  %v94_v5 = vld [vmem:[%s183_s0 + $0x8] sm:$0x1]   ;;  %s120_s23 = smov 64   ;;  %v95_v6 = vld [vmem:[%s183_s0 + $0x7] sm:$0x1]  }
   0x4   :  { %v96_v7 = vld [vmem:[%s183_s0 + $0x6] sm:$0x1]   ;;  %s121_s28 = smov 56   ;;  %s122_s29 = smov 48   ;;  %v97_v8 = vld [vmem:[%s183_s0 + $0x5] sm:$0x1]  }
   0x5   :  { %s123_s3 = smov 40   ;;  %v98_v9 = vld [vmem:[%s183_s0 + $0x4] sm:$0x1]   ;;  %v99_v10 = vld [vmem:[%s183_s0 + $0x3] sm:$0x1]   ;;  %s124_s8 = smov 32  }
   0x6   :  { %s125_s9 = smov 24   ;;  %v100_v11 = vld [vmem:[%s183_s0 + $0x2] sm:$0x1]   ;;  %s126_s12 = smov 16   ;;  %v101_v12 = vld [vmem:[%s183_s0 + $0x1] sm:$0x1]  }
   0x7   :  { %s127_s15 = smov 8   ;;  %v2_v13 = vld [vmem:[%s183_s0] sm:$0x1]   ;;  %vm27_vm4 = vcmask 720512   ;;  %vm33_vm5 = vcmask 654912   ;;  %vm39_vm6 = vcmask 589312  }
   0x8   :  { %4 = vst.msk [vmem:[#allocation0] sm:$0x1] %vm3_vm0, %v2_v13   ;;  %vm45_vm7 = vcmask 523712   ;;  %vm51_vm8 = vcmask 458112   ;;  %vm57_vm9 = vcmask 392512   ;;  %vm63_vm10 = vcmask 326912  }
   0x9   :  { %vm69_vm11 = vcmask 261312   ;;  %vm75_vm12 = vcmask 195712   ;;  %vm81_vm13 = vcmask 130112  }
   0xa   :  { %13 = vrot.lane.b32.xlu0 %v90_v3, %s118_s19  ;;  %25 = vrot.lane.b32.xlu1 %v92_v4, %s119_s20 }
   0xb   :  { %37 = vrot.lane.b32.xlu2 %v94_v5, %s120_s23 }
  0x12   :  { %43 = vrot.lane.b32.xlu0 %v95_v6, %s121_s28  ;;  %49 = vrot.lane.b32.xlu1 %v96_v7, %s122_s29 }
  0x13   :  { %55 = vrot.lane.b32.xlu2 %v97_v8, %s123_s3 }
  0x1a   :  { %61 = vrot.lane.b32.xlu0 %v98_v9, %s124_s8  ;;  %67 = vrot.lane.b32.xlu1 %v99_v10, %s125_s9 }
  0x1b   :  { %73 = vrot.lane.b32.xlu2 %v100_v11, %s126_s12 }
  0x22   :  { %79 = vrot.lane.b32.xlu0 %v101_v12, %s127_s15 }
  0x5d   :  { %v32_v14 = vpop.permute.xlu2 %31  }
  0x65   :  { %v38_v15 = vpop.permute.xlu2 %37  }
  0x6d   :  { %v56_v16 = vpop.permute.xlu2 %55  }
  0x74   :  { %v8_v17 = vpop.permute.xlu0 %7   ;;  %v20_v18 = vpop.permute.xlu1 %19  }
  0x75   :  { %10 = vst.msk [vmem:[#allocation0] sm:$0x1] %vm9_vm1, %v8_v17   ;;  %v74_v19 = vpop.permute.xlu2 %73  }
  0x7c   :  { %v14_v20 = vpop.permute.xlu0 %13   ;;  %v26_v21 = vpop.permute.xlu1 %25  }
  0x7d   :  { %16 = vst.msk [vmem:[#allocation0] sm:$0x1] %vm15_vm2, %v14_v20  }
  0x7e   :  { %22 = vst.msk [vmem:[#allocation0] sm:$0x1] %vm21_vm3, %v20_v18  }
  0x7f   :  { %28 = vst.msk [vmem:[#allocation0] sm:$0x1] %vm27_vm4, %v26_v21  }
  0x80   :  { %34 = vst.msk [vmem:[#allocation0] sm:$0x1] %vm33_vm5, %v32_v14  }
  0x81   :  { %40 = vst.msk [vmem:[#allocation0] sm:$0x1] %vm39_vm6, %v38_v15  }
  0x84   :  { %v44_v22 = vpop.permute.xlu0 %43   ;;  %v50_v23 = vpop.permute.xlu1 %49  }
  0x85   :  { %46 = vst.msk [vmem:[#allocation0] sm:$0x1] %vm45_vm7, %v44_v22  }
  0x86   :  { %52 = vst.msk [vmem:[#allocation0] sm:$0x1] %vm51_vm8, %v50_v23  }
  0x87   :  { %58 = vst.msk [vmem:[#allocation0] sm:$0x1] %vm57_vm9, %v56_v16  }
  0x8c   :  { %v62_v24 = vpop.permute.xlu0 %61   ;;  %v68_v25 = vpop.permute.xlu1 %67  }
  0x8d   :  { %64 = vst.msk [vmem:[#allocation0] sm:$0x1] %vm63_vm10, %v62_v24  }
  0x8e   :  { %70 = vst.msk [vmem:[#allocation0] sm:$0x1] %vm69_vm11, %v68_v25  }
  0x8f   :  { %76 = vst.msk [vmem:[#allocation0] sm:$0x1] %vm75_vm12, %v74_v19  }
  0x94   :  { %v80_v26 = vpop.permute.xlu0 %79  }
  0x95   :  { %82 = vst.msk [vmem:[#allocation0] sm:$0x1] %vm81_vm13, %v80_v26  }
  0x9c   :  { %v85_v27 = vld [vmem:[#allocation0] sm:$0x1] }
  0x9d   :  { %88 = vst [vmem:[%s184_s1] sm:$0x1] %v85_v27 }

// kernel: tile.34
= control target key start
LH: loop header
LB: loop body
LE: loop exit
PB: predicated region body
PF: predicated region fallthrough
CT: control target
= control target key end

     0   :  { %s22_s0 = inlined_call_operand.vmem [shape: f32[16], index: 0, kind: input, shape index: {}]   ;;  %s23_s1 = inlined_call_operand.vmem [shape: f32[6,16], index: 1, kind: output, shape index: {}]  }
   0x1   :  { %v4_v0 = vld [vmem:[%s22_s0] ss:$0 sm:$0xff] }
   0x2   :  { %5 = vst [vmem:[%s23_s1] sm:$0xff] %v4_v0 }

// kernel: tile.35
= control target key start
LH: loop header
LB: loop body
LE: loop exit
PB: predicated region body
PF: predicated region fallthrough
CT: control target
= control target key end

     0   :  { %s51_s10 = smov 80   ;;  %s52_s11 = smov 48   ;;  %vm3_vm0 = vcmask 130048   ;;  %vm9_vm1 = vcmask 786048   ;;  %vm15_vm2 = vcmask 654848   ;;  %vm21_vm3 = vcmask 523648   ;;  %s87_s0 = inlined_call_operand.vmem [shape: f32[6,16], index: 0, kind: input, shape index: {}]   ;;  %s88_s1 = inlined_call_operand.vmem [shape: f32[1,96], index: 1, kind: output, shape index: {}]  }
   0x1   :  { %v41_v0 = vld [vmem:[%s87_s0 + $0x5] sm:$0x1]   ;;  %v43_v1 = vld [vmem:[%s87_s0 + $0x3] sm:$0x1]   ;;  %v45_v2 = vld [vmem:[%s87_s0 + $0x1] sm:$0x1]  }
   0x2   :  { %7 = vrot.lane.b32.xlu0 %v41_v0, %s51_s10  ;;  %19 = vrot.lane.b32.xlu1 %v43_v1, %s52_s11  ;;  %s53_s14 = smov 16   ;;  %v42_v3 = vld [vmem:[%s87_s0 + $0x4] sm:$0x1]   ;;  %v44_v4 = vld [vmem:[%s87_s0 + $0x2] sm:$0x1]   ;;  %s54_s19 = smov 64  }
   0x3   :  { %31 = vrot.lane.b32.xlu2 %v45_v2, %s53_s14  ;;  %s55_s20 = smov 32   ;;  %v2_v5 = vld [vmem:[%s87_s0] sm:$0x1]   ;;  %vm27_vm4 = vcmask 392448   ;;  %vm33_vm5 = vcmask 261248  }
   0x4   :  { %4 = vst.msk [vmem:[#allocation0] sm:$0x1] %vm3_vm0, %v2_v5  }
   0xa   :  { %13 = vrot.lane.b32.xlu0 %v42_v3, %s54_s19  ;;  %25 = vrot.lane.b32.xlu1 %v44_v4, %s55_s20 }
  0x5d   :  { %v32_v6 = vpop.permute.xlu2 %31  }
  0x74   :  { %v8_v7 = vpop.permute.xlu0 %7   ;;  %v20_v8 = vpop.permute.xlu1 %19  }
  0x75   :  { %10 = vst.msk [vmem:[#allocation0] sm:$0x1] %vm9_vm1, %v8_v7  }
  0x7c   :  { %v14_v9 = vpop.permute.xlu0 %13   ;;  %v26_v10 = vpop.permute.xlu1 %25  }
  0x7d   :  { %16 = vst.msk [vmem:[#allocation0] sm:$0x1] %vm15_vm2, %v14_v9  }
  0x7e   :  { %22 = vst.msk [vmem:[#allocation0] sm:$0x1] %vm21_vm3, %v20_v8  }
  0x7f   :  { %28 = vst.msk [vmem:[#allocation0] sm:$0x1] %vm27_vm4, %v26_v10  }
  0x80   :  { %34 = vst.msk [vmem:[#allocation0] sm:$0x1] %vm33_vm5, %v32_v6  }
  0x87   :  { %v37_v11 = vld [vmem:[#allocation0] sm:$0x1] }
  0x88   :  { %40 = vst [vmem:[%s88_s1] sm:$0x1] %v37_v11 }

// kernel: tile.39
= control target key start
LH: loop header
LB: loop body
LE: loop exit
PB: predicated region body
PF: predicated region fallthrough
CT: control target
= control target key end

     0   :  { %s22_s0 = inlined_call_operand.vmem [shape: f32[16], index: 0, kind: input, shape index: {}]   ;;  %s23_s1 = inlined_call_operand.vmem [shape: f32[2,16], index: 1, kind: output, shape index: {}]  }
   0x1   :  { %v4_v0 = vld [vmem:[%s22_s0] ss:$0 sm:$0xff] }
   0x2   :  { %5 = vst [vmem:[%s23_s1] sm:$0x3] %v4_v0 }

// kernel: tile.40
= control target key start
LH: loop header
LB: loop body
LE: loop exit
PB: predicated region body
PF: predicated region fallthrough
CT: control target
= control target key end

     0   :  { %vm7_vm0 = vcmask 130048   ;;  %vm13_vm1 = vcmask 261248   ;;  %s39_s0 = inlined_call_operand.vmem [shape: f32[2,16], index: 0, kind: input, shape index: {}]   ;;  %s40_s1 = inlined_call_operand.vmem [shape: f32[1,32], index: 1, kind: output, shape index: {}]  }
   0x1   :  { %v4_v0 = vld [vmem:[%s39_s0] sm:$0x3]  ;;  %s22_s0 = smov 16  }
   0x2   :  { %5 = vst [vmem:[#allocation1] sm:$0x3] %v4_v0 }
   0x9   :  { %v10_v1 = vld [vmem:[#allocation1 + $0x1] sm:$0x1]   ;;  %v6_v2 = vld [vmem:[#allocation1] sm:$0x1]  }
   0xa   :  { %11 = vrot.lane.b32.xlu0 %v10_v1, %s22_s0  ;;  %8 = vst.msk [vmem:[#allocation0] sm:$0x1] %vm7_vm0, %v6_v2  }
  0x7c   :  { %v12_v3 = vpop.permute.xlu0 %11  }
  0x7d   :  { %14 = vst.msk [vmem:[#allocation0] sm:$0x1] %vm13_vm1, %v12_v3  }
  0x84   :  { %v17_v4 = vld [vmem:[#allocation0] sm:$0x1] }
  0x85   :  { %20 = vst [vmem:[%s40_s1] sm:$0x1] %v17_v4 }

// kernel: cnn_forward.1
= control target key start
LH: loop header
LB: loop body
LE: loop exit
PB: predicated region body
PF: predicated region fallthrough
CT: control target
= control target key end

     0   :  { %s7800_s0 = inlined_call_operand.vmem [shape: f32[2,64,192], index: 0, kind: input, shape index: {}]   ;;  %s7801_s1 = inlined_call_operand.vmem [shape: f32[3,192,496], index: 1, kind: input, shape index: {}]   ;;  %s7802_s2 = inlined_call_operand.vmem [shape: f32[3,248,224], index: 2, kind: input, shape index: {}]   ;;  %s7803_s3 = inlined_call_operand.vmem [shape: f32[3,112,192], index: 3, kind: input, shape index: {}]   ;;  %s7804_s4 = inlined_call_operand.vmem [shape: f32[3,96,64], index: 4, kind: input, shape index: {}]   ;;  %s7805_s5 = inlined_call_operand.vmem [shape: f32[1,32,64], index: 5, kind: input, shape index: {}]   ;;  %s7806_s6 = inlined_call_operand.vmem [shape: f32[1,248], index: 6, kind: input, shape index: {}]   ;;  %s7807_s7 = inlined_call_operand.vmem [shape: f32[1,112], index: 7, kind: input, shape index: {}]   ;;  %s7808_s8 = inlined_call_operand.vmem [shape: f32[1,96], index: 8, kind: input, shape index: {}]   ;;  %s7809_s9 = inlined_call_operand.vmem [shape: f32[1,32], index: 9, kind: input, shape index: {}]   ;;  %s7810_s10 = inlined_call_operand.vmem [shape: f32[1,32], index: 10, kind: input, shape index: {}]   ;;  %s7811_s11 = inlined_call_operand.vmem [shape: f32[32,32], index: 11, kind: input, shape index: {}]   ;;  %s7812_s12 = inlined_call_operand.vmem [shape: f32[1,32], index: 12, kind: input, shape index: {}]   ;;  %s7813_s13 = inlined_call_operand.vmem [shape: f32[32,10], index: 13, kind: input, shape index: {}]   ;;  %s7814_s14 = inlined_call_operand.vmem [shape: f32[1,10], index: 14, kind: input, shape index: {}]   ;;  %s7815_s15 = inlined_call_operand.hbm [shape: f32[2,1,10], index: 15, kind: output, shape index: {}]  }
   0x1   :  { %7822 = sst [smem:[#allocation65_spill]] %s7800_s0 }
   0x2   :  { %20 = vsyncpa [#allocation7], 0 }
   0x3   :  { %22 = vsyncpa [#allocation7 + $0x1], 0  ;;  %s4673_s18 = smov 0   ;;  %s4675_s19 = smov 0  }
   0x4   :  { %s4677_s20 = smov 0   ;;  %s4679_s21 = smov 0  }
   0x5 LB: > { %7823 = sst [smem:[#allocation9_spill]] %s4574_s18  ;;  %s4694_s22 = sadd.s32 4294967295, %s4586_s21   ;;  %s4586_s21 = sphi %s4679_s21, %s7935_s21   ;;  %s4582_s20 = sphi %s4677_s20, %s7937_s20   ;;  %s4578_s19 = sphi %s4675_s19, %s7939_s19   ;;  %s4574_s18 = sphi %s4673_s18, %s7938_s18  }
   0x6   : > { %7824 = sst [smem:[#allocation10_spill]] %s4582_s20  ;;  %s3795_s23 = sadd.s32 4294967294, %s4586_s21  }
   0x7   : > { %7825 = sst [smem:[#allocation11_spill]] %s4586_s21  ;;  %s4698_s24 = sadd.s32 1, %s4586_s21  }
   0x8   : > { %7826 = sst [smem:[#allocation12_spill]] %s4698_s24  ;;  %s355_s25 = sadd.s32 1, %s4582_s20 }
   0x9   : > { %s352_s26 = ssub.s32 %s4586_s21, %s4698_s24  ;;  %p365_p0 = scmp.ne.s32.totalorder %s4582_s20, %s4578_s19 }
   0xa   : > { %p353_p1 = scmp.eq.s32.totalorder %s352_s26, 0  ;;  %p366_p2 = scmp.eq.s32.totalorder %s4694_s22, 1 }
   0xb   : > { %p371_p3 = scmp.ne.s32.totalorder %s4578_s19, %s4574_s18  ;;  %p372_p4 = scmp.eq.s32.totalorder %s3795_s23, 1 }
   0xc   : > { %s4709_s27 = scalar_select %p353_p1, %s4582_s20, %s355_s25  }
   0xd   : > { %p4711_p5 = por %p366_p2, %p365_p0  ;;  %p4715_p6 = por %p372_p4, %p371_p3 }
   0xe   : > { %7827 = sst [smem:[#allocation13_spill]] %s4709_s27  ;;  %p3798_p7 = scmp.ge.s32.totalorder %s4586_s21, 1 }
   0xf   : > { %s7829_s29 = scalar_select %p4715_p6, 1, 0 }
  0x10   : > { %p440_p8 = scmp.lt.s32.totalorder %s4586_s21, 3 }
  0x11   : > { %7830 = sst [smem:[#allocation14_spill]] %s7829_s29 }
  0x12   : > { %p441_p9 = pnand %p3798_p7, %p440_p8 }
  0x14   : > { %444 = sbr.rel (%p441_p9) target bundleno = 2866 (0xb32), region = 80 }
  0x19   : > { %v3861_v0 = vld [vmem:[%s7801_s1 + $0x4e0] sm:$0xff]  ;;  %v3862_v2 = vld [vmem:[%s7801_s1 + $0x4e8] sm:$0xff]  ;;  %p487_p10 = scmp.lt.s32.totalorder %s4694_s22, 1  ;;  %s7831_s0 = sld [smem:[#allocation65_spill]]  ;;  %vm721_vm0 = vcmask 1046528   ;;  %vm760_vm1 = vcmask 523264  }
  0x1a   : > { %v3893_v1 = vld [vmem:[%s7801_s1 + $0x5e0] sm:$0xff]  ;;  %777 = vmatpush.msra.mxu0 %v3861_v0  ;;  %v3894_v3 = vld [vmem:[%s7801_s1 + $0x5e8] sm:$0xff]  ;;  %859 = vmatpush.msra.mxu2 %v3862_v2  ;;  %v3863_v45 = vld [vmem:[%s7801_s1 + $0x4f0] sm:$0xff]  ;;  %vm1556_vm2 = vcmask 1045504   ;;  %s4588_s27 = smov 8   ;;  %vm2043_vm3 = vcmask 64512   ;;  %s3736_s25 = scalar_lea.hbm %s7815_s15, %s4694_s22 }
  0x1b   : > { %826 = vmatpush.msra.mxu1 %v3893_v1  ;;  %v3857_v4 = vld [vmem:[%s7801_s1 + $0x4c0] sm:$0xff]  ;;  %908 = vmatpush.msra.mxu3 %v3894_v3  ;;  %v3858_v6 = vld [vmem:[%s7801_s1 + $0x4c8] sm:$0xff]  ;;  %s488_s24 = scalar_select %p487_p10, %s4694_s22, 1  ;;  %v3859_v47 = vld [vmem:[%s7801_s1 + $0x4d0] sm:$0xff]  ;;  %vm2131_vm6 = vcmask 506880   ;;  %vm2309_vm13 = vcmask 982016  }
  0x1c   : > { %v3889_v5 = vld [vmem:[%s7801_s1 + $0x5c0] sm:$0xff]  ;;  %v3890_v7 = vld [vmem:[%s7801_s1 + $0x5c8] sm:$0xff]  ;;  %778 = vmatpush.msra.mxu0 %v3857_v4  ;;  %860 = vmatpush.msra.mxu2 %v3858_v6  ;;  %v3855_v55 = vld [vmem:[%s7801_s1 + $0x4b0] sm:$0xff]  ;;  %vm2316_vm14 = vcmask 980992   ;;  %s4590_s18 = smov 16   ;;  %vm2976_vm15 = vcmask 130048  }
  0x1d   : > { %v3853_v8 = vld [vmem:[%s7801_s1 + $0x4a0] sm:$0xff]  ;;  %827 = vmatpush.msra.mxu1 %v3889_v5  ;;  %v3854_v10 = vld [vmem:[%s7801_s1 + $0x4a8] sm:$0xff]  ;;  %909 = vmatpush.msra.mxu3 %v3890_v7  ;;  %s4384_s30 = sshll.u32 %s488_s24, 7  ;;  %v3851_v61 = vld [vmem:[%s7801_s1 + $0x490] sm:$0xff]  ;;  %s4591_s23 = smov 32  }
  0x1e   : > { %v3885_v9 = vld [vmem:[%s7801_s1 + $0x5a0] sm:$0xff]  ;;  %v3886_v11 = vld [vmem:[%s7801_s1 + $0x5a8] sm:$0xff]  ;;  %779 = vmatpush.msra.mxu0 %v3853_v8  ;;  %861 = vmatpush.msra.mxu2 %v3854_v10  ;;  %v3847_v0 = vld [vmem:[%s7801_s1 + $0x470] sm:$0xff]  ;;  %s4592_s26 = smov 96   ;;  %s485_s16 = sand.u32 1, %s4578_s19  }
  0x1f   : > { %v3849_v12 = vld [vmem:[%s7801_s1 + $0x480] sm:$0xff]  ;;  %828 = vmatpush.msra.mxu1 %v3885_v9  ;;  %v3850_v14 = vld [vmem:[%s7801_s1 + $0x488] sm:$0xff]  ;;  %910 = vmatpush.msra.mxu3 %v3886_v11  ;;  %s4786_s21 = scalar_lea.vmem %s7831_s0, %s4384_s30  ;;  %v3843_v7 = vld [vmem:[%s7801_s1 + $0x450] sm:$0xff]  ;;  %s486_s24 = scalar_lea.vmem [#allocation6], %s485_s16 }
  0x20   : > { %v3881_v13 = vld [vmem:[%s7801_s1 + $0x580] sm:$0xff]  ;;  %v3882_v15 = vld [vmem:[%s7801_s1 + $0x588] sm:$0xff]  ;;  %780 = vmatpush.msra.mxu0 %v3849_v12  ;;  %862 = vmatpush.msra.mxu2 %v3850_v14  ;;  %v4807_v26 = vld [vmem:[%s4786_s21 + $0x18] sm:$0xff]  ;;  %s3728_s30 = scalar_lea.sflag [#allocation7], %s485_s16 }
  0x21   : > { %v3845_v16 = vld [vmem:[%s7801_s1 + $0x460] sm:$0xff]  ;;  %829 = vmatpush.msra.mxu1 %v3881_v13  ;;  %v3846_v18 = vld [vmem:[%s7801_s1 + $0x468] sm:$0xff]  ;;  %911 = vmatpush.msra.mxu3 %v3882_v15  ;;  %v726_v30 = vrot.slane %v4807_v26, 1  ;;  %v4880_v52 = vld [vmem:[%s4786_s21 + $0x10] sm:$0xff] }
  0x22   : > { %v3877_v17 = vld [vmem:[%s7801_s1 + $0x560] sm:$0xff]  ;;  %v3878_v19 = vld [vmem:[%s7801_s1 + $0x568] sm:$0xff]  ;;  %781 = vmatpush.msra.mxu0 %v3845_v16  ;;  %863 = vmatpush.msra.mxu2 %v3846_v18  ;;  %v4884_v54 = vld [vmem:[%s4786_s21 + $0x38] sm:$0xff]  ;;  %v723_v59 = vrot.slane %v4880_v52, 1 }
  0x23   : > { %v3841_v20 = vld [vmem:[%s7801_s1 + $0x440] sm:$0xff]  ;;  %830 = vmatpush.msra.mxu1 %v3877_v17  ;;  %v3842_v22 = vld [vmem:[%s7801_s1 + $0x448] sm:$0xff]  ;;  %912 = vmatpush.msra.mxu3 %v3878_v19  ;;  %v734_v60 = vrot.slane %v4884_v54, 1  ;;  %v3839_v10 = vld [vmem:[%s7801_s1 + $0x430] sm:$0xff] }
  0x24   : > { %v3873_v21 = vld [vmem:[%s7801_s1 + $0x540] sm:$0xff]  ;;  %v3874_v23 = vld [vmem:[%s7801_s1 + $0x548] sm:$0xff]  ;;  %782 = vmatpush.msra.mxu0 %v3841_v20  ;;  %864 = vmatpush.msra.mxu2 %v3842_v22  ;;  %v3895_v11 = vld [vmem:[%s7801_s1 + $0x5f0] sm:$0xff] }
  0x25   : > { %v3837_v24 = vld [vmem:[%s7801_s1 + $0x420] sm:$0xff]  ;;  %831 = vmatpush.msra.mxu1 %v3873_v21  ;;  %v3838_v27 = vld [vmem:[%s7801_s1 + $0x428] sm:$0xff]  ;;  %913 = vmatpush.msra.mxu3 %v3874_v23  ;;  %v3864_v12 = vld [vmem:[%s7801_s1 + $0x4f8] sm:$0xff] }
  0x26   : > { %v3869_v25 = vld [vmem:[%s7801_s1 + $0x520] sm:$0xff]  ;;  %v3870_v28 = vld [vmem:[%s7801_s1 + $0x528] sm:$0xff]  ;;  %783 = vmatpush.msra.mxu0 %v3837_v24  ;;  %865 = vmatpush.msra.mxu2 %v3838_v27  ;;  %v3891_v13 = vld [vmem:[%s7801_s1 + $0x5d0] sm:$0xff] }
  0x27   : > { %v605_v29 = vld [vmem:[%s4786_s21 + $0x8] sm:$0xfe]  ;;  %v3833_v31 = vld [vmem:[%s7801_s1 + $0x400] sm:$0xff]  ;;  %832 = vmatpush.msra.mxu1 %v3869_v25  ;;  %914 = vmatpush.msra.mxu3 %v3870_v28  ;;  %v3860_v14 = vld [vmem:[%s7801_s1 + $0x4d8] sm:$0xff] }
  0x28   : > { %v3865_v32 = vld [vmem:[%s7801_s1 + $0x500] sm:$0xff]  ;;  %v725_v33 = vrot.slane %v605_v29, 1  ;;  %v3834_v34 = vld [vmem:[%s7801_s1 + $0x408] sm:$0xff]  ;;  %784 = vmatpush.msra.mxu0 %v3833_v31  ;;  %v3835_v15 = vld [vmem:[%s7801_s1 + $0x410] sm:$0xff] }
  0x29   : > { %v3866_v35 = vld [vmem:[%s7801_s1 + $0x508] sm:$0xff]  ;;  %833 = vmatpush.msra.mxu1 %v3865_v32  ;;  %v3829_v37 = vld [vmem:[%s7801_s1 + $0x3e0] sm:$0xff]  ;;  %866 = vmatpush.msra.mxu2 %v3834_v34  ;;  %v3887_v16 = vld [vmem:[%s7801_s1 + $0x5b0] sm:$0xff] }
  0x2a   : > { %v4830_v36 = vsel %vm721_vm0, %v725_v33, %v726_v30  ;;  %v3830_v38 = vld [vmem:[%s7801_s1 + $0x3e8] sm:$0xff]  ;;  %915 = vmatpush.msra.mxu3 %v3866_v35  ;;  %v3825_v40 = vld [vmem:[%s7801_s1 + $0x3c0] sm:$0xff]  ;;  %785 = vmatpush.msra.mxu0 %v3829_v37  ;;  %v3856_v17 = vld [vmem:[%s7801_s1 + $0x4b8] sm:$0xff] }
  0x2b   : > { %v4839_v39 = vld [vmem:[%s4786_s21 + $0x28] sm:$0xff]  ;;  %3897 = vmatmul.msk.f32.vlgmr.msra.gmra.mxu1 %vm760_vm1, %v4830_v36  ;;  %3905 = vmatmul.msk.f32.vlgmr.msra.gmra.mxu3 %vm760_vm1, %v4830_v36  ;;  %v3821_v43 = vld [vmem:[%s7801_s1 + $0x3a0] sm:$0xff]  ;;  %v4973_v20 = vld [vmem:[%s4786_s21 + $0x30] sm:$0xff] }
  0x2c   : > { %v3826_v41 = vld [vmem:[%s7801_s1 + $0x3c8] sm:$0xff]  ;;  %867 = vmatpush.msra.mxu2 %v3830_v38  ;;  %v730_v42 = vrot.slane %v4839_v39, 1  ;;  %786 = vmatpush.msra.mxu0 %v3825_v40  ;;  %v3817_v46 = vld [vmem:[%s7801_s1 + $0x380] sm:$0xff]  ;;  %v4976_v21 = vld [vmem:[%s4786_s21 + $0x58] sm:$0xff]  ;;  %v732_v25 = vrot.slane %v4973_v20, 1 }
  0x2d   : > { %v3822_v44 = vld [vmem:[%s7801_s1 + $0x3a8] sm:$0xff]  ;;  %941 = vmatpush.msrb.mxu1 %v3863_v45  ;;  %v3813_v50 = vld [vmem:[%s7801_s1 + $0x360] sm:$0xff]  ;;  %990 = vmatpush.msrb.mxu3 %v3895_v11  ;;  %v3831_v22 = vld [vmem:[%s7801_s1 + $0x3f0] sm:$0xff]  ;;  %v742_v27 = vrot.slane %v4976_v21, 1 }
  0x2e   : > { %868 = vmatpush.msra.mxu2 %v3826_v41  ;;  %v3818_v48 = vld [vmem:[%s7801_s1 + $0x388] sm:$0xff]  ;;  %787 = vmatpush.msra.mxu0 %v3821_v43  ;;  %v4871_v49 = vsel %vm721_vm0, %v726_v30, %v730_v42  ;;  %v604_v53 = vld [vmem:[%s4786_s21] sm:$0xfe]  ;;  %v4923_v4 = vsel %vm721_vm0, %v730_v42, %v734_v60  ;;  %v3883_v23 = vld [vmem:[%s7801_s1 + $0x590] sm:$0xff] }
  0x2f   : > { %v3814_v51 = vld [vmem:[%s7801_s1 + $0x368] sm:$0xff]  ;;  %942 = vmatpush.msrb.mxu1 %v3859_v47  ;;  %v3809_v56 = vld [vmem:[%s7801_s1 + $0x340] sm:$0xff]  ;;  %v722_v58 = vrot.slane %v604_v53, 1  ;;  %991 = vmatpush.msrb.mxu3 %v3891_v13  ;;  %v3852_v24 = vld [vmem:[%s7801_s1 + $0x498] sm:$0xff] }
  0x30   : > { %869 = vmatpush.msra.mxu2 %v3822_v44  ;;  %788 = vmatpush.msra.mxu0 %v3817_v46  ;;  %v3810_v57 = vld [vmem:[%s7801_s1 + $0x348] sm:$0xff]  ;;  %v3805_v62 = vld [vmem:[%s7801_s1 + $0x320] sm:$0xff]  ;;  %v3827_v28 = vld [vmem:[%s7801_s1 + $0x3d0] sm:$0xff] }
  0x31   : > { %v3806_v63 = vld [vmem:[%s7801_s1 + $0x328] sm:$0xff]  ;;  %943 = vmatpush.msrb.mxu1 %v3855_v55  ;;  %v3801_v1 = vld [vmem:[%s7801_s1 + $0x300] sm:$0xff]  ;;  %v4920_v3 = vsel %vm721_vm0, %v722_v58, %v723_v59  ;;  %992 = vmatpush.msrb.mxu3 %v3887_v16  ;;  %v3879_v29 = vld [vmem:[%s7801_s1 + $0x570] sm:$0xff] }
  0x32   : > { %870 = vmatpush.msra.mxu2 %v3818_v48  ;;  %789 = vmatpush.msra.mxu0 %v3813_v50  ;;  %v3802_v2 = vld [vmem:[%s7801_s1 + $0x308] sm:$0xff]  ;;  %v4926_v5 = vld [vmem:[%s4786_s21 + $0x20] sm:$0xff]  ;;  %v3848_v30 = vld [vmem:[%s7801_s1 + $0x478] sm:$0xff] }
  0x33   : > { %3898 = vmatmul.msk.f32.gmra.mxu1 %vm760_vm1, %v4871_v49  ;;  %3906 = vmatmul.msk.f32.gmra.mxu3 %vm760_vm1, %v4871_v49  ;;  %v4929_v6 = vld [vmem:[%s4786_s21 + $0x48] sm:$0xff]  ;;  %v728_v8 = vrot.slane %v4926_v5, 1  ;;  %v3823_v31 = vld [vmem:[%s7801_s1 + $0x3b0] sm:$0xff]  ;;  %v3844_v33 = vld [vmem:[%s7801_s1 + $0x458] sm:$0xff] }
  0x34   : > { %871 = vmatpush.msra.mxu2 %v3814_v51  ;;  %790 = vmatpush.msra.mxu0 %v3809_v56  ;;  %v738_v9 = vrot.slane %v4929_v6, 1  ;;  %v3875_v32 = vld [vmem:[%s7801_s1 + $0x550] sm:$0xff]  ;;  %v3896_v34 = vld [vmem:[%s7801_s1 + $0x5f8] sm:$0xff]  ;;  %v5023_v38 = vld [vmem:[%s4786_s21 + $0x40] sm:$0xff] }
  0x35   : > { %944 = vmatpush.msrb.mxu1 %v3851_v61  ;;  %v4967_v18 = vsel %vm721_vm0, %v723_v59, %v728_v8  ;;  %993 = vmatpush.msrb.mxu3 %v3883_v23  ;;  %v5017_v35 = vsel %vm721_vm0, %v728_v8, %v732_v25  ;;  %v5026_v40 = vld [vmem:[%s4786_s21 + $0x68] sm:$0xff]  ;;  %v3819_v41 = vld [vmem:[%s7801_s1 + $0x390] sm:$0xff]  ;;  %v3840_v43 = vld [vmem:[%s7801_s1 + $0x438] sm:$0xff]  ;;  %v736_v44 = vrot.slane %v5023_v38, 1 }
  0x36   : > { %872 = vmatpush.msra.mxu2 %v3810_v57  ;;  %791 = vmatpush.msra.mxu0 %v3805_v62  ;;  %v4970_v19 = vsel %vm721_vm0, %v734_v60, %v738_v9  ;;  %v5020_v37 = vsel %vm721_vm0, %v738_v9, %v742_v27  ;;  %v3871_v42 = vld [vmem:[%s7801_s1 + $0x530] sm:$0xff]  ;;  %v746_v45 = vrot.slane %v5026_v40, 1  ;;  %v3892_v48 = vld [vmem:[%s7801_s1 + $0x5d8] sm:$0xff]  ;;  %v5120_v13 = vld [vmem:[%s4786_s21 + $0x60] sm:$0xff] }
  0x37   : > { %945 = vmatpush.msrb.mxu1 %v3847_v0  ;;  %994 = vmatpush.msrb.mxu3 %v3879_v29  ;;  %v3815_v46 = vld [vmem:[%s7801_s1 + $0x370] sm:$0xff]  ;;  %v3836_v50 = vld [vmem:[%s7801_s1 + $0x418] sm:$0xff]  ;;  %v5070_v57 = vsel %vm721_vm0, %v732_v25, %v736_v44  ;;  %v744_v16 = vrot.slane %v5120_v13, 1  ;;  %v568_v29 = vld [vmem:[%s7801_s1 + $0x1e0] sm:$0xff] }
  0x38   : > { %873 = vmatpush.msra.mxu2 %v3806_v63  ;;  %792 = vmatpush.msra.mxu0 %v3801_v1  ;;  %v3867_v47 = vld [vmem:[%s7801_s1 + $0x510] sm:$0xff]  ;;  %v3888_v51 = vld [vmem:[%s7801_s1 + $0x5b8] sm:$0xff]  ;;  %v5073_v58 = vsel %vm721_vm0, %v742_v27, %v746_v45 }
  0x39   : > { %793 = vmatmul.f32.vlgmr.msra.gmra.mxu0 %v4920_v3  ;;  %946 = vmatpush.msrb.mxu1 %v3843_v7  ;;  %v3811_v53 = vld [vmem:[%s7801_s1 + $0x350] sm:$0xff]  ;;  %v3832_v55 = vld [vmem:[%s7801_s1 + $0x3f8] sm:$0xff] }
  0x3a   : > { %874 = vmatpush.msra.mxu2 %v3802_v2  ;;  %1023 = vmatpush.msrb.mxu0 %v3864_v12  ;;  %v3884_v56 = vld [vmem:[%s7801_s1 + $0x598] sm:$0xff]  ;;  %v5076_v59 = vld [vmem:[%s4786_s21 + $0x50] sm:$0xff] }
  0x3b   : > { %3899 = vmatmul.msk.f32.gmra.mxu1 %vm760_vm1, %v4923_v4  ;;  %875 = vmatmul.f32.vlgmr.msra.gmra.mxu2 %v4920_v3  ;;  %v607_v60 = vld [vmem:[%s4786_s21 + $0x78] sm:$0x7f]  ;;  %v3807_v61 = vld [vmem:[%s7801_s1 + $0x330] sm:$0xff]  ;;  %v740_v63 = vrot.slane %v5076_v59, 1 }
  0x3c   : > { %3907 = vmatmul.msk.f32.gmra.mxu3 %vm760_vm1, %v4923_v4  ;;  %947 = vmatpush.msrb.mxu1 %v3839_v10  ;;  %v3828_v62 = vld [vmem:[%s7801_s1 + $0x3d8] sm:$0xff]  ;;  %v5092_v0 = vrot.slane %v607_v60, 1  ;;  %v3803_v1 = vld [vmem:[%s7801_s1 + $0x310] sm:$0xff]  ;;  %v549_v60 = vld [vmem:[%s7801_s1 + $0x148] sm:$0xff] }
  0x3d   : > { %1024 = vmatpush.msrb.mxu0 %v3860_v14  ;;  %1072 = vmatpush.msrb.mxu2 %v3896_v34  ;;  %v3824_v2 = vld [vmem:[%s7801_s1 + $0x3b8] sm:$0xff]  ;;  %v5113_v11 = vsel %vm721_vm0, %v736_v44, %v740_v63  ;;  %v5142_v23 = vsel %vm721_vm0, %v740_v63, %v744_v16  ;;  %v548_v34 = vld [vmem:[%s7801_s1 + $0x140] sm:$0xff]  ;;  %v569_v44 = vld [vmem:[%s7801_s1 + $0x1e8] sm:$0xff] }
  0x3e   : > { %948 = vmatpush.msrb.mxu1 %v3835_v15  ;;  %995 = vmatpush.msrb.mxu3 %v3875_v32  ;;  %v3880_v7 = vld [vmem:[%s7801_s1 + $0x578] sm:$0xff]  ;;  %v5117_v12 = vsel %vm721_vm0, %v746_v45, %v5092_v0  ;;  %v556_v32 = vld [vmem:[%s7801_s1 + $0x180] sm:$0xff] }
  0x3f   : > { %1025 = vmatpush.msrb.mxu0 %v3856_v17  ;;  %1073 = vmatpush.msrb.mxu2 %v3892_v48  ;;  %v3876_v8 = vld [vmem:[%s7801_s1 + $0x558] sm:$0xff]  ;;  %v536_v45 = vld [vmem:[%s7801_s1 + $0xe0] sm:$0xff] }
  0x40   : > { %949 = vmatpush.msrb.mxu1 %v3831_v22  ;;  %996 = vmatpush.msrb.mxu3 %v3871_v42  ;;  %v3820_v9 = vld [vmem:[%s7801_s1 + $0x398] sm:$0xff]  ;;  %v540_v42 = vld [vmem:[%s7801_s1 + $0x100] sm:$0xff] }
  0x41   : > { %796 = vmatmul.f32.gmra.mxu0 %v4967_v18  ;;  %1074 = vmatpush.msrb.mxu2 %v3888_v51  ;;  %v3872_v10 = vld [vmem:[%s7801_s1 + $0x538] sm:$0xff]  ;;  %v532_v48 = vld [vmem:[%s7801_s1 + $0xc0] sm:$0xff]  ;;  %v557_v51 = vld [vmem:[%s7801_s1 + $0x188] sm:$0xff] }
  0x42   : > { %1026 = vmatpush.msrb.mxu0 %v3852_v24  ;;  %950 = vmatpush.msrb.mxu1 %v3827_v28  ;;  %v3816_v14 = vld [vmem:[%s7801_s1 + $0x378] sm:$0xff]  ;;  %v606_v24 = vld [vmem:[%s4786_s21 + $0x70] sm:$0x7f]  ;;  %v576_v63 = vld [vmem:[%s7801_s1 + $0x220] sm:$0xff] }
  0x43   : > { %3900 = vmatmul.msk.f32.gmra.mxu1 %vm760_vm1, %v4970_v19  ;;  %878 = vmatmul.f32.gmra.mxu2 %v4967_v18  ;;  %v3868_v15 = vld [vmem:[%s7801_s1 + $0x518] sm:$0xff]  ;;  %v5154_v27 = vrot.slane %v606_v24, 1  ;;  %v521_v24 = vld [vmem:[%s7801_s1 + $0x68] sm:$0xff] }
  0x44   : > { %3908 = vmatmul.msk.f32.gmra.mxu3 %vm760_vm1, %v4970_v19  ;;  %1027 = vmatpush.msrb.mxu0 %v3848_v30  ;;  %v3812_v17 = vld [vmem:[%s7801_s1 + $0x358] sm:$0xff]  ;;  %v564_v30 = vld [vmem:[%s7801_s1 + $0x1c0] sm:$0xff] }
  0x45   : > { %951 = vmatpush.msrb.mxu1 %v3823_v31  ;;  %997 = vmatpush.msrb.mxu3 %v3867_v47  ;;  %v3808_v22 = vld [vmem:[%s7801_s1 + $0x338] sm:$0xff]  ;;  %v5158_v28 = vsel %vm721_vm0, %v744_v16, %v5154_v27  ;;  %v560_v31 = vld [vmem:[%s7801_s1 + $0x1a0] sm:$0xff]  ;;  %v561_v47 = vld [vmem:[%s7801_s1 + $0x1a8] sm:$0xff] }
  0x46   : > { %1028 = vmatpush.msrb.mxu0 %v3844_v33  ;;  %1075 = vmatpush.msrb.mxu2 %v3884_v56  ;;  %v3804_v25 = vld [vmem:[%s7801_s1 + $0x318] sm:$0xff]  ;;  %v552_v33 = vld [vmem:[%s7801_s1 + $0x160] sm:$0xff]  ;;  %v589_v16 = vld [vmem:[%s7801_s1 + $0x288] sm:$0xff] }
  0x47   : > { %952 = vmatpush.msrb.mxu1 %v3819_v41  ;;  %v544_v41 = vld [vmem:[%s7801_s1 + $0x120] sm:$0xff] }
  0x48   : > { %1029 = vmatpush.msrb.mxu0 %v3840_v43  ;;  %1076 = vmatpush.msrb.mxu2 %v3880_v7  ;;  %v600_v43 = vld [vmem:[%s7801_s1 + $0x2e0] sm:$0xff] }
  0x49   : > { %799 = vmatmul.f32.gmra.mxu0 %v5017_v35  ;;  %953 = vmatpush.msrb.mxu1 %v3815_v46  ;;  %v592_v46 = vld [vmem:[%s7801_s1 + $0x2a0] sm:$0xff] }
  0x4a   : > { %1030 = vmatpush.msrb.mxu0 %v3836_v50  ;;  %1077 = vmatpush.msrb.mxu2 %v3876_v8  ;;  %v588_v50 = vld [vmem:[%s7801_s1 + $0x280] sm:$0xff] }
  0x4b   : > { %3901 = vmatmul.msk.f32.gmra.mxu1 %vm760_vm1, %v5020_v37  ;;  %881 = vmatmul.f32.gmra.mxu2 %v5017_v35  ;;  %v524_v56 = vld [vmem:[%s7801_s1 + $0x80] sm:$0xff] }
  0x4c   : > { %3909 = vmatmul.msk.f32.gmra.mxu3 %vm760_vm1, %v5020_v37  ;;  %954 = vmatpush.msrb.mxu1 %v3811_v53  ;;  %v528_v53 = vld [vmem:[%s7801_s1 + $0xa0] sm:$0xff] }
  0x4d   : > { %1031 = vmatpush.msrb.mxu0 %v3832_v55  ;;  %1078 = vmatpush.msrb.mxu2 %v3872_v10  ;;  %v584_v55 = vld [vmem:[%s7801_s1 + $0x260] sm:$0xff]  ;;  %v593_v10 = vld [vmem:[%s7801_s1 + $0x2a8] sm:$0xff] }
  0x4e   : > { %955 = vmatpush.msrb.mxu1 %v3807_v61  ;;  %1172 = vmatpush.msra.mxu3 %v600_v43  ;;  %v601_v61 = vld [vmem:[%s7801_s1 + $0x2e8] sm:$0xff]  ;;  %v572_v7 = vld [vmem:[%s7801_s1 + $0x200] sm:$0xff] }
  0x4f   : > { %1032 = vmatpush.msrb.mxu0 %v3828_v62  ;;  %1079 = vmatpush.msrb.mxu2 %v3868_v15  ;;  %v520_v62 = vld [vmem:[%s7801_s1 + $0x60] sm:$0xff]  ;;  %v533_v15 = vld [vmem:[%s7801_s1 + $0xc8] sm:$0xff] }
  0x50   : > { %956 = vmatpush.msrb.mxu1 %v3803_v1  ;;  %v545_v1 = vld [vmem:[%s7801_s1 + $0x128] sm:$0xff]  ;;  %v512_v8 = vld [vmem:[%s7801_s1 + $0x20] sm:$0xff] }
  0x51   : > { %802 = vmatmul.f32.gmra.mxu0 %v5070_v57  ;;  %1254 = vmatpush.msra.mxu2 %v601_v61  ;;  %v534_v61 = vld [vmem:[%s7801_s1 + $0xd0] sm:$0xff] }
  0x52   : > { %1033 = vmatpush.msrb.mxu0 %v3824_v2  ;;  %1123 = vmatpush.msra.mxu1 %v568_v29  ;;  %v516_v2 = vld [vmem:[%s7801_s1 + $0x40] sm:$0xff]  ;;  %v517_v29 = vld [vmem:[%s7801_s1 + $0x48] sm:$0xff] }
  0x53   : > { %3902 = vmatmul.msk.f32.gmra.mxu1 %vm760_vm1, %v5073_v58  ;;  %884 = vmatmul.f32.gmra.mxu2 %v5070_v57 }
  0x54   : > { %3910 = vmatmul.msk.f32.gmra.mxu3 %vm760_vm1, %v5073_v58  ;;  %1034 = vmatpush.msrb.mxu0 %v3820_v9  ;;  %v537_v9 = vld [vmem:[%s7801_s1 + $0xe8] sm:$0xff] }
  0x55   : > { %1124 = vmatpush.msra.mxu1 %v564_v30  ;;  %v573_v30 = vld [vmem:[%s7801_s1 + $0x208] sm:$0xff] }
  0x56   : > { %1035 = vmatpush.msrb.mxu0 %v3816_v14  ;;  %v508_v14 = vld [vmem:[%s7801_s1] sm:$0xff] }
  0x57   : > { %1125 = vmatpush.msra.mxu1 %v560_v31 }
  0x58   : > { %1036 = vmatpush.msrb.mxu0 %v3812_v17  ;;  %v529_v17 = vld [vmem:[%s7801_s1 + $0xa8] sm:$0xff] }
  0x59   : > { %805 = vmatmul.f32.gmra.mxu0 %v5113_v11  ;;  %1126 = vmatpush.msra.mxu1 %v556_v32  ;;  %v5353_v32 = vld [vmem:[%s4786_s21] sm:$0xff] }
  0x5a   : > { %1037 = vmatpush.msrb.mxu0 %v3808_v22  ;;  %v525_v22 = vld [vmem:[%s7801_s1 + $0x88] sm:$0xff] }
  0x5b   : > { %3903 = vmatmul.msk.f32.gmra.mxu1 %vm760_vm1, %v5117_v12  ;;  %887 = vmatmul.f32.gmra.mxu2 %v5113_v11 }
  0x5c   : > { %3911 = vmatmul.msk.f32.gmra.mxu3 %vm760_vm1, %v5117_v12  ;;  %1038 = vmatpush.msrb.mxu0 %v3804_v25  ;;  %v577_v25 = vld [vmem:[%s7801_s1 + $0x228] sm:$0xff] }
  0x5d   : > { %1127 = vmatpush.msra.mxu1 %v552_v33  ;;  %v5356_v33 = vld [vmem:[%s4786_s21 + $0x8] sm:$0xff] }
  0x5e   : > { %1205 = vmatpush.msra.mxu0 %v569_v44  ;;  %v550_v44 = vld [vmem:[%s7801_s1 + $0x150] sm:$0xff] }
  0x5f   : > { %1128 = vmatpush.msra.mxu1 %v548_v34  ;;  %v566_v34 = vld [vmem:[%s7801_s1 + $0x1d0] sm:$0xff] }
  0x61   : > { %808 = vmatmul.f32.gmra.mxu0 %v5142_v23  ;;  %1129 = vmatpush.msra.mxu1 %v544_v41  ;;  %v558_v41 = vld [vmem:[%s7801_s1 + $0x190] sm:$0xff] }
  0x63   : > { %3904 = vmatmul.msk.f32.gmra.mxu1 %vm760_vm1, %v5092_v0  ;;  %890 = vmatmul.f32.gmra.mxu2 %v5142_v23 }
  0x64   : > { %3912 = vmatmul.msk.f32.gmra.mxu3 %vm760_vm1, %v5092_v0  ;;  %1130 = vmatpush.msra.mxu1 %v540_v42  ;;  %v554_v42 = vld [vmem:[%s7801_s1 + $0x170] sm:$0xff] }
  0x66   : > { %1131 = vmatpush.msra.mxu1 %v536_v45  ;;  %v602_v45 = vld [vmem:[%s7801_s1 + $0x2f0] sm:$0xff] }
  0x68   : > { %1132 = vmatpush.msra.mxu1 %v532_v48  ;;  %v598_v48 = vld [vmem:[%s7801_s1 + $0x2d0] sm:$0xff] }
  0x69   : > { %811 = vmatmul.f32.gmra.mxu0 %v5158_v28 }
  0x6a   : > { %1133 = vmatpush.msra.mxu1 %v528_v53 }
  0x6b   : > { %957 = vmatmul.f32.vlgmr.msrb.gmra.mxu1 %v4920_v3  ;;  %893 = vmatmul.f32.gmra.mxu2 %v5158_v28 }
  0x6c   : > { %3913 = vmatmul.msk.f32.vlgmr.msrb.gmra.mxu3 %vm760_vm1, %v4830_v36  ;;  %1134 = vmatpush.msra.mxu1 %v524_v56 }
  0x6e   : > { %1135 = vmatpush.msra.mxu1 %v520_v62  ;;  %v590_v62 = vld [vmem:[%s7801_s1 + $0x290] sm:$0xff] }
  0x70   : > { %1136 = vmatpush.msra.mxu1 %v516_v2  ;;  %v586_v2 = vld [vmem:[%s7801_s1 + $0x270] sm:$0xff] }
  0x71   : > { %814 = vmatmul.f32.gmra.mxu0 %v5154_v27 }
  0x72   : > { %1137 = vmatpush.msra.mxu1 %v512_v8 }
  0x73   : > { %960 = vmatmul.f32.gmra.mxu1 %v4967_v18  ;;  %896 = vmatmul.f32.gmra.mxu2 %v5154_v27 }
  0x74   : > { %3914 = vmatmul.msk.f32.gmra.mxu3 %vm760_vm1, %v4871_v49  ;;  %1138 = vmatpush.msra.mxu1 %v508_v14 }
  0x79   : > { %1039 = vmatmul.f32.vlgmr.msrb.gmra.mxu0 %v4920_v3  ;;  %v596_v3 = vld [vmem:[%s7801_s1 + $0x2c0] sm:$0xff] }
  0x7a   : > { %1173 = vmatpush.msra.mxu3 %v596_v3 }
  0x7b   : > { %963 = vmatmul.f32.gmra.mxu1 %v5017_v35  ;;  %3921 = vmatmul.msk.f32.vlgmr.msrb.gmra.mxu2 %vm760_vm1, %v4830_v36  ;;  %v565_v36 = vld [vmem:[%s7801_s1 + $0x1c8] sm:$0xff] }
  0x7c   : > { %3915 = vmatmul.msk.f32.gmra.mxu3 %vm760_vm1, %v4923_v4  ;;  %1206 = vmatpush.msra.mxu0 %v565_v36  ;;  %v542_v36 = vld [vmem:[%s7801_s1 + $0x110] sm:$0xff] }
  0x7d   : > { %1174 = vmatpush.msra.mxu3 %v592_v46  ;;  %v571_v46 = vld [vmem:[%s7801_s1 + $0x1f8] sm:$0xff] }
  0x7e   : > { %1207 = vmatpush.msra.mxu0 %v561_v47  ;;  %v538_v47 = vld [vmem:[%s7801_s1 + $0xf0] sm:$0xff] }
  0x7f   : > { %1175 = vmatpush.msra.mxu3 %v588_v50  ;;  %v567_v50 = vld [vmem:[%s7801_s1 + $0x1d8] sm:$0xff] }
  0x80   : > { %1208 = vmatpush.msra.mxu0 %v557_v51 }
  0x81   : > { %1042 = vmatmul.f32.gmra.mxu0 %v4967_v18  ;;  %v553_v18 = vld [vmem:[%s7801_s1 + $0x168] sm:$0xff]  ;;  %1176 = vmatpush.msra.mxu3 %v584_v55 }
  0x82   : > { %1209 = vmatpush.msra.mxu0 %v553_v18 }
  0x83   : > { %966 = vmatmul.f32.gmra.mxu1 %v5070_v57  ;;  %3922 = vmatmul.msk.f32.gmra.mxu2 %vm760_vm1, %v4871_v49  ;;  %v580_v49 = vld [vmem:[%s7801_s1 + $0x240] sm:$0xff] }
  0x84   : > { %3916 = vmatmul.msk.f32.gmra.mxu3 %vm760_vm1, %v4970_v19  ;;  %1210 = vmatpush.msra.mxu0 %v549_v60  ;;  %v563_v60 = vld [vmem:[%s7801_s1 + $0x1b8] sm:$0xff] }
  0x85   : > { %1177 = vmatpush.msra.mxu3 %v580_v49  ;;  %v594_v49 = vld [vmem:[%s7801_s1 + $0x2b0] sm:$0xff] }
  0x86   : > { %1211 = vmatpush.msra.mxu0 %v545_v1  ;;  %v530_v1 = vld [vmem:[%s7801_s1 + $0xb0] sm:$0xff] }
  0x87   : > { %1178 = vmatpush.msra.mxu3 %v576_v63  ;;  %v559_v63 = vld [vmem:[%s7801_s1 + $0x198] sm:$0xff] }
  0x89   : > { %1045 = vmatmul.f32.gmra.mxu0 %v5017_v35  ;;  %v541_v35 = vld [vmem:[%s7801_s1 + $0x108] sm:$0xff]  ;;  %1179 = vmatpush.msra.mxu3 %v572_v7  ;;  %v555_v7 = vld [vmem:[%s7801_s1 + $0x178] sm:$0xff] }
  0x8a   : > { %1212 = vmatpush.msra.mxu0 %v541_v35  ;;  %v526_v35 = vld [vmem:[%s7801_s1 + $0x90] sm:$0xff] }
  0x8b   : > { %969 = vmatmul.f32.gmra.mxu1 %v5113_v11  ;;  %3923 = vmatmul.msk.f32.gmra.mxu2 %vm760_vm1, %v4923_v4  ;;  %v597_v4 = vld [vmem:[%s7801_s1 + $0x2c8] sm:$0xff] }
  0x8c   : > { %3917 = vmatmul.msk.f32.gmra.mxu3 %vm760_vm1, %v5020_v37  ;;  %1255 = vmatpush.msra.mxu2 %v597_v4 }
  0x8d   : > { %1213 = vmatpush.msra.mxu0 %v537_v9  ;;  %1336 = vmatpush.msrb.mxu3 %v602_v45  ;;  %v551_v9 = vld [vmem:[%s7801_s1 + $0x158] sm:$0xff] }
  0x8e   : > { %1256 = vmatpush.msra.mxu2 %v593_v10 }
  0x8f   : > { %1214 = vmatpush.msra.mxu0 %v533_v15  ;;  %1337 = vmatpush.msrb.mxu3 %v598_v48 }
  0x90   : > { %1257 = vmatpush.msra.mxu2 %v589_v16  ;;  %v603_v16 = vld [vmem:[%s7801_s1 + $0x2f8] sm:$0xff] }
  0x91   : > { %1048 = vmatmul.f32.gmra.mxu0 %v5070_v57  ;;  %v585_v57 = vld [vmem:[%s7801_s1 + $0x268] sm:$0xff]  ;;  %1338 = vmatpush.msrb.mxu3 %v594_v49  ;;  %v519_v49 = vld [vmem:[%s7801_s1 + $0x58] sm:$0xff] }
  0x92   : > { %1215 = vmatpush.msra.mxu0 %v529_v17  ;;  %1258 = vmatpush.msra.mxu2 %v585_v57  ;;  %v522_v17 = vld [vmem:[%s7801_s1 + $0x70] sm:$0xff] }
  0x93   : > { %972 = vmatmul.f32.gmra.mxu1 %v5142_v23  ;;  %3924 = vmatmul.msk.f32.gmra.mxu2 %vm760_vm1, %v4970_v19  ;;  %v581_v19 = vld [vmem:[%s7801_s1 + $0x248] sm:$0xff]  ;;  %v578_v57 = vld [vmem:[%s7801_s1 + $0x230] sm:$0xff] }
  0x94   : > { %3918 = vmatmul.msk.f32.gmra.mxu3 %vm760_vm1, %v5073_v58  ;;  %1216 = vmatpush.msra.mxu0 %v525_v22  ;;  %v547_v22 = vld [vmem:[%s7801_s1 + $0x138] sm:$0xff] }
  0x95   : > { %1259 = vmatpush.msra.mxu2 %v581_v19  ;;  %1339 = vmatpush.msrb.mxu3 %v590_v62  ;;  %v518_v19 = vld [vmem:[%s7801_s1 + $0x50] sm:$0xff] }
  0x96   : > { %1217 = vmatpush.msra.mxu0 %v521_v24  ;;  %v574_v24 = vld [vmem:[%s7801_s1 + $0x210] sm:$0xff] }
  0x97   : > { %1260 = vmatpush.msra.mxu2 %v577_v25  ;;  %1340 = vmatpush.msrb.mxu3 %v586_v2  ;;  %v543_v25 = vld [vmem:[%s7801_s1 + $0x118] sm:$0xff] }
  0x98   : > { %1218 = vmatpush.msra.mxu0 %v517_v29  ;;  %v514_v29 = vld [vmem:[%s7801_s1 + $0x30] sm:$0xff] }
  0x99   : > { %1051 = vmatmul.f32.gmra.mxu0 %v5113_v11  ;;  %v513_v11 = vld [vmem:[%s7801_s1 + $0x28] sm:$0xff]  ;;  %1261 = vmatpush.msra.mxu2 %v573_v30 }
  0x9a   : > { %1219 = vmatpush.msra.mxu0 %v513_v11 }
  0x9b   : > { %975 = vmatmul.f32.gmra.mxu1 %v5158_v28  ;;  %3925 = vmatmul.msk.f32.gmra.mxu2 %vm760_vm1, %v5020_v37  ;;  %v509_v37 = vld [vmem:[%s7801_s1 + $0x8] sm:$0xff] }
  0x9c   : > { %3919 = vmatmul.msk.f32.gmra.mxu3 %vm760_vm1, %v5117_v12  ;;  %1220 = vmatpush.msra.mxu0 %v509_v37  ;;  %v539_v37 = vld [vmem:[%s7801_s1 + $0xf8] sm:$0xff] }
  0x9d   : > { %1418 = vmatpush.msrb.mxu2 %v603_v16 }
  0x9e   : > { %1369 = vmatpush.msrb.mxu0 %v571_v46 }
  0xa0   : > { %1370 = vmatpush.msrb.mxu0 %v567_v50 }
  0xa1   : > { %1054 = vmatmul.f32.gmra.mxu0 %v5142_v23 }
  0xa2   : > { %1371 = vmatpush.msrb.mxu0 %v563_v60  ;;  %v575_v60 = vld [vmem:[%s7801_s1 + $0x218] sm:$0xff] }
  0xa3   : > { %978 = vmatmul.f32.gmra.mxu1 %v5154_v27  ;;  %3926 = vmatmul.msk.f32.gmra.mxu2 %vm760_vm1, %v5073_v58  ;;  %v570_v58 = vld [vmem:[%s7801_s1 + $0x1f0] sm:$0xff] }
  0xa4   : > { %3920 = vmatmul.msk.f32.gmra.mxu3 %vm760_vm1, %v5092_v0  ;;  %1287 = vmatpush.msrb.mxu1 %v570_v58 }
  0xa5   : > { %1372 = vmatpush.msrb.mxu0 %v559_v63 }
  0xa6   : > { %1288 = vmatpush.msrb.mxu1 %v566_v34 }
  0xa7   : > { %1373 = vmatpush.msrb.mxu0 %v555_v7  ;;  %v5578_v7 = vld [vmem:[%s4786_s21 + $0x70] sm:$0x3f] }
  0xa8   : > { %v5350_v31 = vpop.f32.mrf.mxu1 }
  0xa9   : > { %1057 = vmatmul.f32.gmra.mxu0 %v5158_v28 }
  0xaa   : > { %1374 = vmatpush.msrb.mxu0 %v551_v9 }
  0xab   : > { %1139 = vmatmul.f32.vlgmr.msra.gmra.mxu1 %v5353_v32  ;;  %3927 = vmatmul.msk.f32.gmra.mxu2 %vm760_vm1, %v5117_v12  ;;  %v562_v12 = vld [vmem:[%s7801_s1 + $0x1b0] sm:$0xff] }
  0xac   : > { %3929 = vmatmul.msk.f32.vlgmr.msra.gmra.mxu3 %vm760_vm1, %v5356_v33  ;;  %1289 = vmatpush.msrb.mxu1 %v562_v12  ;;  %v595_v12 = vld [vmem:[%s7801_s1 + $0x2b8] sm:$0xff] }
  0xad   : > { %1375 = vmatpush.msrb.mxu0 %v547_v22 }
  0xae   : > { %v917_v23 = vpop.f32.mrf.mxu3  ;;  %1290 = vmatpush.msrb.mxu1 %v558_v41  ;;  %v510_v41 = vld [vmem:[%s7801_s1 + $0x10] sm:$0xff] }
  0xaf   : > { %1376 = vmatpush.msrb.mxu0 %v543_v25 }
  0xb0   : > { %v5370_v28 = vpop.f32.mrf.mxu1  ;;  %1291 = vmatpush.msrb.mxu1 %v554_v42  ;;  %v535_v42 = vld [vmem:[%s7801_s1 + $0xd8] sm:$0xff] }
  0xb1   : > { %1060 = vmatmul.f32.gmra.mxu0 %v5154_v27 }
  0xb2   : > { %1292 = vmatpush.msrb.mxu1 %v550_v44  ;;  %1377 = vmatpush.msrb.mxu0 %v539_v37  ;;  %v531_v44 = vld [vmem:[%s7801_s1 + $0xb8] sm:$0xff] }
  0xb3   : > { %1142 = vmatmul.f32.gmra.mxu1 %v4880_v52  ;;  %3928 = vmatmul.msk.f32.gmra.mxu2 %vm760_vm1, %v5092_v0  ;;  %v546_v0 = vld [vmem:[%s7801_s1 + $0x130] sm:$0xff] }
  0xb4   : > { %3930 = vmatmul.msk.f32.gmra.mxu3 %vm760_vm1, %v4807_v26  ;;  %1293 = vmatpush.msrb.mxu1 %v546_v0  ;;  %v587_v0 = vld [vmem:[%s7801_s1 + $0x278] sm:$0xff] }
  0xb5   : > { %1378 = vmatpush.msrb.mxu0 %v535_v42 }
  0xb6   : > { %v920_v43 = vpop.f32.mrf.mxu3  ;;  %v5390_v27 = vpop.f32.mrf.mxu0  ;;  %1294 = vmatpush.msrb.mxu1 %v542_v36  ;;  %v527_v36 = vld [vmem:[%s7801_s1 + $0x98] sm:$0xff] }
  0xb7   : > { %1379 = vmatpush.msrb.mxu0 %v531_v44  ;;  %v4005_v44 = vld [vmem:[%s7801_s1 + $0x760] sm:$0xff] }
  0xb8   : > { %v5392_v3 = vpop.f32.mrf.mxu1  ;;  %1295 = vmatpush.msrb.mxu1 %v538_v47 }
  0xb9   : > { %1221 = vmatmul.f32.vlgmr.msra.gmra.mxu0 %v5353_v32 }
  0xba   : > { %1296 = vmatpush.msrb.mxu1 %v534_v61  ;;  %1380 = vmatpush.msrb.mxu0 %v527_v36  ;;  %v515_v61 = vld [vmem:[%s7801_s1 + $0x38] sm:$0xff]  ;;  %v4001_v36 = vld [vmem:[%s7801_s1 + $0x740] sm:$0xff] }
  0xbb   : > { %1145 = vmatmul.f32.gmra.mxu1 %v4926_v5  ;;  %3937 = vmatmul.msk.f32.vlgmr.msra.gmra.mxu2 %vm760_vm1, %v5356_v33 }
  0xbc   : > { %3931 = vmatmul.msk.f32.gmra.mxu3 %vm760_vm1, %v4839_v39  ;;  %1297 = vmatpush.msrb.mxu1 %v530_v1 }
  0xbe   : > { %v876_v51 = vpop.f32.mrf.mxu2  ;;  %v5423_v18 = vpop.f32.mrf.mxu0  ;;  %1298 = vmatpush.msrb.mxu1 %v526_v35  ;;  %v5581_v35 = vld [vmem:[%s4786_s21 + $0x78] sm:$0x3f] }
  0xbf   : > { %v923_v53 = vpop.f32.mrf.mxu3  ;;  %v5421_v55 = vadd.f32 %v917_v23, %v876_v51  ;;  %v523_v51 = vld [vmem:[%s7801_s1 + $0x78] sm:$0xff] }
  0xc0   : > { %v5425_v56 = vpop.f32.mrf.mxu1  ;;  %1299 = vmatpush.msrb.mxu1 %v522_v17  ;;  %1381 = vmatpush.msrb.mxu0 %v523_v51 }
  0xc1   : > { %1224 = vmatmul.f32.gmra.mxu0 %v4880_v52 }
  0xc2   : > { %1300 = vmatpush.msrb.mxu1 %v518_v19  ;;  %1382 = vmatpush.msrb.mxu0 %v519_v49 }
  0xc3   : > { %1148 = vmatmul.f32.gmra.mxu1 %v4973_v20  ;;  %3938 = vmatmul.msk.f32.gmra.mxu2 %vm760_vm1, %v4807_v26  ;;  %v582_v26 = vld [vmem:[%s7801_s1 + $0x250] sm:$0xff] }
  0xc4   : > { %3932 = vmatmul.msk.f32.gmra.mxu3 %vm760_vm1, %v4884_v54  ;;  %1301 = vmatpush.msrb.mxu1 %v514_v29  ;;  %v4021_v29 = vld [vmem:[%s7801_s1 + $0x7e0] sm:$0xff] }
  0xc5   : > { %1341 = vmatpush.msrb.mxu3 %v582_v26  ;;  %1383 = vmatpush.msrb.mxu0 %v515_v61  ;;  %v511_v26 = vld [vmem:[%s7801_s1 + $0x18] sm:$0xff]  ;;  %v4022_v61 = vld [vmem:[%s7801_s1 + $0x7e8] sm:$0xff] }
  0xc6   : > { %v879_v8 = vpop.f32.mrf.mxu2  ;;  %v5468_v14 = vpop.f32.mrf.mxu0  ;;  %1302 = vmatpush.msrb.mxu1 %v510_v41 }
  0xc7   : > { %v926_v4 = vpop.f32.mrf.mxu3  ;;  %v5466_v10 = vadd.f32 %v920_v43, %v879_v8  ;;  %1342 = vmatpush.msrb.mxu3 %v578_v57  ;;  %v591_v43 = vld [vmem:[%s7801_s1 + $0x298] sm:$0xff]  ;;  %1384 = vmatpush.msrb.mxu0 %v511_v26  ;;  %v5675_v26 = vld [vmem:[%s4786_s21 + $0x10] sm:$0xff] }
  0xc8   : > { %v5470_v15 = vpop.f32.mrf.mxu1  ;;  %1611 = vmatpush.msra.mxu1 %v4021_v29 }
  0xc9   : > { %1227 = vmatmul.f32.gmra.mxu0 %v4926_v5  ;;  %1343 = vmatpush.msrb.mxu3 %v574_v24 }
  0xca   : > { %1693 = vmatpush.msra.mxu0 %v4022_v61 }
  0xcb   : > { %1151 = vmatmul.f32.gmra.mxu1 %v5023_v38  ;;  %3939 = vmatmul.msk.f32.gmra.mxu2 %vm760_vm1, %v4839_v39  ;;  %v599_v39 = vld [vmem:[%s7801_s1 + $0x2d8] sm:$0xff] }
  0xcc   : > { %3933 = vmatmul.msk.f32.gmra.mxu3 %vm760_vm1, %v4929_v6  ;;  %1419 = vmatpush.msrb.mxu2 %v599_v39  ;;  %v4017_v39 = vld [vmem:[%s7801_s1 + $0x7c0] sm:$0xff] }
  0xcd   : > { %1612 = vmatpush.msra.mxu1 %v4017_v39 }
  0xce   : > { %v882_v30 = vpop.f32.mrf.mxu2  ;;  %v5510_v23 = vpop.f32.mrf.mxu0  ;;  %1420 = vmatpush.msrb.mxu2 %v595_v12 }
  0xcf   : > { %v929_v11 = vpop.f32.mrf.mxu3  ;;  %v5508_v58 = vadd.f32 %v923_v53, %v882_v30  ;;  %v579_v53 = vld [vmem:[%s7801_s1 + $0x238] sm:$0xff]  ;;  %v4013_v30 = vld [vmem:[%s7801_s1 + $0x7a0] sm:$0xff] }
  0xd0   : > { %v5512_v34 = vpop.f32.mrf.mxu1  ;;  %1421 = vmatpush.msrb.mxu2 %v591_v43  ;;  %1613 = vmatpush.msra.mxu1 %v4013_v30  ;;  %v4009_v43 = vld [vmem:[%s7801_s1 + $0x780] sm:$0xff] }
  0xd1   : > { %1230 = vmatmul.f32.gmra.mxu0 %v4973_v20 }
  0xd2   : > { %1422 = vmatpush.msrb.mxu2 %v587_v0  ;;  %1614 = vmatpush.msra.mxu1 %v4009_v43  ;;  %v5639_v0 = vld [vmem:[%s4786_s21 + $0x28] sm:$0xff] }
  0xd3   : > { %1154 = vmatmul.f32.gmra.mxu1 %v5076_v59  ;;  %3940 = vmatmul.msk.f32.gmra.mxu2 %vm760_vm1, %v4884_v54  ;;  %v583_v54 = vld [vmem:[%s7801_s1 + $0x258] sm:$0xff]  ;;  %v4054_v43 = vld [vmem:[%s7801_s1 + $0x8e8] sm:$0xff] }
  0xd4   : > { %3934 = vmatmul.msk.f32.gmra.mxu3 %vm760_vm1, %v4976_v21  ;;  %1423 = vmatpush.msrb.mxu2 %v583_v54 }
  0xd5   : > { %1615 = vmatpush.msra.mxu1 %v4005_v44  ;;  %v3981_v44 = vld [vmem:[%s7801_s1 + $0x6a0] sm:$0xff] }
  0xd6   : > { %v885_v45 = vpop.f32.mrf.mxu2  ;;  %v5546_v48 = vpop.f32.mrf.mxu0  ;;  %1424 = vmatpush.msrb.mxu2 %v579_v53 }
  0xd7   : > { %v932_v46 = vpop.f32.mrf.mxu3  ;;  %v5544_v47 = vadd.f32 %v926_v4, %v885_v45  ;;  %v4053_v45 = vld [vmem:[%s7801_s1 + $0x8e0] sm:$0xff]  ;;  %1616 = vmatpush.msra.mxu1 %v4001_v36 }
  0xd8   : > { %v5548_v50 = vpop.f32.mrf.mxu1  ;;  %1425 = vmatpush.msrb.mxu2 %v575_v60  ;;  %1660 = vmatpush.msra.mxu3 %v4053_v45  ;;  %v4045_v60 = vld [vmem:[%s7801_s1 + $0x8a0] sm:$0xff] }
  0xd9   : > { %1233 = vmatmul.f32.gmra.mxu0 %v5023_v38  ;;  %v4029_v36 = vld [vmem:[%s7801_s1 + $0x820] sm:$0xff] }
  0xda   : > { %1742 = vmatpush.msra.mxu2 %v4054_v43  ;;  %v5721_v45 = vld [vmem:[%s4786_s21 + $0x20] sm:$0xff] }
  0xdb   : > { %1157 = vmatmul.f32.gmra.mxu1 %v5120_v13  ;;  %3941 = vmatmul.msk.f32.gmra.mxu2 %vm760_vm1, %v4929_v6  ;;  %v3961_v43 = vld [vmem:[%s7801_s1 + $0x600] sm:$0xff] }
  0xdc   : > { %3935 = vmatmul.msk.f32.gmra.mxu3 %vm760_vm1, %v5026_v40 }
  0xde   : > { %v888_v62 = vpop.f32.mrf.mxu2  ;;  %v5573_v6 = vpop.f32.mrf.mxu0 }
  0xdf   : > { %v935_v63 = vpop.f32.mrf.mxu3  ;;  %v5571_v1 = vadd.f32 %v929_v11, %v888_v62  ;;  %v3993_v62 = vld [vmem:[%s7801_s1 + $0x700] sm:$0xff] }
  0xe0   : > { %v5575_v2 = vpop.f32.mrf.mxu1 }
  0xe1   : > { %1236 = vmatmul.f32.gmra.mxu0 %v5076_v59 }
  0xe3   : > { %1160 = vmatmul.f32.gmra.mxu1 %v5578_v7  ;;  %3942 = vmatmul.msk.f32.gmra.mxu2 %vm760_vm1, %v4976_v21 }
  0xe4   : > { %3936 = vmatmul.msk.f32.gmra.mxu3 %vm760_vm1, %v5581_v35 }
  0xe6   : > { %v891_v8 = vpop.f32.mrf.mxu2  ;;  %v5594_v16 = vpop.f32.mrf.mxu0 }
  0xe7   : > { %v938_v4 = vpop.f32.mrf.mxu3  ;;  %v5592_v9 = vadd.f32 %v932_v46, %v891_v8  ;;  %v5679_v8 = vld [vmem:[%s4786_s21 + $0x38] sm:$0xff] }
  0xe8   : > { %v958_v17 = vpop.f32.mrf.mxu1 }
  0xe9   : > { %1239 = vmatmul.f32.gmra.mxu0 %v5120_v13 }
  0xeb   : > { %1303 = vmatmul.f32.vlgmr.msrb.gmra.mxu1 %v5353_v32  ;;  %3943 = vmatmul.msk.f32.gmra.mxu2 %vm760_vm1, %v5026_v40  ;;  %v5616_v40 = vld [vmem:[%s4786_s21 + $0x18] sm:$0xff] }
  0xec   : > { %3945 = vmatmul.msk.f32.vlgmr.msrb.gmra.mxu3 %vm760_vm1, %v5356_v33 }
  0xee   : > { %v894_v21 = vpop.f32.mrf.mxu2  ;;  %v5606_v24 = vpop.f32.mrf.mxu0 }
  0xef   : > { %v999_v57 = vpop.f32.mrf.mxu3  ;;  %v5602_v22 = vadd.f32 %v935_v63, %v894_v21  ;;  %v4041_v63 = vld [vmem:[%s7801_s1 + $0x880] sm:$0xff] }
  0xf0   : > { %v5604_v19 = vadd.f32 %v999_v57, %v958_v17  ;;  %v961_v25 = vpop.f32.mrf.mxu1  ;;  %v4018_v17 = vld [vmem:[%s7801_s1 + $0x7c8] sm:$0xff]  ;;  %v3985_v21 = vld [vmem:[%s7801_s1 + $0x6c0] sm:$0xff] }
  0xf1   : > { %1242 = vmatmul.f32.gmra.mxu0 %v5578_v7  ;;  %v4033_v57 = vld [vmem:[%s7801_s1 + $0x840] sm:$0xff] }
  0xf2   : > { %1694 = vmatpush.msra.mxu0 %v4018_v17 }
  0xf3   : > { %1306 = vmatmul.f32.gmra.mxu1 %v4880_v52  ;;  %3944 = vmatmul.msk.f32.gmra.mxu2 %vm760_vm1, %v5581_v35 }
  0xf4   : > { %3946 = vmatmul.msk.f32.gmra.mxu3 %vm760_vm1, %v5616_v40 }
  0xf6   : > { %v897_v11 = vpop.f32.mrf.mxu2  ;;  %v1040_v42 = vpop.f32.mrf.mxu0 }
  0xf7   : > { %v1002_v52 = vpop.f32.mrf.mxu3  ;;  %v5626_v37 = vadd.f32 %v938_v4, %v897_v11  ;;  %v3989_v4 = vld [vmem:[%s7801_s1 + $0x6e0] sm:$0xff] }
  0xf8   : > { %v5628_v12 = vadd.f32 %v1002_v52, %v961_v25  ;;  %v964_v41 = vpop.f32.mrf.mxu1  ;;  %v4014_v25 = vld [vmem:[%s7801_s1 + $0x7a8] sm:$0xff] }
  0xf9   : > { %1385 = vmatmul.f32.vlgmr.msrb.gmra.mxu0 %v5353_v32  ;;  %v4049_v32 = vld [vmem:[%s7801_s1 + $0x8c0] sm:$0xff] }
  0xfa   : > { %1661 = vmatpush.msra.mxu3 %v4049_v32  ;;  %1695 = vmatpush.msra.mxu0 %v4014_v25  ;;  %v5728_v32 = vld [vmem:[%s4786_s21 + $0x48] sm:$0xff] }
  0xfb   : > { %1309 = vmatmul.f32.gmra.mxu1 %v4926_v5  ;;  %3953 = vmatmul.msk.f32.vlgmr.msrb.gmra.mxu2 %vm760_vm1, %v5356_v33  ;;  %v3997_v5 = vld [vmem:[%s7801_s1 + $0x720] sm:$0xff]  ;;  %v3994_v25 = vld [vmem:[%s7801_s1 + $0x708] sm:$0xff] }
  0xfc   : > { %3947 = vmatmul.msk.f32.gmra.mxu3 %vm760_vm1, %v5639_v0  ;;  %1617 = vmatpush.msra.mxu1 %v3997_v5  ;;  %v4006_v5 = vld [vmem:[%s7801_s1 + $0x768] sm:$0xff] }
  0xfd   : > { %1662 = vmatpush.msra.mxu3 %v4045_v60 }
  0xfe   : > { %v1081_v33 = vpop.f32.mrf.mxu2  ;;  %v1043_v49 = vpop.f32.mrf.mxu0  ;;  %1618 = vmatpush.msra.mxu1 %v3993_v62  ;;  %v3998_v62 = vld [vmem:[%s7801_s1 + $0x728] sm:$0xff] }
  0xff   : > { %v1005_v46 = vpop.f32.mrf.mxu3  ;;  %v5659_v51 = vadd.f32 %v1081_v33, %v1040_v42  ;;  %1663 = vmatpush.msra.mxu3 %v4041_v63  ;;  %v4010_v42 = vld [vmem:[%s7801_s1 + $0x788] sm:$0xff] }
 0x100   : > { %v5657_v54 = vadd.f32 %v1005_v46, %v964_v41  ;;  %v967_v53 = vpop.f32.mrf.mxu1  ;;  %1619 = vmatpush.msra.mxu1 %v3989_v4  ;;  %1696 = vmatpush.msra.mxu0 %v4010_v42  ;;  %v4025_v46 = vld [vmem:[%s7801_s1 + $0x800] sm:$0xff]  ;;  %v4002_v33 = vld [vmem:[%s7801_s1 + $0x748] sm:$0xff] }
 0x101   : > { %1388 = vmatmul.f32.gmra.mxu0 %v5675_v26  ;;  %v4038_v42 = vld [vmem:[%s7801_s1 + $0x868] sm:$0xff] }
 0x102   : > { %1620 = vmatpush.msra.mxu1 %v3985_v21  ;;  %1697 = vmatpush.msra.mxu0 %v4006_v5  ;;  %v4046_v21 = vld [vmem:[%s7801_s1 + $0x8a8] sm:$0xff] }
 0x103   : > { %1312 = vmatmul.f32.gmra.mxu1 %v4973_v20  ;;  %3954 = vmatmul.msk.f32.gmra.mxu2 %vm760_vm1, %v5616_v40  ;;  %v4037_v20 = vld [vmem:[%s7801_s1 + $0x860] sm:$0xff] }
 0x104   : > { %3948 = vmatmul.msk.f32.gmra.mxu3 %vm760_vm1, %v5679_v8  ;;  %1621 = vmatpush.msra.mxu1 %v3981_v44  ;;  %v3986_v44 = vld [vmem:[%s7801_s1 + $0x6c8] sm:$0xff] }
 0x105   : > { %1664 = vmatpush.msra.mxu3 %v4037_v20  ;;  %1698 = vmatpush.msra.mxu0 %v4002_v33 }
 0x106   : > { %v1084_v39 = vpop.f32.mrf.mxu2  ;;  %v1046_v41 = vpop.f32.mrf.mxu0 }
 0x107   : > { %v1008_v29 = vpop.f32.mrf.mxu3  ;;  %v5705_v11 = vadd.f32 %v1084_v39, %v1043_v49  ;;  %1665 = vmatpush.msra.mxu3 %v4033_v57  ;;  %v4050_v49 = vld [vmem:[%s7801_s1 + $0x8c8] sm:$0xff]  ;;  %v3969_v57 = vld [vmem:[%s7801_s1 + $0x640] sm:$0xff]  ;;  %1699 = vmatpush.msra.mxu0 %v3998_v62 }
 0x108   : > { %v5703_v30 = vadd.f32 %v1008_v29, %v967_v53  ;;  %v970_v52 = vpop.f32.mrf.mxu1  ;;  %v3973_v53 = vld [vmem:[%s7801_s1 + $0x660] sm:$0xff]  ;;  %1743 = vmatpush.msra.mxu2 %v4050_v49  ;;  %v5767_v29 = vld [vmem:[%s4786_s21 + $0x30] sm:$0xff]  ;;  %v4042_v39 = vld [vmem:[%s7801_s1 + $0x888] sm:$0xff] }
 0x109   : > { %1391 = vmatmul.f32.gmra.mxu0 %v5721_v45  ;;  %1666 = vmatpush.msra.mxu3 %v4029_v36  ;;  %v5810_v62 = vld [vmem:[%s4786_s21 + $0x40] sm:$0xff] }
 0x10a   : > { %1744 = vmatpush.msra.mxu2 %v4046_v21  ;;  %1700 = vmatpush.msra.mxu0 %v3994_v25  ;;  %v4026_v21 = vld [vmem:[%s7801_s1 + $0x808] sm:$0xff] }
 0x10b   : > { %1315 = vmatmul.f32.gmra.mxu1 %v5023_v38  ;;  %3955 = vmatmul.msk.f32.gmra.mxu2 %vm760_vm1, %v5639_v0  ;;  %v3977_v38 = vld [vmem:[%s7801_s1 + $0x680] sm:$0xff] }
 0x10c   : > { %3949 = vmatmul.msk.f32.gmra.mxu3 %vm760_vm1, %v5728_v32  ;;  %1622 = vmatpush.msra.mxu1 %v3977_v38  ;;  %v4034_v38 = vld [vmem:[%s7801_s1 + $0x848] sm:$0xff] }
 0x10d   : > { %1667 = vmatpush.msra.mxu3 %v4025_v46  ;;  %1745 = vmatpush.msra.mxu2 %v4042_v39 }
 0x10e   : > { %v1087_v61 = vpop.f32.mrf.mxu2  ;;  %v1049_v17 = vpop.f32.mrf.mxu0  ;;  %1623 = vmatpush.msra.mxu1 %v3973_v53 }
 0x10f   : > { %v1011_v60 = vpop.f32.mrf.mxu3  ;;  %v5754_v4 = vadd.f32 %v1087_v61, %v1046_v41  ;;  %v3990_v41 = vld [vmem:[%s7801_s1 + $0x6e8] sm:$0xff]  ;;  %1746 = vmatpush.msra.mxu2 %v4038_v42 }
 0x110   : > { %v5752_v63 = vadd.f32 %v1011_v60, %v970_v52  ;;  %v973_v20 = vpop.f32.mrf.mxu1  ;;  %v5774_v52 = vld [vmem:[%s4786_s21 + $0x58] sm:$0xff]  ;;  %1624 = vmatpush.msra.mxu1 %v3969_v57  ;;  %1701 = vmatpush.msra.mxu0 %v3990_v41  ;;  %v3982_v60 = vld [vmem:[%s7801_s1 + $0x6a8] sm:$0xff] }
 0x111   : > { %1394 = vmatmul.f32.gmra.mxu0 %v5767_v29  ;;  %1747 = vmatpush.msra.mxu2 %v4034_v38  ;;  %v4030_v61 = vld [vmem:[%s7801_s1 + $0x828] sm:$0xff]  ;;  %v5840_v38 = vld [vmem:[%s4786_s21 + $0x50] sm:$0xff] }
 0x112   : > { %1702 = vmatpush.msra.mxu0 %v3986_v44  ;;  %v3974_v57 = vld [vmem:[%s7801_s1 + $0x668] sm:$0xff]  ;;  %v1451_v44 = vld [vmem:[%s4786_s21] sm:$0xfc] }
 0x113   : > { %1318 = vmatmul.f32.gmra.mxu1 %v5076_v59  ;;  %3956 = vmatmul.msk.f32.gmra.mxu2 %vm760_vm1, %v5679_v8  ;;  %v3965_v59 = vld [vmem:[%s7801_s1 + $0x620] sm:$0xff] }
 0x114   : > { %3950 = vmatmul.msk.f32.gmra.mxu3 %vm760_vm1, %v5774_v52  ;;  %1625 = vmatpush.msra.mxu1 %v3965_v59 }
 0x115   : > { %1703 = vmatpush.msra.mxu0 %v3982_v60  ;;  %1748 = vmatpush.msra.mxu2 %v4030_v61  ;;  %v3966_v60 = vld [vmem:[%s7801_s1 + $0x628] sm:$0xff] }
 0x116   : > { %v1090_v5 = vpop.f32.mrf.mxu2  ;;  %v1052_v49 = vpop.f32.mrf.mxu0  ;;  %1626 = vmatpush.msra.mxu1 %v3961_v43 }
 0x117   : > { %v1014_v36 = vpop.f32.mrf.mxu3  ;;  %v5800_v33 = vadd.f32 %v1090_v5, %v1049_v17  ;;  %v3978_v17 = vld [vmem:[%s7801_s1 + $0x688] sm:$0xff]  ;;  %1749 = vmatpush.msra.mxu2 %v4026_v21 }
 0x118   : > { %v5798_v46 = vadd.f32 %v1014_v36, %v973_v20  ;;  %v976_v53 = vpop.f32.mrf.mxu1  ;;  %v5814_v20 = vld [vmem:[%s4786_s21 + $0x68] sm:$0xff]  ;;  %1704 = vmatpush.msra.mxu0 %v3978_v17  ;;  %v1561_v17 = vrot.slane %v5616_v40, 2 }
 0x119   : > { %1397 = vmatmul.f32.gmra.mxu0 %v5810_v62  ;;  %v1452_v36 = vld [vmem:[%s4786_s21 + $0x8] sm:$0xfc] }
 0x11a   : > { %7832 = vst [vmem:[#allocation15_spill] sm:$0xff] %v5798_v46  ;;  %1705 = vmatpush.msra.mxu0 %v3974_v57  ;;  %v3970_v5 = vld [vmem:[%s7801_s1 + $0x648] sm:$0xff]  ;;  %v1560_v61 = vrot.slane %v1452_v36, 2  ;;  %v836_v36 = vadd.f32 %v5350_v31, %v5390_v27 }
 0x11b   : > { %1321 = vmatmul.f32.gmra.mxu1 %v5120_v13  ;;  %3957 = vmatmul.msk.f32.gmra.mxu2 %vm760_vm1, %v5728_v32  ;;  %v3962_v21 = vld [vmem:[%s7801_s1 + $0x608] sm:$0xff] }
 0x11c   : > { %3951 = vmatmul.msk.f32.gmra.mxu3 %vm760_vm1, %v5814_v20  ;;  %1706 = vmatpush.msra.mxu0 %v3970_v5  ;;  %v5863_v40 = vsel %vm1556_vm2, %v1560_v61, %v1561_v17 }
 0x11e   : > { %v1093_v39 = vpop.f32.mrf.mxu2  ;;  %v1055_v43 = vpop.f32.mrf.mxu0  ;;  %1707 = vmatpush.msra.mxu0 %v3966_v60 }
 0x11f   : > { %v1017_v25 = vpop.f32.mrf.mxu3  ;;  %v5831_v41 = vadd.f32 %v1093_v39, %v1052_v49  ;;  %v1558_v49 = vrot.slane %v5675_v26, 2 }
 0x120   : > { %v5829_v59 = vadd.f32 %v1017_v25, %v976_v53  ;;  %v979_v42 = vpop.f32.mrf.mxu1  ;;  %v1557_v53 = vrot.slane %v1451_v44, 2  ;;  %1708 = vmatpush.msra.mxu0 %v3962_v21 }
 0x121   : > { %1400 = vmatmul.f32.gmra.mxu0 %v5840_v38 }
 0x122   : > { %7833 = vst [vmem:[#allocation16_spill] sm:$0xff] %v5829_v59  ;;  %v5860_v46 = vsel %vm1556_vm2, %v1557_v53, %v1558_v49 }
 0x123   : > { %1324 = vmatmul.f32.gmra.mxu1 %v5578_v7  ;;  %3958 = vmatmul.msk.f32.gmra.mxu2 %vm760_vm1, %v5774_v52 }
 0x124   : > { %3952 = vmatmul.msk.f32.gmra.mxu3 %vm760_vm1, %v5581_v35 }
 0x126   : > { %v1096_v25 = vpop.f32.mrf.mxu2  ;;  %v1058_v26 = vpop.f32.mrf.mxu0 }
 0x127   : > { %v1020_v57 = vpop.f32.mrf.mxu3  ;;  %v5857_v44 = vadd.f32 %v1096_v25, %v1055_v43  ;;  %v1565_v43 = vrot.slane %v5639_v0, 2  ;;  %v839_v0 = vadd.f32 %v5370_v28, %v5423_v18  ;;  %v4015_v28 = vld [vmem:[%s7801_s1 + $0x7b0] sm:$0xff] }
 0x128   : > { %v5855_v39 = vadd.f32 %v1020_v57, %v979_v42  ;;  %v1140_v59 = vpop.f32.mrf.mxu1  ;;  %v1563_v42 = vrot.slane %v5721_v45, 2  ;;  %v4023_v45 = vld [vmem:[%s7801_s1 + $0x7f0] sm:$0xff] }
 0x129   : > { %1403 = vmatmul.f32.gmra.mxu0 %v5120_v13  ;;  %v1141_v5 = vadd.f32 %v1140_v59, %v836_v36  ;;  %v5883_v27 = vsel %vm1556_vm2, %v1561_v17, %v1565_v43  ;;  %1775 = vmatpush.msrb.mxu1 %v4023_v45  ;;  %v1567_v59 = vrot.slane %v5767_v29, 2  ;;  %v1569_v17 = vrot.slane %v5679_v8, 2  ;;  %v4011_v8 = vld [vmem:[%s7801_s1 + $0x790] sm:$0xff] }
 0x12a   : > { %v5880_v31 = vsel %vm1556_vm2, %v1558_v49, %v1563_v42  ;;  %v4019_v49 = vld [vmem:[%s7801_s1 + $0x7d0] sm:$0xff]  ;;  %v1573_v45 = vrot.slane %v5728_v32, 2 }
 0x12b   : > { %1627 = vmatmul.f32.vlgmr.msra.gmra.mxu1 %v5860_v46  ;;  %3959 = vmatmul.msk.f32.gmra.mxu2 %vm760_vm1, %v5814_v20 }
 0x12c   : > { %4057 = vmatmul.msk.f32.vlgmr.msra.gmra.mxu3 %vm760_vm1, %v5863_v40  ;;  %1776 = vmatpush.msrb.mxu1 %v4019_v49 }
 0x12e   : > { %v1099_v53 = vpop.f32.mrf.mxu2  ;;  %v1061_v21 = vpop.f32.mrf.mxu0  ;;  %1777 = vmatpush.msrb.mxu1 %v4015_v28 }
 0x12f   : > { %v1181_v60 = vpop.f32.mrf.mxu3  ;;  %v5875_v61 = vadd.f32 %v1099_v53, %v1058_v26  ;;  %v5915_v53 = vsel %vm1556_vm2, %v1565_v43, %v1569_v17  ;;  %v1571_v43 = vrot.slane %v5810_v62, 2  ;;  %v4051_v62 = vld [vmem:[%s7801_s1 + $0x8d0] sm:$0xff] }
 0x130   : > { %v5877_v13 = vadd.f32 %v1181_v60, %v1141_v5  ;;  %v1143_v57 = vpop.f32.mrf.mxu1  ;;  %v5909_v5 = vsel %vm1556_vm2, %v1563_v42, %v1567_v59  ;;  %1778 = vmatpush.msrb.mxu1 %v4011_v8  ;;  %v4007_v60 = vld [vmem:[%s7801_s1 + $0x770] sm:$0xff]  ;;  %v842_v42 = vadd.f32 %v5392_v3, %v5468_v14  ;;  %v4024_v8 = vld [vmem:[%s7801_s1 + $0x7f8] sm:$0xff] }
 0x131   : > { %1406 = vmatmul.f32.gmra.mxu0 %v5578_v7  ;;  %v1144_v7 = vadd.f32 %v1143_v57, %v839_v0  ;;  %v4055_v57 = vld [vmem:[%s7801_s1 + $0x8f0] sm:$0xff] }
 0x132   : > { %7834 = vst [vmem:[#allocation17_spill] sm:$0xff] %v5877_v13  ;;  %1779 = vmatpush.msrb.mxu1 %v4007_v60  ;;  %1824 = vmatpush.msrb.mxu3 %v4055_v57  ;;  %v3999_v0 = vld [vmem:[%s7801_s1 + $0x730] sm:$0xff] }
 0x133   : > { %1630 = vmatmul.f32.gmra.mxu1 %v5880_v31  ;;  %3960 = vmatmul.msk.f32.gmra.mxu2 %vm760_vm1, %v5581_v35  ;;  %v3995_v60 = vld [vmem:[%s7801_s1 + $0x710] sm:$0xff] }
 0x134   : > { %4058 = vmatmul.msk.f32.gmra.mxu3 %vm760_vm1, %v5883_v27  ;;  %1857 = vmatpush.msrb.mxu0 %v4024_v8  ;;  %v4039_v57 = vld [vmem:[%s7801_s1 + $0x870] sm:$0xff]  ;;  %v4012_v8 = vld [vmem:[%s7801_s1 + $0x798] sm:$0xff] }
 0x135   : > { %1825 = vmatpush.msrb.mxu3 %v4051_v62  ;;  %v4016_v62 = vld [vmem:[%s7801_s1 + $0x7b8] sm:$0xff] }
 0x136   : > { %v1102_v18 = vpop.f32.mrf.mxu2  ;;  %v1222_v36 = vpop.f32.mrf.mxu0 }
 0x137   : > { %v1184_v25 = vpop.f32.mrf.mxu3  ;;  %v5904_v35 = vadd.f32 %v1102_v18, %v1061_v21  ;;  %v4003_v21 = vld [vmem:[%s7801_s1 + $0x750] sm:$0xff]  ;;  %v1223_v14 = vadd.f32 %v1222_v36, %v5421_v55  ;;  %v5948_v55 = vsel %vm1556_vm2, %v1567_v59, %v1571_v43  ;;  %v5954_v36 = vsel %vm1556_vm2, %v1569_v17, %v1573_v45 }
 0x138   : > { %v5906_v26 = vadd.f32 %v1184_v25, %v1144_v7  ;;  %v1146_v29 = vpop.f32.mrf.mxu1  ;;  %1780 = vmatpush.msrb.mxu1 %v4003_v21  ;;  %v4043_v59 = vld [vmem:[%s7801_s1 + $0x890] sm:$0xff]  ;;  %v845_v17 = vadd.f32 %v5425_v56, %v5510_v23  ;;  %v4020_v56 = vld [vmem:[%s7801_s1 + $0x7d8] sm:$0xff]  ;;  %v1577_v23 = vrot.slane %v5774_v52, 2 }
 0x139   : > { %7835 = vst [vmem:[#allocation18_spill] sm:$0xff] %v5904_v35  ;;  %1709 = vmatmul.f32.vlgmr.msra.gmra.mxu0 %v5860_v46  ;;  %v1147_v3 = vadd.f32 %v1146_v29, %v842_v42  ;;  %v4047_v29 = vld [vmem:[%s7801_s1 + $0x8b0] sm:$0xff]  ;;  %v1575_v42 = vrot.slane %v5840_v38, 2 }
 0x13a   : > { %7836 = vst [vmem:[#allocation19_spill] sm:$0xff] %v5906_v26  ;;  %1781 = vmatpush.msrb.mxu1 %v3999_v0  ;;  %1826 = vmatpush.msrb.mxu3 %v4047_v29  ;;  %v3991_v21 = vld [vmem:[%s7801_s1 + $0x6f0] sm:$0xff] }
 0x13b   : > { %1633 = vmatmul.f32.gmra.mxu1 %v5909_v5  ;;  %4065 = vmatmul.msk.f32.vlgmr.msra.gmra.mxu2 %vm760_vm1, %v5863_v40  ;;  %v3987_v38 = vld [vmem:[%s7801_s1 + $0x6d0] sm:$0xff]  ;;  %v5999_v29 = vsel %vm1556_vm2, %v1571_v43, %v1575_v42 }
 0x13c   : > { %4059 = vmatmul.msk.f32.gmra.mxu3 %vm760_vm1, %v5915_v53  ;;  %1782 = vmatpush.msrb.mxu1 %v3995_v60  ;;  %v4035_v0 = vld [vmem:[%s7801_s1 + $0x850] sm:$0xff]  ;;  %v6005_v60 = vsel %vm1556_vm2, %v1573_v45, %v1577_v23  ;;  %v4008_v45 = vld [vmem:[%s7801_s1 + $0x778] sm:$0xff] }
 0x13d   : > { %1827 = vmatpush.msrb.mxu3 %v4043_v59  ;;  %1858 = vmatpush.msrb.mxu0 %v4020_v56  ;;  %v4056_v59 = vld [vmem:[%s7801_s1 + $0x8f8] sm:$0xff]  ;;  %v3983_v43 = vld [vmem:[%s7801_s1 + $0x6b0] sm:$0xff] }
 0x13e   : > { %v1263_v7 = vpop.f32.mrf.mxu2  ;;  %v1225_v25 = vpop.f32.mrf.mxu0  ;;  %1783 = vmatpush.msrb.mxu1 %v3991_v21  ;;  %1906 = vmatpush.msrb.mxu2 %v4056_v59  ;;  %v848_v21 = vadd.f32 %v5470_v15, %v5546_v48  ;;  %v1581_v15 = vrot.slane %v5814_v20, 2  ;;  %v4004_v48 = vld [vmem:[%s7801_s1 + $0x758] sm:$0xff] }
 0x13f   : > { %v1187_v49 = vpop.f32.mrf.mxu3  ;;  %v5945_v32 = vadd.f32 %v1263_v7, %v1223_v14  ;;  %v1226_v14 = vadd.f32 %v1225_v25, %v5466_v10  ;;  %1828 = vmatpush.msrb.mxu3 %v4039_v57  ;;  %1859 = vmatpush.msrb.mxu0 %v4016_v62  ;;  %v6028_v57 = vld [vmem:[%s4786_s21 + $0x60] sm:$0xff]  ;;  %v3975_v62 = vld [vmem:[%s7801_s1 + $0x670] sm:$0xff] }
 0x140   : > { %v5943_v28 = vadd.f32 %v1187_v49, %v1147_v3  ;;  %v1149_v18 = vpop.f32.mrf.mxu1  ;;  %1784 = vmatpush.msrb.mxu1 %v3987_v38  ;;  %v1579_v56 = vrot.slane %v6028_v57, 2  ;;  %v1454_v57 = vld [vmem:[%s4786_s21 + $0x78] sm:$0xff] }
 0x141   : > { %7838 = vst [vmem:[#allocation21_spill] sm:$0xff] %v5945_v32  ;;  %1712 = vmatmul.f32.gmra.mxu0 %v5880_v31  ;;  %v1150_v3 = vadd.f32 %v1149_v18, %v845_v17  ;;  %1829 = vmatpush.msrb.mxu3 %v4035_v0  ;;  %v4031_v17 = vld [vmem:[%s7801_s1 + $0x830] sm:$0xff] }
 0x142   : > { %7837 = vst [vmem:[#allocation20_spill] sm:$0xff] %v5943_v28  ;;  %1860 = vmatpush.msrb.mxu0 %v4012_v8  ;;  %1785 = vmatpush.msrb.mxu1 %v3983_v43  ;;  %v6056_v43 = vsel %vm1556_vm2, %v1575_v42, %v1579_v56  ;;  %v3996_v42 = vld [vmem:[%s7801_s1 + $0x718] sm:$0xff] }
 0x143   : > { %1636 = vmatmul.f32.gmra.mxu1 %v5948_v55  ;;  %4066 = vmatmul.msk.f32.gmra.mxu2 %vm760_vm1, %v5883_v27 }
 0x144   : > { %4060 = vmatmul.msk.f32.gmra.mxu3 %vm760_vm1, %v5954_v36  ;;  %1861 = vmatpush.msrb.mxu0 %v4008_v45  ;;  %v6062_v45 = vsel %vm1556_vm2, %v1577_v23, %v1581_v15  ;;  %v4044_v23 = vld [vmem:[%s7801_s1 + $0x898] sm:$0xff] }
 0x145   : > { %1830 = vmatpush.msrb.mxu3 %v4031_v17  ;;  %v4048_v17 = vld [vmem:[%s7801_s1 + $0x8b8] sm:$0xff] }
 0x146   : > { %v1266_v52 = vpop.f32.mrf.mxu2  ;;  %v1228_v25 = vpop.f32.mrf.mxu0  ;;  %1862 = vmatpush.msrb.mxu0 %v4004_v48 }
 0x147   : > { %v1190_v49 = vpop.f32.mrf.mxu3  ;;  %v5996_v10 = vadd.f32 %v1266_v52, %v1226_v14  ;;  %v4027_v14 = vld [vmem:[%s7801_s1 + $0x810] sm:$0xff]  ;;  %v1229_v0 = vadd.f32 %v1228_v25, %v5508_v58 }
 0x148   : > { %v5994_v7 = vadd.f32 %v1190_v49, %v1150_v3  ;;  %v1152_v18 = vpop.f32.mrf.mxu1  ;;  %v3979_v3 = vld [vmem:[%s7801_s1 + $0x690] sm:$0xff]  ;;  %v4052_v49 = vld [vmem:[%s7801_s1 + $0x8d8] sm:$0xff]  ;;  %1831 = vmatpush.msrb.mxu3 %v4027_v14  ;;  %v851_v14 = vadd.f32 %v5512_v34, %v5573_v6 }
 0x149   : > { %7840 = vst [vmem:[#allocation23_spill] sm:$0xff] %v5996_v10  ;;  %1715 = vmatmul.f32.gmra.mxu0 %v5909_v5  ;;  %v1153_v38 = vadd.f32 %v1152_v18, %v848_v21  ;;  %1786 = vmatpush.msrb.mxu1 %v3979_v3  ;;  %v4000_v18 = vld [vmem:[%s7801_s1 + $0x738] sm:$0xff]  ;;  %v1453_v21 = vld [vmem:[%s4786_s21 + $0x70] sm:$0xff] }
 0x14a   : > { %7839 = vst [vmem:[#allocation22_spill] sm:$0xff] %v5994_v7  ;;  %1907 = vmatpush.msrb.mxu2 %v4052_v49  ;;  %v3971_v3 = vld [vmem:[%s7801_s1 + $0x650] sm:$0xff]  ;;  %1863 = vmatpush.msrb.mxu0 %v4000_v18  ;;  %v6083_v48 = vrot.slane %v1453_v21, 2  ;;  %v4040_v34 = vld [vmem:[%s7801_s1 + $0x878] sm:$0xff] }
 0x14b   : > { %1639 = vmatmul.f32.gmra.mxu1 %v5999_v29  ;;  %4067 = vmatmul.msk.f32.gmra.mxu2 %vm760_vm1, %v5915_v53  ;;  %v4036_v21 = vld [vmem:[%s7801_s1 + $0x858] sm:$0xff] }
 0x14c   : > { %4061 = vmatmul.msk.f32.gmra.mxu3 %vm760_vm1, %v6005_v60  ;;  %1787 = vmatpush.msrb.mxu1 %v3975_v62  ;;  %v6091_v62 = vrot.slane %v1454_v57, 2 }
 0x14d   : > { %1908 = vmatpush.msrb.mxu2 %v4048_v17  ;;  %1864 = vmatpush.msrb.mxu0 %v3996_v42 }
 0x14e   : > { %v1269_v52 = vpop.f32.mrf.mxu2  ;;  %v1231_v59 = vpop.f32.mrf.mxu0  ;;  %1788 = vmatpush.msrb.mxu1 %v3971_v3  ;;  %v6112_v3 = vsel %vm1556_vm2, %v1579_v56, %v6083_v48  ;;  %v6116_v42 = vsel %vm1556_vm2, %v1581_v15, %v6091_v62  ;;  %v854_v56 = vadd.f32 %v5548_v50, %v5594_v16  ;;  %v3980_v15 = vld [vmem:[%s7801_s1 + $0x698] sm:$0xff] }
 0x14f   : > { %v1193_v20 = vpop.f32.mrf.mxu3  ;;  %v6053_v25 = vadd.f32 %v1269_v52, %v1229_v0  ;;  %v3992_v0 = vld [vmem:[%s7801_s1 + $0x6f8] sm:$0xff]  ;;  %v1232_v49 = vadd.f32 %v1231_v59, %v5544_v47  ;;  %1909 = vmatpush.msrb.mxu2 %v4044_v23 }
 0x150   : > { %v6051_v58 = vadd.f32 %v1193_v20, %v1153_v38  ;;  %v1155_v8 = vpop.f32.mrf.mxu1  ;;  %v3967_v38 = vld [vmem:[%s7801_s1 + $0x630] sm:$0xff]  ;;  %v3988_v52 = vld [vmem:[%s7801_s1 + $0x6d8] sm:$0xff]  ;;  %1865 = vmatpush.msrb.mxu0 %v3992_v0 }
 0x151   : > { %7842 = vst [vmem:[#allocation25_spill] sm:$0xff] %v6053_v25  ;;  %1718 = vmatmul.f32.gmra.mxu0 %v5948_v55  ;;  %v1156_v6 = vadd.f32 %v1155_v8, %v851_v14  ;;  %v3963_v20 = vld [vmem:[%s7801_s1 + $0x610] sm:$0xff]  ;;  %1789 = vmatpush.msrb.mxu1 %v3967_v38  ;;  %v3984_v23 = vld [vmem:[%s7801_s1 + $0x6b8] sm:$0xff] }
 0x152   : > { %7841 = vst [vmem:[#allocation24_spill] sm:$0xff] %v6051_v58  ;;  %1910 = vmatpush.msrb.mxu2 %v4040_v34  ;;  %1866 = vmatpush.msrb.mxu0 %v3988_v52  ;;  %v4032_v14 = vld [vmem:[%s7801_s1 + $0x838] sm:$0xff] }
 0x153   : > { %1642 = vmatmul.f32.gmra.mxu1 %v6056_v43  ;;  %4068 = vmatmul.msk.f32.gmra.mxu2 %vm760_vm1, %v5954_v36  ;;  %v4028_v38 = vld [vmem:[%s7801_s1 + $0x818] sm:$0xff] }
 0x154   : > { %4062 = vmatmul.msk.f32.gmra.mxu3 %vm760_vm1, %v6062_v45  ;;  %1790 = vmatpush.msrb.mxu1 %v3963_v20  ;;  %v3976_v50 = vld [vmem:[%s7801_s1 + $0x678] sm:$0xff] }
 0x155   : > { %1911 = vmatpush.msrb.mxu2 %v4036_v21  ;;  %1867 = vmatpush.msrb.mxu0 %v3984_v23  ;;  %v3968_v21 = vld [vmem:[%s7801_s1 + $0x638] sm:$0xff] }
 0x156   : > { %v1272_v17 = vpop.f32.mrf.mxu2  ;;  %v1234_v57 = vpop.f32.mrf.mxu0  ;;  %v3964_v23 = vld [vmem:[%s7801_s1 + $0x618] sm:$0xff] }
 0x157   : > { %v1196_v18 = vpop.f32.mrf.mxu3  ;;  %v6108_v47 = vadd.f32 %v1272_v17, %v1232_v49  ;;  %1912 = vmatpush.msrb.mxu2 %v4032_v14  ;;  %v1235_v34 = vadd.f32 %v1234_v57, %v5571_v1  ;;  %1868 = vmatpush.msrb.mxu0 %v3980_v15  ;;  %v3972_v17 = vld [vmem:[%s7801_s1 + $0x658] sm:$0xff]  ;;  %v857_v1 = vadd.f32 %v5575_v2, %v5606_v24 }
 0x158   : > { %v6106_v8 = vadd.f32 %v1196_v18, %v1156_v6  ;;  %v1158_v59 = vpop.f32.mrf.mxu1 }
 0x159   : > { %7844 = vst [vmem:[#allocation27_spill] sm:$0xff] %v6108_v47  ;;  %1721 = vmatmul.f32.gmra.mxu0 %v5999_v29  ;;  %v1159_v0 = vadd.f32 %v1158_v59, %v854_v56  ;;  %1913 = vmatpush.msrb.mxu2 %v4028_v38 }
 0x15a   : > { %7843 = vst [vmem:[#allocation26_spill] sm:$0xff] %v6106_v8  ;;  %1869 = vmatpush.msrb.mxu0 %v3976_v50 }
 0x15b   : > { %1645 = vmatmul.f32.gmra.mxu1 %v6112_v3  ;;  %4069 = vmatmul.msk.f32.gmra.mxu2 %vm760_vm1, %v6005_v60 }
 0x15c   : > { %4063 = vmatmul.msk.f32.gmra.mxu3 %vm760_vm1, %v6116_v42  ;;  %1870 = vmatpush.msrb.mxu0 %v3972_v17 }
 0x15e   : > { %v1275_v6 = vpop.f32.mrf.mxu2  ;;  %v1237_v18 = vpop.f32.mrf.mxu0  ;;  %1871 = vmatpush.msrb.mxu0 %v3968_v21 }
 0x15f   : > { %v1199_v16 = vpop.f32.mrf.mxu3  ;;  %v6144_v20 = vadd.f32 %v1275_v6, %v1235_v34  ;;  %v1238_v57 = vadd.f32 %v1237_v18, %v5592_v9 }
 0x160   : > { %v6142_v49 = vadd.f32 %v1199_v16, %v1159_v0  ;;  %v1161_v52 = vpop.f32.mrf.mxu1  ;;  %1872 = vmatpush.msrb.mxu0 %v3964_v23 }
 0x161   : > { %7846 = vst [vmem:[#allocation29_spill] sm:$0xff] %v6144_v20  ;;  %1724 = vmatmul.f32.gmra.mxu0 %v6056_v43  ;;  %v1162_v59 = vadd.f32 %v1161_v52, %v857_v1 }
 0x162   : > { %7845 = vst [vmem:[#allocation28_spill] sm:$0xff] %v6142_v49 }
 0x163   : > { %1648 = vmatmul.f32.gmra.mxu1 %v6083_v48  ;;  %4070 = vmatmul.msk.f32.gmra.mxu2 %vm760_vm1, %v6062_v45 }
 0x164   : > { %4064 = vmatmul.msk.f32.gmra.mxu3 %vm760_vm1, %v6091_v62 }
 0x166   : > { %v1278_v2 = vpop.f32.mrf.mxu2  ;;  %v1240_v15 = vpop.f32.mrf.mxu0 }
 0x167   : > { %v1202_v14 = vpop.f32.mrf.mxu3  ;;  %v6166_v56 = vadd.f32 %v1278_v2, %v1238_v57  ;;  %v1241_v9 = vadd.f32 %v1240_v15, %v5602_v22 }
 0x168   : > { %v6164_v24 = vadd.f32 %v1202_v14, %v1162_v59  ;;  %v6168_v38 = vpop.f32.mrf.mxu1 }
 0x169   : > { %7848 = vst [vmem:[#allocation31_spill] sm:$0xff] %v6166_v56  ;;  %1727 = vmatmul.f32.gmra.mxu0 %v6112_v3 }
 0x16a   : > { %7847 = vst [vmem:[#allocation30_spill] sm:$0xff] %v6164_v24 }
 0x16b   : > { %1791 = vmatmul.f32.vlgmr.msrb.gmra.mxu1 %v5860_v46  ;;  %4071 = vmatmul.msk.f32.gmra.mxu2 %vm760_vm1, %v6116_v42 }
 0x16c   : > { %4073 = vmatmul.msk.f32.vlgmr.msrb.gmra.mxu3 %vm760_vm1, %v5863_v40 }
 0x16e   : > { %v1281_v0 = vpop.f32.mrf.mxu2  ;;  %v1243_v16 = vpop.f32.mrf.mxu0 }
 0x16f   : > { %v6177_v34 = vpop.f32.mrf.mxu3  ;;  %v6179_v50 = vadd.f32 %v1281_v0, %v1241_v9  ;;  %v1244_v22 = vadd.f32 %v1243_v16, %v5626_v37 }
 0x170   : > { %v6181_v6 = vpop.f32.mrf.mxu1 }
 0x171   : > { %7849 = vst [vmem:[#allocation32_spill] sm:$0xff] %v6179_v50  ;;  %1730 = vmatmul.f32.gmra.mxu0 %v6083_v48 }
 0x173   : > { %1794 = vmatmul.f32.gmra.mxu1 %v5880_v31  ;;  %4072 = vmatmul.msk.f32.gmra.mxu2 %vm760_vm1, %v6091_v62 }
 0x174   : > { %4074 = vmatmul.msk.f32.gmra.mxu3 %vm760_vm1, %v5883_v27 }
 0x176   : > { %v1284_v52 = vpop.f32.mrf.mxu2  ;;  %v6196_v21 = vpop.f32.mrf.mxu0 }
 0x177   : > { %v6190_v18 = vpop.f32.mrf.mxu3  ;;  %v6192_v17 = vadd.f32 %v1284_v52, %v1244_v22 }
 0x178   : > { %v6194_v1 = vpop.f32.mrf.mxu1 }
 0x179   : > { %1873 = vmatmul.f32.vlgmr.msrb.gmra.mxu0 %v5860_v46 }
 0x17b   : > { %1797 = vmatmul.f32.gmra.mxu1 %v5909_v5  ;;  %4081 = vmatmul.msk.f32.vlgmr.msrb.gmra.mxu2 %vm760_vm1, %v5863_v40 }
 0x17c   : > { %4075 = vmatmul.msk.f32.gmra.mxu3 %vm760_vm1, %v5915_v53 }
 0x17e   : > { %v6206_v59 = vpop.f32.mrf.mxu2  ;;  %v6210_v23 = vpop.f32.mrf.mxu0 }
 0x17f   : > { %v6204_v37 = vpop.f32.mrf.mxu3 }
 0x180   : > { %v6208_v57 = vpop.f32.mrf.mxu1 }
 0x181   : > { %1876 = vmatmul.f32.gmra.mxu0 %v5880_v31 }
 0x183   : > { %1800 = vmatmul.f32.gmra.mxu1 %v5948_v55  ;;  %4082 = vmatmul.msk.f32.gmra.mxu2 %vm760_vm1, %v5883_v27 }
 0x184   : > { %4076 = vmatmul.msk.f32.gmra.mxu3 %vm760_vm1, %v5954_v36 }
 0x186   : > { %v6220_v40 = vpop.f32.mrf.mxu2  ;;  %v6224_v2 = vpop.f32.mrf.mxu0 }
 0x187   : > { %v6218_v46 = vpop.f32.mrf.mxu3 }
 0x188   : > { %v6222_v14 = vpop.f32.mrf.mxu1 }
 0x189   : > { %1879 = vmatmul.f32.gmra.mxu0 %v5909_v5 }
 0x18b   : > { %1803 = vmatmul.f32.gmra.mxu1 %v5999_v29  ;;  %4083 = vmatmul.msk.f32.gmra.mxu2 %vm760_vm1, %v5915_v53 }
 0x18c   : > { %4077 = vmatmul.msk.f32.gmra.mxu3 %vm760_vm1, %v6005_v60 }
 0x18e   : > { %v6234_v27 = vpop.f32.mrf.mxu2  ;;  %v6238_v9 = vpop.f32.mrf.mxu0 }
 0x18f   : > { %v6232_v31 = vpop.f32.mrf.mxu3 }
 0x190   : > { %v6236_v15 = vpop.f32.mrf.mxu1 }
 0x191   : > { %1882 = vmatmul.f32.gmra.mxu0 %v5948_v55 }
 0x193   : > { %1806 = vmatmul.f32.gmra.mxu1 %v6056_v43  ;;  %4084 = vmatmul.msk.f32.gmra.mxu2 %vm760_vm1, %v5954_v36 }
 0x194   : > { %4078 = vmatmul.msk.f32.gmra.mxu3 %vm760_vm1, %v6062_v45 }
 0x196   : > { %v6248_v53 = vpop.f32.mrf.mxu2  ;;  %v6252_v16 = vpop.f32.mrf.mxu0 }
 0x197   : > { %v6246_v5 = vpop.f32.mrf.mxu3 }
 0x198   : > { %v6250_v0 = vpop.f32.mrf.mxu1 }
 0x199   : > { %1885 = vmatmul.f32.gmra.mxu0 %v5999_v29 }
 0x19b   : > { %1809 = vmatmul.f32.gmra.mxu1 %v6112_v3  ;;  %4085 = vmatmul.msk.f32.gmra.mxu2 %vm760_vm1, %v6005_v60 }
 0x19c   : > { %4079 = vmatmul.msk.f32.gmra.mxu3 %vm760_vm1, %v6116_v42 }
 0x19e   : > { %v6262_v36 = vpop.f32.mrf.mxu2  ;;  %v6266_v52 = vpop.f32.mrf.mxu0 }
 0x19f   : > { %v6260_v55 = vpop.f32.mrf.mxu3 }
 0x1a0   : > { %7850 = vst [vmem:[#allocation33_spill] sm:$0xff] %v6260_v55  ;;  %v6264_v22 = vpop.f32.mrf.mxu1 }
 0x1a1   : > { %1888 = vmatmul.f32.gmra.mxu0 %v6056_v43 }
 0x1a3   : > { %1812 = vmatmul.f32.gmra.mxu1 %v6083_v48  ;;  %4086 = vmatmul.msk.f32.gmra.mxu2 %vm760_vm1, %v6062_v45 }
 0x1a4   : > { %4080 = vmatmul.msk.f32.gmra.mxu3 %vm760_vm1, %v6091_v62 }
 0x1a6   : > { %v6276_v60 = vpop.f32.mrf.mxu2  ;;  %v6278_v13 = vpop.f32.mrf.mxu0 }
 0x1a7   : > { %v6274_v29 = vpop.f32.mrf.mxu3 }
 0x1a8   : > { %v6280_v26 = vpop.f32.mrf.mxu1 }
 0x1a9   : > { %7851 = vst [vmem:[#allocation34_spill] sm:$0xff] %v6280_v26  ;;  %1891 = vmatmul.f32.gmra.mxu0 %v6112_v3 }
 0x1ab   : > { %4087 = vmatmul.msk.f32.gmra.mxu2 %vm760_vm1, %v6116_v42 }
 0x1ae   : > { %v6285_v43 = vpop.f32.mrf.mxu2  ;;  %v6289_v7 = vpop.f32.mrf.mxu0 }
 0x1af   : > { %7852 = vst [vmem:[#allocation35_spill] sm:$0xff] %v6285_v43  ;;  %v6287_v28 = vpop.f32.mrf.mxu3 }
 0x1b0   : > { %7853 = vst [vmem:[#allocation36_spill] sm:$0xff] %v6287_v28  ;;  %v6291_v45 = vpop.f32.mrf.mxu1 }
 0x1b1   : > { %7854 = vst [vmem:[#allocation37_spill] sm:$0xff] %v6289_v7  ;;  %1894 = vmatmul.f32.gmra.mxu0 %v6083_v48 }
 0x1b2   : > { %7855 = vst [vmem:[#allocation38_spill] sm:$0xff] %v6291_v45 }
 0x1b3   : > { %4088 = vmatmul.msk.f32.gmra.mxu2 %vm760_vm1, %v6091_v62  ;;  %vm2989_vm1 = vcmask 228352  }
 0x1b6   : > { %v6296_v58 = vpop.f32.mrf.mxu2  ;;  %v6302_v42 = vpop.f32.mrf.mxu0 }
 0x1b7   : > { %7856 = vst [vmem:[#allocation39_spill] sm:$0xff] %v6296_v58  ;;  %v6298_v26 = vpop.f32.mrf.mxu3 }
 0x1b8   : > { %7857 = vst [vmem:[#allocation40_spill] sm:$0xff] %v6298_v26  ;;  %v6300_v3 = vpop.f32.mrf.mxu1 }
 0x1b9   : > { %7858 = vst [vmem:[#allocation41_spill] sm:$0xff] %v6300_v3 }
 0x1ba   : > { %7859 = vst [vmem:[#allocation42_spill] sm:$0xff] %v6302_v42 }
 0x1be   : > { %v6306_v28 = vpop.f32.mrf.mxu2  ;;  %v6310_v45 = vpop.f32.mrf.mxu0 }
 0x1bf   : > { %v6304_v8 = vpop.f32.mrf.mxu3  ;;  %7861 = vst [vmem:[#allocation44_spill] sm:$0xff] %v6306_v28 }
 0x1c0   : > { %7860 = vst [vmem:[#allocation43_spill] sm:$0xff] %v6304_v8  ;;  %v6308_v49 = vpop.f32.mrf.mxu1 }
 0x1c1   : > { %7862 = vst [vmem:[#allocation45_spill] sm:$0xff] %v6308_v49 }
 0x1c2   : > { %7863 = vst [vmem:[#allocation46_spill] sm:$0xff] %v6310_v45 }
 0x1c6   : > { %v6314_v24 = vpop.f32.mrf.mxu2  ;;  %v6318_v10 = vpop.f32.mrf.mxu0 }
 0x1c7   : > { %v6312_v48 = vpop.f32.mrf.mxu3  ;;  %7865 = vst [vmem:[#allocation48_spill] sm:$0xff] %v6314_v24 }
 0x1c8   : > { %7864 = vst [vmem:[#allocation47_spill] sm:$0xff] %v6312_v48  ;;  %v6316_v62 = vpop.f32.mrf.mxu1 }
 0x1c9   : > { %7866 = vst [vmem:[#allocation49_spill] sm:$0xff] %v6316_v62 }
 0x1ca   : > { %7867 = vst [vmem:[#allocation50_spill] sm:$0xff] %v6318_v10 }
 0x1ce   : > { %v6322_v3 = vpop.f32.mrf.mxu2  ;;  %v6326_v8 = vpop.f32.mrf.mxu0 }
 0x1cf   : > { %v6320_v26 = vpop.f32.mrf.mxu3  ;;  %7869 = vst [vmem:[#allocation52_spill] sm:$0xff] %v6322_v3 }
 0x1d0   : > { %7868 = vst [vmem:[#allocation51_spill] sm:$0xff] %v6320_v26  ;;  %v6324_v25 = vpop.f32.mrf.mxu1 }
 0x1d1   : > { %7870 = vst [vmem:[#allocation53_spill] sm:$0xff] %v6324_v25 }
 0x1d2   : > { %7871 = vst [vmem:[#allocation54_spill] sm:$0xff] %v6326_v8 }
 0x1d6   : > { %v6330_v49 = vpop.f32.mrf.mxu2  ;;  %v6334_v48 = vpop.f32.mrf.mxu0 }
 0x1d7   : > { %v6328_v32 = vpop.f32.mrf.mxu3  ;;  %7873 = vst [vmem:[#allocation56_spill] sm:$0xff] %v6330_v49 }
 0x1d8   : > { %7872 = vst [vmem:[#allocation55_spill] sm:$0xff] %v6328_v32  ;;  %v6332_v45 = vpop.f32.mrf.mxu1 }
 0x1d9   : > { %7874 = vst [vmem:[#allocation57_spill] sm:$0xff] %v6332_v45 }
 0x1de   : > { %v6338_v62 = vpop.f32.mrf.mxu2  ;;  %v6342_v26 = vpop.f32.mrf.mxu0 }
 0x1df   : > { %v6336_v24 = vpop.f32.mrf.mxu3  ;;  %7877 = vst [vmem:[#allocation60_spill] sm:$0xff] %v6342_v26  ;;  %v1305_v26 = vadd.f32 %v6168_v38, %v5604_v19 }
 0x1e0   : > { %7875 = vst [vmem:[#allocation58_spill] sm:$0xff] %v6336_v24  ;;  %v6340_v10 = vpop.f32.mrf.mxu1 }
 0x1e1   : > { %7876 = vst [vmem:[#allocation59_spill] sm:$0xff] %v6340_v10 }
 0x1e6   : > { %v6346_v25 = vpop.f32.mrf.mxu2  ;;  %v6348_v28 = vpop.f32.mrf.mxu0 }
 0x1e7   : > { %v6344_v3 = vpop.f32.mrf.mxu3  ;;  %7879 = vst [vmem:[#allocation62_spill] sm:$0xff] %v6346_v25 }
 0x1e8   : > { %7878 = vst [vmem:[#allocation61_spill] sm:$0xff] %v6344_v3  ;;  %v1792_v32 = vpop.f32.mrf.mxu1  ;;  %v1387_v3 = vadd.f32 %v6196_v21, %v5659_v51  ;;  %v1308_v51 = vadd.f32 %v6181_v6, %v5628_v12 }
 0x1e9   : > { %7880 = vst [vmem:[#allocation63_spill] sm:$0xff] %v6348_v28 }
 0x1ea   : > { %v1428_v47 = vadd.f32 %v6206_v59, %v1387_v3 }
 0x1ee   : > { %v6350_v42 = vpop.f32.mrf.mxu2  ;;  %v6352_v56 = vpop.f32.mrf.mxu0 }
 0x1ef   : > { %7881 = vst [vmem:[#allocation64_spill] sm:$0xff] %v6350_v42  ;;  %v1833_v45 = vpop.f32.mrf.mxu3  ;;  %v1346_v42 = vadd.f32 %v6177_v34, %v1305_v26 }
 0x1f0   : > { %v1795_v50 = vpop.f32.mrf.mxu1  ;;  %v1834_v25 = vadd.f32 %v1833_v45, %v1792_v32  ;;  %v1390_v32 = vadd.f32 %v6210_v23, %v5705_v11  ;;  %v1311_v11 = vadd.f32 %v6194_v1, %v5657_v54 }
 0x1f2   : > { %v6362_v49 = vadd.f32 %v1834_v25, %v1346_v42  ;;  %v1352_v23 = vadd.f32 %v6204_v37, %v1311_v11 }
 0x1f6   : > { %v6354_v24 = vpop.f32.mrf.mxu2  ;;  %v1874_v10 = vpop.f32.mrf.mxu0 }
 0x1f7   : > { %v1836_v58 = vpop.f32.mrf.mxu3 }
 0x1f8   : > { %v1798_v7 = vpop.f32.mrf.mxu1  ;;  %v1837_v38 = vadd.f32 %v1836_v58, %v1795_v50  ;;  %v1393_v58 = vadd.f32 %v6224_v2, %v5754_v4  ;;  %v1314_v4 = vadd.f32 %v6208_v57, %v5703_v30  ;;  %v1399_v30 = vadd.f32 %v6252_v16, %v5831_v41 }
 0x1f9   : > { %v1326_v41 = vadd.f32 %v6264_v22, %v5855_v39  ;;  %v1402_v16 = vadd.f32 %v6266_v52, %v5857_v44  ;;  %v1764_v52 = vadd.f32 %v6338_v62, %v6334_v48  ;;  %v7886_v48 = vld [vmem:[#allocation33_spill] sm:$0xff] }
 0x1fa   : > { %v1355_v2 = vadd.f32 %v6218_v46, %v1314_v4 }
 0x1fe   : > { %v1915_v35 = vpop.f32.mrf.mxu2  ;;  %v1877_v55 = vpop.f32.mrf.mxu0 }
 0x1ff   : > { %v1839_v28 = vpop.f32.mrf.mxu3  ;;  %v1916_v20 = vadd.f32 %v1915_v35, %v1874_v10  ;;  %v1349_v35 = vadd.f32 %v6190_v18, %v1308_v51  ;;  %v1431_v10 = vadd.f32 %v6220_v40, %v1390_v32  ;;  %v1434_v40 = vadd.f32 %v6234_v27, %v1393_v58 }
 0x200   : > { %v1801_v43 = vpop.f32.mrf.mxu1  ;;  %v1840_v50 = vadd.f32 %v1839_v28, %v1798_v7  ;;  %v1396_v28 = vadd.f32 %v6238_v9, %v5800_v33 }
 0x201   : > { %v6364_v8 = vadd.f32 %v1916_v20, %v1428_v47  ;;  %v6374_v20 = vadd.f32 %v1837_v38, %v1349_v35 }
 0x202   : > { %v6386_v42 = vadd.f32 %v1840_v50, %v1352_v23  ;;  %v1437_v27 = vadd.f32 %v6248_v53, %v1396_v28  ;;  %v1440_v53 = vadd.f32 %v6262_v36, %v1399_v30  ;;  %v1367_v36 = vadd.f32 %v6274_v29, %v1326_v41  ;;  %v7885_v28 = vld [vmem:[#allocation56_spill] sm:$0xff]  ;;  %v7891_v30 = vld [vmem:[#allocation37_spill] sm:$0xff] }
 0x203   : > { %v4459_v19 = vpack.i.bf16 %v6364_v8, %v6362_v49  ;;  %v7897_v41 = vld [vmem:[#allocation32_spill] sm:$0xff]  ;;  %v7908_v8 = vld [vmem:[#allocation59_spill] sm:$0xff]  ;;  %v7909_v49 = vld [vmem:[#allocation61_spill] sm:$0xff] }
 0x206   : > { %v1918_v34 = vpop.f32.mrf.mxu2  ;;  %v1880_v47 = vpop.f32.mrf.mxu0 }
 0x207   : > { %v1842_v26 = vpop.f32.mrf.mxu3  ;;  %v1919_v25 = vadd.f32 %v1918_v34, %v1877_v55 }
 0x208   : > { %v1804_v21 = vpop.f32.mrf.mxu1  ;;  %v1843_v7 = vadd.f32 %v1842_v26, %v1801_v43 }
 0x209   : > { %v6376_v59 = vadd.f32 %v1919_v25, %v1431_v10 }
 0x20a   : > { %v1953_v34 = vadd.f32 %v1843_v7, %v1355_v2 }
 0x20b   : > { %v4454_v12 = vpack.i.bf16 %v6376_v59, %v6374_v20  ;;  %v7903_v20 = vld [vmem:[#allocation21_spill] sm:$0xff] }
 0x20e   : > { %v1921_v18 = vpop.f32.mrf.mxu2  ;;  %v1883_v45 = vpop.f32.mrf.mxu0 }
 0x20f   : > { %v1845_v6 = vpop.f32.mrf.mxu3  ;;  %v1922_v55 = vadd.f32 %v1921_v18, %v1880_v47  ;;  %v1317_v47 = vadd.f32 %v6222_v14, %v5752_v63  ;;  %v7882_v18 = vld [vmem:[#allocation15_spill] sm:$0xff] }
 0x210   : > { %v1807_v3 = vpop.f32.mrf.mxu1  ;;  %v1846_v33 = vadd.f32 %v1845_v6, %v1804_v21  ;;  %v1320_v63 = vadd.f32 %v6236_v15, %v7882_v18  ;;  %v1773_v15 = vadd.f32 %v6354_v24, %v6352_v56  ;;  %v1405_v24 = vadd.f32 %v6278_v13, %v5875_v61  ;;  %v7884_v56 = vld [vmem:[#allocation54_spill] sm:$0xff] }
 0x211   : > { %v6388_v51 = vadd.f32 %v1922_v55, %v1434_v40  ;;  %v1358_v9 = vadd.f32 %v6232_v31, %v1317_v47  ;;  %v1443_v40 = vadd.f32 %v6276_v60, %v1402_v16  ;;  %v1761_v7 = vadd.f32 %v7885_v28, %v7884_v56  ;;  %v7890_v47 = vld [vmem:[#allocation18_spill] sm:$0xff]  ;;  %v7898_v16 = vld [vmem:[#allocation31_spill] sm:$0xff] }
 0x212   : > { %v1361_v31 = vadd.f32 %v6246_v5, %v1320_v63  ;;  %v6420_v5 = vadd.f32 %v1773_v15, %v6192_v17  ;;  %v7896_v18 = vld [vmem:[#allocation62_spill] sm:$0xff]  ;;  %v7902_v15 = vld [vmem:[#allocation52_spill] sm:$0xff] }
 0x213   : > { %v4449_v54 = vpack.i.bf16 %v6388_v51, %v6386_v42  ;;  %v1957_v11 = vadd.f32 %v1846_v33, %v1358_v9  ;;  %v1408_v33 = vadd.f32 %v7891_v30, %v7890_v47  ;;  %v7906_v42 = vld [vmem:[#allocation25_spill] sm:$0xff] }
 0x216   : > { %v1924_v37 = vpop.f32.mrf.mxu2  ;;  %v1886_v38 = vpop.f32.mrf.mxu0 }
 0x217   : > { %v1848_v1 = vpop.f32.mrf.mxu3  ;;  %v1925_v32 = vadd.f32 %v1924_v37, %v1883_v45  ;;  %v7887_v37 = vld [vmem:[#allocation35_spill] sm:$0xff] }
 0x218   : > { %v1810_v10 = vpop.f32.mrf.mxu1  ;;  %v1849_v21 = vadd.f32 %v1848_v1, %v1807_v3  ;;  %v7883_v3 = vld [vmem:[#allocation16_spill] sm:$0xff]  ;;  %v1446_v2 = vadd.f32 %v7887_v37, %v1405_v24 }
 0x219   : > { %v1954_v35 = vadd.f32 %v1925_v32, %v1437_v27  ;;  %v1323_v60 = vadd.f32 %v6250_v0, %v7883_v3  ;;  %v7888_v27 = vld [vmem:[#allocation29_spill] sm:$0xff] }
 0x21a   : > { %v1961_v45 = vadd.f32 %v1849_v21, %v1361_v31  ;;  %v6435_v32 = vadd.f32 %v1764_v52, %v7888_v27 }
 0x21b   : > { %v4429_v25 = vpack.i.bf16 %v1954_v35, %v1953_v34  ;;  %v1364_v62 = vadd.f32 %v7886_v48, %v1323_v60 }
 0x21d   : > { %4430 = vrot.lane.b32.xlu2 %v4429_v25, %s4588_s27 }
 0x21e   : > { %v1927_v46 = vpop.f32.mrf.mxu2  ;;  %v1889_v26 = vpop.f32.mrf.mxu0 }
 0x21f   : > { %v1851_v57 = vpop.f32.mrf.mxu3  ;;  %v1928_v43 = vadd.f32 %v1927_v46, %v1886_v38  ;;  %v7889_v38 = vld [vmem:[#allocation27_spill] sm:$0xff] }
 0x220   : > { %v1813_v14 = vpop.f32.mrf.mxu1  ;;  %v1852_v1 = vadd.f32 %v1851_v57, %v1810_v10  ;;  %v6438_v61 = vadd.f32 %v1761_v7, %v7889_v38  ;;  %v7892_v46 = vld [vmem:[#allocation39_spill] sm:$0xff] }
 0x221   : > { %v1958_v58 = vadd.f32 %v1928_v43, %v1440_v53  ;;  %v1449_v9 = vadd.f32 %v7892_v46, %v1408_v33 }
 0x222   : > { %v1965_v13 = vadd.f32 %v1852_v1, %v1364_v62  ;;  %v4469_v10 = vpack.i.bf16 %v6438_v61, %v6435_v32 }
 0x223   : > { %v4434_v50 = vpack.i.bf16 %v1958_v58, %v1957_v11  ;;  %v7894_v11 = vld [vmem:[#allocation64_spill] sm:$0xff] }
 0x225   : > { %4435 = vrot.lane.b32.xlu2 %v4434_v50, %s4588_s27  ;;  %v7895_v50 = vld [vmem:[#allocation60_spill] sm:$0xff] }
 0x226   : > { %v1930_v23 = vpop.f32.mrf.mxu2  ;;  %v1892_v44 = vpop.f32.mrf.mxu0  ;;  %v1767_v63 = vadd.f32 %v7896_v18, %v7895_v50 }
 0x227   : > { %v1854_v6 = vpop.f32.mrf.mxu3  ;;  %v1931_v39 = vadd.f32 %v1930_v23, %v1889_v26  ;;  %v7893_v26 = vld [vmem:[#allocation63_spill] sm:$0xff] }
 0x228   : > { %v1855_v55 = vadd.f32 %v1854_v6, %v1813_v14  ;;  %v1770_v58 = vadd.f32 %v7894_v11, %v7893_v26  ;;  %v1960_v21 = vadd.f32 %v1767_v63, %v7898_v16  ;;  %v7900_v6 = vld [vmem:[#allocation44_spill] sm:$0xff]  ;;  %v7911_v26 = vld [vmem:[#allocation57_spill] sm:$0xff]  ;;  %v7912_v11 = vld [vmem:[#allocation58_spill] sm:$0xff] }
 0x229   : > { %v1962_v4 = vadd.f32 %v1931_v39, %v1443_v40  ;;  %v7901_v40 = vld [vmem:[#allocation50_spill] sm:$0xff]  ;;  %v7905_v39 = vld [vmem:[#allocation48_spill] sm:$0xff] }
 0x22a   : > { %v1969_v22 = vadd.f32 %v1855_v55, %v1367_v36  ;;  %v1964_v14 = vadd.f32 %v1770_v58, %v7897_v41  ;;  %v7899_v36 = vld [vmem:[#allocation42_spill] sm:$0xff]  ;;  %v1758_v55 = vadd.f32 %v7902_v15, %v7901_v40  ;;  %v1688_v58 = vadd.f32 %v7912_v11, %v7911_v26 }
 0x22b   : > { %v4439_v29 = vpack.i.bf16 %v1962_v4, %v1961_v45  ;;  %v1752_v23 = vadd.f32 %v7900_v6, %v7899_v36  ;;  %v7925_v11 = vld [vmem:[#allocation38_spill] sm:$0xff] }
 0x22c   : > { %2039 = vrot.lane.b32.xlu0 %v1969_v22, %s4588_s27  ;;  %v4464_v31 = vpack.i.bf16 %v1960_v21, %v1964_v14  ;;  %v6477_v51 = vadd.f32 %v1758_v55, %v7906_v42 }
 0x22d   : > { %4440 = vrot.lane.b32.xlu1 %v4439_v29, %s4588_s27  ;;  %2037 = vrot.lane.b32.xlu2 %v6420_v5, %s4588_s27  ;;  %v6468_v59 = vadd.f32 %v1752_v23, %v7903_v20  ;;  %v7910_v29 = vld [vmem:[#allocation30_spill] sm:$0xff]  ;;  %v7915_v20 = vld [vmem:[#allocation49_spill] sm:$0xff] }
 0x22e   : > { %v1933_v17 = vpop.f32.mrf.mxu2  ;;  %v1895_v25 = vpop.f32.mrf.mxu0 }
 0x22f   : > { %v1934_v0 = vadd.f32 %v1933_v17, %v1892_v44 }
 0x231   : > { %v1966_v34 = vadd.f32 %v1934_v0, %v1446_v2 }
 0x233   : > { %v4444_v35 = vpack.i.bf16 %v1966_v34, %v1965_v13  ;;  %v2092_v34 = vlaneseq }
 0x235   : > { %4445 = vrot.lane.b32.xlu1 %v4444_v35, %s4588_s27  ;;  %4470 = vrot.lane.b32.xlu2 %v4469_v10, %s4588_s27  ;;  %v6514_v46 = vshrl.u32 %v2092_v34, 7 }
 0x236   : > { %v1936_v57 = vpop.f32.mrf.mxu2 }
 0x237   : > { %v1937_v53 = vadd.f32 %v1936_v57, %v1895_v25  ;;  %v2099_v16 = vmul.u32 2, %v6514_v46  ;;  %v2095_v26 = vadd.s32 16, %v6514_v46 }
 0x239   : > { %v1970_v43 = vadd.f32 %v1937_v53, %v1449_v9 }
 0x23b   : > { %2041 = vrot.lane.b32.xlu0 %v1970_v43, %s4588_s27 }
 0x23d   : > { %4455 = vrot.lane.b32.xlu1 %v4454_v12, %s4588_s27  ;;  %v7904_v12 = vld [vmem:[#allocation46_spill] sm:$0xff] }
 0x23e   : > { %v1755_v22 = vadd.f32 %v7905_v39, %v7904_v12  ;;  %v7916_v12 = vld [vmem:[#allocation51_spill] sm:$0xff] }
 0x23f   : > { %v1682_v39 = vadd.f32 %v7916_v12, %v7915_v20  ;;  %v4177_v20 = vld [vmem:[%s7802_s2 + $0x3d0] sm:$0xff]  ;;  %v4178_v12 = vld [vmem:[%s7802_s2 + $0x3d8] sm:$0xff] }
 0x243   : > { %4450 = vrot.lane.b32.xlu0 %v4449_v54, %s4588_s27  ;;  %v7907_v54 = vld [vmem:[#allocation23_spill] sm:$0xff] }
 0x244   : > { %v6482_v45 = vadd.f32 %v1755_v22, %v7907_v54  ;;  %v7917_v22 = vld [vmem:[#allocation28_spill] sm:$0xff] }
 0x245   : > { %4465 = vrot.lane.b32.xlu1 %v4464_v31, %s4588_s27  ;;  %v7914_v31 = vld [vmem:[#allocation55_spill] sm:$0xff]  ;;  %v1963_v42 = vadd.f32 %v1688_v58, %v7917_v22  ;;  %v7926_v58 = vld [vmem:[#allocation40_spill] sm:$0xff] }
 0x246   : > { %v4474_v4 = vpack.i.bf16 %v6482_v45, %v6477_v51 }
 0x24b   : > { %4460 = vrot.lane.b32.xlu0 %v4459_v19, %s4588_s27  ;;  %v1691_v19 = vadd.f32 %v7909_v49, %v7908_v8  ;;  %v2115_v8 = vadd.s32 1, %v2099_v16 }
 0x24d   : > { %1995 = vrot.lane.b32.xlu1 %v6468_v59, %s4588_s27  ;;  %v1967_v3 = vadd.f32 %v1691_v19, %v7910_v29 }
 0x253   : > { %4475 = vrot.lane.b32.xlu0 %v4474_v4, %s4588_s27  ;;  %s3738_s27 = sshll.u32 %s486_s24, 4  ;;  %s3739_s27 = int_to_ptr.vmem [resolvable:$true] %s3738_s27 }
 0x277   : > { %v6487_v44 = vpop.permute.xlu2 %4430 }
 0x278   : > { %v4433_v25 = vunpack.i.h.bf16 %v6487_v44  ;;  %v4432_v47 = vunpack.i.l.bf16 %v6487_v44 }
 0x27a   : > { %v2051_v43 = vsel %vm2043_vm3, %v4432_v47, %v4433_v25 }
 0x27b   : > { %v2083_v23 = vmax.f32 %v6438_v61, %v2051_v43 }
 0x27f   : > { %v6489_v52 = vpop.permute.xlu2 %4435 }
 0x280   : > { %v4438_v2 = vunpack.i.h.bf16 %v6489_v52  ;;  %v4437_v0 = vunpack.i.l.bf16 %v6489_v52  ;;  %v6541_v52 = vand.u32 127, %v2092_v34 }
 0x282   : > { %v2053_v57 = vsel %vm2043_vm3, %v4437_v0, %v4438_v2  ;;  %vm2103_vm4 = vcmp.eq.s32.totalorder %v6541_v52, %v2099_v16  ;;  %vm2119_vm5 = vcmp.eq.s32.totalorder %v6541_v52, %v2115_v8  ;;  %v7927_v16 = vld [vmem:[#allocation20_spill] sm:$0xff] }
 0x283   : > { %v2085_v18 = vmax.f32 %v6435_v32, %v2053_v57  ;;  %v7923_v57 = vld [vmem:[#allocation41_spill] sm:$0xff] }
 0x287   : > { %v2038_v60 = vpop.permute.xlu2 %2037 }
 0x28f   : > { %v4471_v63 = vpop.permute.xlu2 %4470 }
 0x290   : > { %v4472_v54 = vunpack.i.l.bf16 %v4471_v63  ;;  %v4473_v4 = vunpack.i.h.bf16 %v4471_v63 }
 0x29e   : > { %v2040_v24 = vpop.permute.xlu0 %2039 }
 0x29f   : > { %v2058_v56 = vsel %vm2043_vm3, %v2038_v60, %v2040_v24  ;;  %v6495_v7 = vpop.permute.xlu1 %4440  ;;  %v7918_v60 = vld [vmem:[#allocation45_spill] sm:$0xff] }
 0x2a0   : > { %v2090_v28 = vmax.f32 %v1967_v3, %v2058_v56  ;;  %v4443_v62 = vunpack.i.h.bf16 %v6495_v7  ;;  %v4442_v37 = vunpack.i.l.bf16 %v6495_v7  ;;  %v2094_v3 = vadd.s32 8, %v6514_v46  ;;  %v7921_v7 = vld [vmem:[#allocation24_spill] sm:$0xff] }
 0x2a2   : > { %4097 = vmatpush.msk.msra.mxu1 %vm1556_vm2, %v2090_v28  ;;  %4107 = vmatpush.msk.msra.mxu0 %vm1556_vm2, %v2090_v28  ;;  %v2055_v30 = vsel %vm2043_vm3, %v4442_v37, %v4443_v62  ;;  %v7920_v28 = vld [vmem:[#allocation26_spill] sm:$0xff] }
 0x2a7   : > { %v4446_v1 = vpop.permute.xlu1 %4445 }
 0x2a8   : > { %v4448_v17 = vunpack.i.h.bf16 %v4446_v1  ;;  %v4447_v48 = vunpack.i.l.bf16 %v4446_v1  ;;  %v1955_v1 = vadd.f32 %v1682_v39, %v7921_v7  ;;  %v4175_v39 = vld [vmem:[%s7802_s2 + $0x3c0] sm:$0xff] }
 0x2a9   : > { %v4143_v7 = vld [vmem:[%s7802_s2 + $0x2c0] sm:$0xff] }
 0x2aa   : > { %v2057_v13 = vsel %vm2043_vm3, %v4447_v48, %v4448_v17 }
 0x2ab   : > { %v2089_v33 = vmax.f32 %v1964_v14, %v2057_v13 }
 0x2ad   : > { %v2042_v27 = vpop.permute.xlu0 %2041 }
 0x2ae   : > { %v2059_v38 = vsel %vm2043_vm3, %v2040_v24, %v2042_v27  ;;  %v7919_v24 = vld [vmem:[#allocation47_spill] sm:$0xff]  ;;  %v2100_v27 = vmul.u32 2, %v2094_v3 }
 0x2af   : > { %v2091_v35 = vmax.f32 %v6420_v5, %v2059_v38  ;;  %v6506_v10 = vpop.permute.xlu1 %4455  ;;  %v2087_v5 = vmax.f32 %v1960_v21, %v2055_v30  ;;  %v7913_v21 = vld [vmem:[#allocation53_spill] sm:$0xff]  ;;  %v1679_v56 = vadd.f32 %v7919_v24, %v7918_v60  ;;  %v7922_v38 = vld [vmem:[#allocation22_spill] sm:$0xff]  ;;  %v4589_v30 = vmov 0.0  }
 0x2b0   : > { %v4458_v9 = vunpack.i.h.bf16 %v6506_v10  ;;  %v4457_v53 = vunpack.i.l.bf16 %v6506_v10  ;;  %v1685_v36 = vadd.f32 %v7914_v31, %v7913_v21  ;;  %v2116_v43 = vadd.s32 1, %v2100_v27 }
 0x2b1   : > { %4102 = vmatpush.msk.msra.mxu3 %vm1556_vm2, %v2091_v35  ;;  %4112 = vmatpush.msk.msra.mxu2 %vm1556_vm2, %v2091_v35  ;;  %v1951_v13 = vadd.f32 %v1679_v56, %v7922_v38  ;;  %vm2104_vm7 = vcmp.eq.s32.totalorder %v6541_v52, %v2100_v27  ;;  %v2101_v31 = vmul.u32 2, %v2095_v26  ;;  %v4148_v56 = vld [vmem:[%s7802_s2 + $0x2e8] sm:$0xff]  ;;  %v4171_v27 = vld [vmem:[%s7802_s2 + $0x3a0] sm:$0xff]  ;;  %v4165_v26 = vld [vmem:[%s7802_s2 + $0x370] sm:$0xff] }
 0x2b2   : > { %v2047_v55 = vsel %vm2043_vm3, %v4457_v53, %v4458_v9  ;;  %vm2120_vm8 = vcmp.eq.s32.totalorder %v6541_v52, %v2116_v43  ;;  %v4172_v38 = vld [vmem:[%s7802_s2 + $0x3a8] sm:$0xff]  ;;  %v4134_v43 = vld [vmem:[%s7802_s2 + $0x278] sm:$0xff] }
 0x2b3   : > { %2188 = vmatpush.msra.mxu3 %v2089_v33  ;;  %2258 = vmatpush.msra.mxu2 %v2089_v33  ;;  %v2079_v49 = vmax.f32 %v6482_v45, %v2047_v55  ;;  %v6561_v33 = vsel %vm2119_vm5, 1.0, %v4589_v30  ;;  %v6597_v10 = vsel %vm2120_vm8, 1.0, %v4589_v30  ;;  %vm2105_vm9 = vcmp.eq.s32.totalorder %v6541_v52, %v2101_v31 }
 0x2b4   : > { %vm3333_vm5 = vcmask 97280  }
 0x2b5   : > { %2189 = vmatpush.msra.mxu3 %v2087_v5  ;;  %2259 = vmatpush.msra.mxu2 %v2087_v5  ;;  %v6521_v50 = vpop.permute.xlu0 %4450  ;;  %v7924_v5 = vld [vmem:[#allocation43_spill] sm:$0xff] }
 0x2b6   : > { %v4453_v41 = vunpack.i.h.bf16 %v6521_v50  ;;  %v4452_v14 = vunpack.i.l.bf16 %v6521_v50  ;;  %v1676_v9 = vadd.f32 %v7924_v5, %v7923_v57  ;;  %v7930_v50 = vld [vmem:[#allocation19_spill] sm:$0xff]  ;;  %v4168_v5 = vld [vmem:[%s7802_s2 + $0x388] sm:$0xff] }
 0x2b7   : > { %2190 = vmatpush.msra.mxu3 %v2085_v18  ;;  %2260 = vmatpush.msra.mxu2 %v2085_v18  ;;  %v4466_v6 = vpop.permute.xlu1 %4465  ;;  %v1673_v18 = vadd.f32 %v7926_v58, %v7925_v11  ;;  %v4167_v57 = vld [vmem:[%s7802_s2 + $0x380] sm:$0xff]  ;;  %v4132_v58 = vld [vmem:[%s7802_s2 + $0x268] sm:$0xff] }
 0x2b8   : > { %v4468_v40 = vunpack.i.h.bf16 %v4466_v6  ;;  %v4467_v15 = vunpack.i.l.bf16 %v4466_v6  ;;  %v2049_v32 = vsel %vm2043_vm3, %v4452_v14, %v4453_v41  ;;  %v1947_v21 = vadd.f32 %v1676_v9, %v7927_v16  ;;  %v7929_v6 = vld [vmem:[#allocation36_spill] sm:$0xff]  ;;  %v4133_v9 = vld [vmem:[%s7802_s2 + $0x270] sm:$0xff]  ;;  %v4130_v16 = vld [vmem:[%s7802_s2 + $0x258] sm:$0xff] }
 0x2b9   : > { %2191 = vmatpush.msra.mxu3 %v2083_v23  ;;  %2261 = vmatpush.msra.mxu2 %v2083_v23  ;;  %v2081_v61 = vmax.f32 %v6477_v51, %v2049_v32  ;;  %v1959_v51 = vadd.f32 %v1685_v36, %v7920_v28  ;;  %v7928_v36 = vld [vmem:[#allocation34_spill] sm:$0xff]  ;;  %v1943_v22 = vadd.f32 %v1673_v18, %v7930_v50  ;;  %v4131_v11 = vld [vmem:[%s7802_s2 + $0x260] sm:$0xff] }
 0x2ba   : > { %v2056_v44 = vsel %vm2043_vm3, %v4467_v15, %v4447_v48  ;;  %v2054_v29 = vsel %vm2043_vm3, %v4468_v40, %v4442_v37  ;;  %v2052_v48 = vsel %vm2043_vm3, %v4472_v54, %v4437_v0  ;;  %v2050_v37 = vsel %vm2043_vm3, %v4473_v4, %v4432_v47  ;;  %v7931_v4 = vld [vmem:[#allocation17_spill] sm:$0xff]  ;;  %v4163_v18 = vld [vmem:[%s7802_s2 + $0x360] sm:$0xff] }
 0x2bb   : > { %2192 = vmatpush.msra.mxu3 %v2081_v61  ;;  %2262 = vmatpush.msra.mxu2 %v2081_v61  ;;  %v2088_v19 = vmax.f32 %v1963_v42, %v2056_v44  ;;  %v2086_v45 = vmax.f32 %v1959_v51, %v2054_v29  ;;  %v2084_v34 = vmax.f32 %v1955_v1, %v2052_v48  ;;  %v6558_v47 = vsel %vm2103_vm4, 1.0, %v4589_v30  ;;  %v4145_v28 = vld [vmem:[%s7802_s2 + $0x2d0] sm:$0xff]  ;;  %v4146_v51 = vld [vmem:[%s7802_s2 + $0x2d8] sm:$0xff]  ;;  %v4144_v1 = vld [vmem:[%s7802_s2 + $0x2c8] sm:$0xff] }
 0x2bc   : > { %v2082_v25 = vmax.f32 %v1951_v13, %v2050_v37  ;;  %v1670_v23 = vadd.f32 %v7929_v6, %v7928_v36  ;;  %v2117_v54 = vadd.s32 1, %v2101_v31  ;;  %v2096_v61 = vadd.s32 24, %v6514_v46  ;;  %v4142_v48 = vld [vmem:[%s7802_s2 + $0x2b8] sm:$0xff]  ;;  %v4140_v37 = vld [vmem:[%s7802_s2 + $0x2a8] sm:$0xff]  ;;  %v4137_v13 = vld [vmem:[%s7802_s2 + $0x290] sm:$0xff] }
 0x2bd   : > { %2193 = vmatpush.msra.mxu3 %v2079_v49  ;;  %2263 = vmatpush.msra.mxu2 %v2079_v49  ;;  %v4461_v17 = vpop.permute.xlu0 %4460  ;;  %v4091_v46 = vsel %vm2105_vm9, 1.0, %v4589_v30  ;;  %v4162_v31 = vld [vmem:[%s7802_s2 + $0x358] sm:$0xff]  ;;  %v4127_v36 = vld [vmem:[%s7802_s2 + $0x240] sm:$0xff]  ;;  %v4128_v6 = vld [vmem:[%s7802_s2 + $0x248] sm:$0xff]  ;;  %vm3326_vm4 = vcmask 261120   ;;  %vm3406_vm9 = vcmask 783360  }
 0x2be   : > { %v4463_v62 = vunpack.i.h.bf16 %v4461_v17  ;;  %v4462_v2 = vunpack.i.l.bf16 %v4461_v17  ;;  %2159 = vmatpush.msra.mxu1 %v2088_v19  ;;  %2229 = vmatpush.msra.mxu0 %v2088_v19  ;;  %v1939_v44 = vadd.f32 %v1670_v23, %v7931_v4  ;;  %vm2121_vm10 = vcmp.eq.s32.totalorder %v6541_v52, %v2117_v54  ;;  %v4141_v17 = vld [vmem:[%s7802_s2 + $0x2b0] sm:$0xff]  ;;  %v4159_v23 = vld [vmem:[%s7802_s2 + $0x340] sm:$0xff] }
 0x2bf   : > { %v1996_v40 = vpop.permute.xlu1 %1995  ;;  %v2102_v19 = vmul.u32 2, %v2096_v61  ;;  %v4095_v29 = vsel %vm2121_vm10, 1.0, %v4589_v30  ;;  %v4155_v50 = vld [vmem:[%s7802_s2 + $0x320] sm:$0xff]  ;;  %v4153_v54 = vld [vmem:[%s7802_s2 + $0x310] sm:$0xff]  ;;  %v4154_v61 = vld [vmem:[%s7802_s2 + $0x318] sm:$0xff] }
 0x2c0   : > { %2160 = vmatpush.msra.mxu1 %v2086_v45  ;;  %2230 = vmatpush.msra.mxu0 %v2086_v45  ;;  %v2045_v35 = vsel %vm2043_vm3, %v4462_v2, %v4463_v62  ;;  %v2044_v42 = vsel %vm2043_vm3, %v1996_v40, %v4462_v2  ;;  %v4173_v62 = vld [vmem:[%s7802_s2 + $0x3b0] sm:$0xff]  ;;  %v4174_v2 = vld [vmem:[%s7802_s2 + $0x3b8] sm:$0xff]  ;;  %v4139_v45 = vld [vmem:[%s7802_s2 + $0x2a0] sm:$0xff] }
 0x2c1   : > { %v2077_v0 = vmax.f32 %v6468_v59, %v2045_v35  ;;  %v2076_v49 = vmax.f32 %v1939_v44, %v2044_v42  ;;  %v2118_v3 = vadd.s32 1, %v2102_v19  ;;  %vm2106_vm11 = vcmp.eq.s32.totalorder %v6541_v52, %v2102_v19  ;;  %v4169_v35 = vld [vmem:[%s7802_s2 + $0x390] sm:$0xff]  ;;  %v4160_v40 = vld [vmem:[%s7802_s2 + $0x348] sm:$0xff]  ;;  %v4122_v42 = vld [vmem:[%s7802_s2 + $0x218] sm:$0xff] }
 0x2c2   : > { %2161 = vmatpush.msra.mxu1 %v2084_v34  ;;  %2231 = vmatpush.msra.mxu0 %v2084_v34  ;;  %v4092_v60 = vsel %vm2106_vm11, 1.0, %v4589_v30  ;;  %v4138_v34 = vld [vmem:[%s7802_s2 + $0x298] sm:$0xff]  ;;  %v4119_v4 = vld [vmem:[%s7802_s2 + $0x200] sm:$0xff]  ;;  %v4120_v44 = vld [vmem:[%s7802_s2 + $0x208] sm:$0xff]  ;;  %vm3435_vm11 = vcmask 785408  }
 0x2c3   : > { %2194 = vmatpush.msra.mxu3 %v2077_v0  ;;  %2264 = vmatpush.msra.mxu2 %v2077_v0  ;;  %vm2122_vm12 = vcmp.eq.s32.totalorder %v6541_v52, %v2118_v3  ;;  %v4147_v52 = vld [vmem:[%s7802_s2 + $0x2e0] sm:$0xff]  ;;  %v4170_v0 = vld [vmem:[%s7802_s2 + $0x398] sm:$0xff]  ;;  %v4117_v19 = vld [vmem:[%s7802_s2 + $0x1f0] sm:$0xff] }
 0x2c4   : > { %2162 = vmatpush.msra.mxu1 %v2082_v25  ;;  %2232 = vmatpush.msra.mxu0 %v2082_v25  ;;  %v4096_v24 = vsel %vm2122_vm12, 1.0, %v4589_v30  ;;  %v4135_v25 = vld [vmem:[%s7802_s2 + $0x280] sm:$0xff]  ;;  %v4150_v3 = vld [vmem:[%s7802_s2 + $0x2f8] sm:$0xff]  ;;  %vm3525_vm12 = vcmask 31744  }
 0x2c5   : > { %4103 = vmatmul.msk.f32.vlgmr.msra.gmra.mxu3 %vm2131_vm6, %v6558_v47  ;;  %4113 = vmatmul.msk.f32.vlgmr.msra.gmra.mxu2 %vm2131_vm6, %v6561_v33  ;;  %v4476_v59 = vpop.permute.xlu0 %4475 }
 0x2c6   : > { %v4478_v63 = vunpack.i.h.bf16 %v4476_v59  ;;  %v4477_v41 = vunpack.i.l.bf16 %v4476_v59  ;;  %2519 = vmatpush.msrb.mxu3 %v4177_v20  ;;  %2577 = vmatpush.msrb.mxu2 %v4178_v12  ;;  %v4166_v59 = vld [vmem:[%s7802_s2 + $0x378] sm:$0xff]  ;;  %v4123_v12 = vld [vmem:[%s7802_s2 + $0x220] sm:$0xff] }
 0x2c7   : > { %v4158_v20 = vld [vmem:[%s7802_s2 + $0x338] sm:$0xff] }
 0x2c8   : > { %v2048_v15 = vsel %vm2043_vm3, %v4477_v41, %v4452_v14  ;;  %v2046_v55 = vsel %vm2043_vm3, %v4478_v63, %v4457_v53  ;;  %v6594_v14 = vsel %vm2104_vm7, 1.0, %v4589_v30  ;;  %v4176_v53 = vld [vmem:[%s7802_s2 + $0x3c8] sm:$0xff]  ;;  %2520 = vmatpush.msrb.mxu3 %v4175_v39  ;;  %v4129_v41 = vld [vmem:[%s7802_s2 + $0x250] sm:$0xff]  ;;  %vm3060_vm3 = vcmask 914432  }
 0x2c9   : > { %v2080_v32 = vmax.f32 %v1947_v21, %v2048_v15  ;;  %v2078_v8 = vmax.f32 %v1943_v22, %v2046_v55  ;;  %2578 = vmatpush.msrb.mxu2 %v4176_v53  ;;  %v4136_v30 = vld [vmem:[%s7802_s2 + $0x288] sm:$0xff]  ;;  %v4161_v21 = vld [vmem:[%s7802_s2 + $0x350] sm:$0xff] }
 0x2ca   : > { %2521 = vmatpush.msrb.mxu3 %v4173_v62  ;;  %v4164_v63 = vld [vmem:[%s7802_s2 + $0x368] sm:$0xff]  ;;  %v4125_v15 = vld [vmem:[%s7802_s2 + $0x230] sm:$0xff]  ;;  %v2357_v62 = vld [vmem:[%s7802_s2 + $0xf8] sm:$0xff] }
 0x2cb   : > { %2163 = vmatpush.msra.mxu1 %v2080_v32  ;;  %2233 = vmatpush.msra.mxu0 %v2080_v32  ;;  %v4126_v32 = vld [vmem:[%s7802_s2 + $0x238] sm:$0xff]  ;;  %v4157_v55 = vld [vmem:[%s7802_s2 + $0x330] sm:$0xff]  ;;  %v4124_v39 = vld [vmem:[%s7802_s2 + $0x228] sm:$0xff] }
 0x2cc   : > { %2579 = vmatpush.msrb.mxu2 %v4174_v2  ;;  %2522 = vmatpush.msrb.mxu3 %v4171_v27  ;;  %v4156_v22 = vld [vmem:[%s7802_s2 + $0x328] sm:$0xff]  ;;  %v4121_v53 = vld [vmem:[%s7802_s2 + $0x210] sm:$0xff] }
 0x2cd   : > { %4104 = vmatmul.msk.f32.gmra.mxu3 %vm2131_vm6, %v6594_v14  ;;  %4114 = vmatmul.msk.f32.gmra.mxu2 %vm2131_vm6, %v6597_v10  ;;  %v2380_v27 = vld [vmem:[%s7802_s2 + $0x1b0] sm:$0xff] }
 0x2ce   : > { %2164 = vmatpush.msra.mxu1 %v2078_v8  ;;  %2234 = vmatpush.msra.mxu0 %v2078_v8  ;;  %v4151_v8 = vld [vmem:[%s7802_s2 + $0x300] sm:$0xff] }
 0x2cf   : > { %2580 = vmatpush.msrb.mxu2 %v4172_v38  ;;  %2523 = vmatpush.msrb.mxu3 %v4169_v35  ;;  %v2355_v38 = vld [vmem:[%s7802_s2 + $0xe8] sm:$0xff]  ;;  %v2352_v35 = vld [vmem:[%s7802_s2 + $0xd0] sm:$0xff] }
 0x2d0   : > { %2165 = vmatpush.msra.mxu1 %v2076_v49  ;;  %2235 = vmatpush.msra.mxu0 %v2076_v49  ;;  %v4152_v49 = vld [vmem:[%s7802_s2 + $0x308] sm:$0xff] }
 0x2d1   : > { %4098 = vmatmul.msk.f32.vlgmr.msra.gmra.mxu1 %vm2131_vm6, %v6558_v47  ;;  %4108 = vmatmul.msk.f32.vlgmr.msra.gmra.mxu0 %vm2131_vm6, %v6561_v33 }
 0x2d2   : > { %2489 = vmatpush.msrb.mxu1 %v4147_v52  ;;  %2547 = vmatpush.msrb.mxu0 %v4148_v56  ;;  %v2387_v52 = vld [vmem:[%s7802_s2 + $0x1e8] sm:$0xff]  ;;  %v2384_v56 = vld [vmem:[%s7802_s2 + $0x1d0] sm:$0xff] }
 0x2d3   : > { %2581 = vmatpush.msrb.mxu2 %v4170_v0  ;;  %2524 = vmatpush.msrb.mxu3 %v4167_v57  ;;  %v2378_v0 = vld [vmem:[%s7802_s2 + $0x1a0] sm:$0xff] }
 0x2d4   : > { %2490 = vmatpush.msrb.mxu1 %v4145_v28  ;;  %2548 = vmatpush.msrb.mxu0 %v4146_v51  ;;  %v2385_v28 = vld [vmem:[%s7802_s2 + $0x1d8] sm:$0xff] }
 0x2d5   : > { %4105 = vmatmul.msk.f32.gmra.mxu3 %vm2131_vm6, %v4091_v46  ;;  %4115 = vmatmul.msk.f32.gmra.mxu2 %vm2131_vm6, %v4095_v29 }
 0x2d6   : > { %2491 = vmatpush.msrb.mxu1 %v4143_v7  ;;  %2549 = vmatpush.msrb.mxu0 %v4144_v1 }
 0x2d7   : > { %2582 = vmatpush.msrb.mxu2 %v4168_v5  ;;  %2525 = vmatpush.msrb.mxu3 %v4165_v26  ;;  %v2379_v5 = vld [vmem:[%s7802_s2 + $0x1a8] sm:$0xff] }
 0x2d8   : > { %2492 = vmatpush.msrb.mxu1 %v4141_v17  ;;  %2550 = vmatpush.msrb.mxu0 %v4142_v48  ;;  %v2356_v17 = vld [vmem:[%s7802_s2 + $0xf0] sm:$0xff]  ;;  %v2382_v48 = vld [vmem:[%s7802_s2 + $0x1c0] sm:$0xff] }
 0x2d9   : > { %4099 = vmatmul.msk.f32.gmra.mxu1 %vm2131_vm6, %v6594_v14  ;;  %4109 = vmatmul.msk.f32.gmra.mxu0 %vm2131_vm6, %v6597_v10 }
 0x2da   : > { %2493 = vmatpush.msrb.mxu1 %v4139_v45  ;;  %2551 = vmatpush.msrb.mxu0 %v4140_v37  ;;  %v2383_v45 = vld [vmem:[%s7802_s2 + $0x1c8] sm:$0xff]  ;;  %v2354_v37 = vld [vmem:[%s7802_s2 + $0xe0] sm:$0xff] }
 0x2db   : > { %2583 = vmatpush.msrb.mxu2 %v4166_v59  ;;  %2526 = vmatpush.msrb.mxu3 %v4163_v18  ;;  %v2348_v18 = vld [vmem:[%s7802_s2 + $0xb0] sm:$0xff] }
 0x2dc   : > { %2494 = vmatpush.msrb.mxu1 %v4137_v13  ;;  %2552 = vmatpush.msrb.mxu0 %v4138_v34  ;;  %v2381_v34 = vld [vmem:[%s7802_s2 + $0x1b8] sm:$0xff] }
 0x2dd   : > { %4106 = vmatmul.msk.f32.gmra.mxu3 %vm2131_vm6, %v4092_v60  ;;  %4116 = vmatmul.msk.f32.gmra.mxu2 %vm2131_vm6, %v4096_v24 }
 0x2de   : > { %2495 = vmatpush.msrb.mxu1 %v4135_v25  ;;  %2553 = vmatpush.msrb.mxu0 %v4136_v30  ;;  %v2353_v25 = vld [vmem:[%s7802_s2 + $0xd8] sm:$0xff] }
 0x2df   : > { %2584 = vmatpush.msrb.mxu2 %v4164_v63  ;;  %2527 = vmatpush.msrb.mxu3 %v4161_v21  ;;  %v2375_v21 = vld [vmem:[%s7802_s2 + $0x188] sm:$0xff] }
 0x2e0   : > { %2496 = vmatpush.msrb.mxu1 %v4133_v9  ;;  %2554 = vmatpush.msrb.mxu0 %v4134_v43  ;;  %v2350_v9 = vld [vmem:[%s7802_s2 + $0xc0] sm:$0xff]  ;;  %v2376_v43 = vld [vmem:[%s7802_s2 + $0x190] sm:$0xff] }
 0x2e1   : > { %4100 = vmatmul.msk.f32.gmra.mxu1 %vm2131_vm6, %v4091_v46  ;;  %4110 = vmatmul.msk.f32.gmra.mxu0 %vm2131_vm6, %v4095_v29  ;;  %v4118_v46 = vld [vmem:[%s7802_s2 + $0x1f8] sm:$0xff]  ;;  %v4149_v29 = vld [vmem:[%s7802_s2 + $0x2f0] sm:$0xff] }
 0x2e2   : > { %2497 = vmatpush.msrb.mxu1 %v4131_v11  ;;  %2555 = vmatpush.msrb.mxu0 %v4132_v58  ;;  %v2351_v11 = vld [vmem:[%s7802_s2 + $0xc8] sm:$0xff]  ;;  %v2377_v58 = vld [vmem:[%s7802_s2 + $0x198] sm:$0xff] }
 0x2e3   : > { %2585 = vmatpush.msrb.mxu2 %v4162_v31  ;;  %2528 = vmatpush.msrb.mxu3 %v4159_v23 }
 0x2e4   : > { %2498 = vmatpush.msrb.mxu1 %v4129_v41  ;;  %2556 = vmatpush.msrb.mxu0 %v4130_v16  ;;  %v2374_v41 = vld [vmem:[%s7802_s2 + $0x180] sm:$0xff]  ;;  %v2349_v16 = vld [vmem:[%s7802_s2 + $0xb8] sm:$0xff] }
 0x2e5   : > { %2586 = vmatpush.msrb.mxu2 %v4160_v40  ;;  %2529 = vmatpush.msrb.mxu3 %v4157_v55  ;;  %v2346_v40 = vld [vmem:[%s7802_s2 + $0xa0] sm:$0xff] }
 0x2e6   : > { %2499 = vmatpush.msrb.mxu1 %v4127_v36  ;;  %2557 = vmatpush.msrb.mxu0 %v4128_v6 }
 0x2e7   : > { %2587 = vmatpush.msrb.mxu2 %v4158_v20  ;;  %2530 = vmatpush.msrb.mxu3 %v4155_v50  ;;  %v2370_v50 = vld [vmem:[%s7802_s2 + $0x160] sm:$0xff] }
 0x2e8   : > { %2500 = vmatpush.msrb.mxu1 %v4125_v15  ;;  %2558 = vmatpush.msrb.mxu0 %v4126_v32  ;;  %v2372_v15 = vld [vmem:[%s7802_s2 + $0x170] sm:$0xff]  ;;  %v2347_v32 = vld [vmem:[%s7802_s2 + $0xa8] sm:$0xff] }
 0x2e9   : > { %4101 = vmatmul.msk.f32.gmra.mxu1 %vm2131_vm6, %v4092_v60  ;;  %4111 = vmatmul.msk.f32.gmra.mxu0 %vm2131_vm6, %v4096_v24  ;;  %v2286_v60 = vld [vmem:[%s7806_s6] sm:$0x3] }
 0x2ea   : > { %2501 = vmatpush.msrb.mxu1 %v4123_v12  ;;  %2559 = vmatpush.msrb.mxu0 %v4124_v39  ;;  %v2386_v24 = vld [vmem:[%s7802_s2 + $0x1e0] sm:$0xff]  ;;  %v6822_v51 = vperm.slane %v2286_v60, 1  ;;  %v6858_v57 = vperm.slane %v2286_v60, 0  ;;  %v2373_v12 = vld [vmem:[%s7802_s2 + $0x178] sm:$0xff]  ;;  %v2344_v39 = vld [vmem:[%s7802_s2 + $0x90] sm:$0xff] }
 0x2eb   : > { %2588 = vmatpush.msrb.mxu2 %v4156_v22  ;;  %2531 = vmatpush.msrb.mxu3 %v4153_v54  ;;  %v2345_v22 = vld [vmem:[%s7802_s2 + $0x98] sm:$0xff]  ;;  %v2366_v60 = vld [vmem:[%s7802_s2 + $0x140] sm:$0xff] }
 0x2ec   : > { %2502 = vmatpush.msrb.mxu1 %v4121_v53  ;;  %2560 = vmatpush.msrb.mxu0 %v4122_v42  ;;  %v2371_v53 = vld [vmem:[%s7802_s2 + $0x168] sm:$0xff]  ;;  %v2342_v42 = vld [vmem:[%s7802_s2 + $0x80] sm:$0xff] }
 0x2ed   : > { %2589 = vmatpush.msrb.mxu2 %v4154_v61  ;;  %2532 = vmatpush.msrb.mxu3 %v4151_v8  ;;  %v2368_v61 = vld [vmem:[%s7802_s2 + $0x150] sm:$0xff] }
 0x2ee   : > { %2503 = vmatpush.msrb.mxu1 %v4119_v4  ;;  %2561 = vmatpush.msrb.mxu0 %v4120_v44  ;;  %v2343_v4 = vld [vmem:[%s7802_s2 + $0x88] sm:$0xff]  ;;  %v2369_v44 = vld [vmem:[%s7802_s2 + $0x158] sm:$0xff] }
 0x2ef   : > { %2590 = vmatpush.msrb.mxu2 %v4152_v49  ;;  %2533 = vmatpush.msrb.mxu3 %v4149_v29 }
 0x2f0   : > { %2504 = vmatpush.msrb.mxu1 %v4117_v19  ;;  %2562 = vmatpush.msrb.mxu0 %v4118_v46 }
 0x2f1   : > { %2591 = vmatpush.msrb.mxu2 %v4150_v3  ;;  %2645 = vmatpush.msra.mxu3 %v2386_v24  ;;  %v2340_v3 = vld [vmem:[%s7802_s2 + $0x70] sm:$0xff]  ;;  %v2341_v24 = vld [vmem:[%s7802_s2 + $0x78] sm:$0xff] }
 0x2f2   : > { %2615 = vmatpush.msra.mxu1 %v2356_v17  ;;  %2673 = vmatpush.msra.mxu0 %v2357_v62  ;;  %v2364_v17 = vld [vmem:[%s7802_s2 + $0x130] sm:$0xff] }
 0x2f3   : > { %2703 = vmatpush.msra.mxu2 %v2387_v52  ;;  %2646 = vmatpush.msra.mxu3 %v2384_v56 }
 0x2f4   : > { %2616 = vmatpush.msra.mxu1 %v2354_v37  ;;  %2674 = vmatpush.msra.mxu0 %v2355_v38  ;;  %v2336_v37 = vld [vmem:[%s7802_s2 + $0x50] sm:$0xff] }
 0x2f5   : > { %2704 = vmatpush.msra.mxu2 %v2385_v28  ;;  %2647 = vmatpush.msra.mxu3 %v2382_v48  ;;  %v2367_v28 = vld [vmem:[%s7802_s2 + $0x148] sm:$0xff] }
 0x2f6   : > { %2617 = vmatpush.msra.mxu1 %v2352_v35  ;;  %2675 = vmatpush.msra.mxu0 %v2353_v25  ;;  %v2339_v48 = vld [vmem:[%s7802_s2 + $0x68] sm:$0xff] }
 0x2f7   : > { %2705 = vmatpush.msra.mxu2 %v2383_v45  ;;  %2648 = vmatpush.msra.mxu3 %v2380_v27  ;;  %v2365_v45 = vld [vmem:[%s7802_s2 + $0x138] sm:$0xff]  ;;  %v2362_v27 = vld [vmem:[%s7802_s2 + $0x120] sm:$0xff] }
 0x2f8   : > { %2618 = vmatpush.msra.mxu1 %v2350_v9  ;;  %2676 = vmatpush.msra.mxu0 %v2351_v11  ;;  %v2361_v11 = vld [vmem:[%s7802_s2 + $0x118] sm:$0xff] }
 0x2f9   : > { %2706 = vmatpush.msra.mxu2 %v2381_v34  ;;  %2649 = vmatpush.msra.mxu3 %v2378_v0  ;;  %v2363_v34 = vld [vmem:[%s7802_s2 + $0x128] sm:$0xff] }
 0x2fa   : > { %2619 = vmatpush.msra.mxu1 %v2348_v18  ;;  %2677 = vmatpush.msra.mxu0 %v2349_v16 }
 0x2fb   : > { %2707 = vmatpush.msra.mxu2 %v2379_v5  ;;  %2650 = vmatpush.msra.mxu3 %v2376_v43  ;;  %v2360_v5 = vld [vmem:[%s7802_s2 + $0x110] sm:$0xff] }
 0x2fc   : > { %2620 = vmatpush.msra.mxu1 %v2346_v40  ;;  %2678 = vmatpush.msra.mxu0 %v2347_v32  ;;  %v2359_v32 = vld [vmem:[%s7802_s2 + $0x108] sm:$0xff] }
 0x2fd   : > { %2708 = vmatpush.msra.mxu2 %v2377_v58  ;;  %2651 = vmatpush.msra.mxu3 %v2374_v41 }
 0x2fe   : > { %2621 = vmatpush.msra.mxu1 %v2344_v39  ;;  %2679 = vmatpush.msra.mxu0 %v2345_v22  ;;  %v4255_v22 = vld [vmem:[%s7802_s2 + $0x5c0] sm:$0xff] }
 0x2ff   : > { %2709 = vmatpush.msra.mxu2 %v2375_v21  ;;  %2652 = vmatpush.msra.mxu3 %v2372_v15  ;;  %v2333_v15 = vld [vmem:[%s7802_s2 + $0x38] sm:$0xff] }
 0x300   : > { %2622 = vmatpush.msra.mxu1 %v2342_v42  ;;  %2680 = vmatpush.msra.mxu0 %v2343_v4  ;;  %v4253_v42 = vld [vmem:[%s7802_s2 + $0x5b0] sm:$0xff] }
 0x301   : > { %2710 = vmatpush.msra.mxu2 %v2373_v12  ;;  %2653 = vmatpush.msra.mxu3 %v2370_v50  ;;  %v2331_v50 = vld [vmem:[%s7802_s2 + $0x28] sm:$0xff] }
 0x302   : > { %2623 = vmatpush.msra.mxu1 %v2340_v3  ;;  %2681 = vmatpush.msra.mxu0 %v2341_v24 }
 0x303   : > { %2711 = vmatpush.msra.mxu2 %v2371_v53  ;;  %2654 = vmatpush.msra.mxu3 %v2368_v61  ;;  %v4256_v53 = vld [vmem:[%s7802_s2 + $0x5c8] sm:$0xff] }
 0x304   : > { %2682 = vmatpush.msra.mxu0 %v2339_v48 }
 0x305   : > { %2712 = vmatpush.msra.mxu2 %v2369_v44  ;;  %2655 = vmatpush.msra.mxu3 %v2366_v60 }
 0x307   : > { %2713 = vmatpush.msra.mxu2 %v2367_v28  ;;  %2656 = vmatpush.msra.mxu3 %v2364_v17  ;;  %v2327_v28 = vld [vmem:[%s7802_s2 + $0x8] sm:$0xff] }
 0x309   : > { %2714 = vmatpush.msra.mxu2 %v2365_v45  ;;  %2657 = vmatpush.msra.mxu3 %v2362_v27  ;;  %v4251_v45 = vld [vmem:[%s7802_s2 + $0x5a0] sm:$0xff]  ;;  %v4252_v27 = vld [vmem:[%s7802_s2 + $0x5a8] sm:$0xff] }
 0x30b   : > { %2715 = vmatpush.msra.mxu2 %v2363_v34  ;;  %2658 = vmatpush.msra.mxu3 %v2360_v5  ;;  %v4249_v34 = vld [vmem:[%s7802_s2 + $0x590] sm:$0xff] }
 0x30d   : > { %2716 = vmatpush.msra.mxu2 %v2361_v11  ;;  %v4219_v11 = vld [vmem:[%s7802_s2 + $0x4a0] sm:$0xff] }
 0x30f   : > { %2717 = vmatpush.msra.mxu2 %v2359_v32  ;;  %v4216_v32 = vld [vmem:[%s7802_s2 + $0x488] sm:$0xff] }
 0x348   : > { %v2196_v7 = vpop.f32.mrf.mxu3  ;;  %v2266_v1 = vpop.f32.mrf.mxu2 }
 0x349   : > { %v2279_v2 = vmax.f32 %v2196_v7, %v2266_v1  ;;  %v2338_v1 = vld [vmem:[%s7802_s2 + $0x60] sm:$0xff] }
 0x34a   : > { %2624 = vmatpush.msra.mxu1 %v2338_v1 }
 0x34b   : > { %v2293_v13 = vadd.f32 %v6822_v51, %v2279_v2 }
 0x34c   : > { %2625 = vmatpush.msra.mxu1 %v2336_v37 }
 0x34d   : > { %v2301_v30 = vmax.f32 %v2293_v13, 0.0  ;;  %v2337_v13 = vld [vmem:[%s7802_s2 + $0x58] sm:$0xff] }
 0x34e   : > { %v2167_v26 = vpop.f32.mrf.mxu1  ;;  %v2237_v59 = vpop.f32.mrf.mxu0  ;;  %2683 = vmatpush.msra.mxu0 %v2337_v13  ;;  %v4223_v13 = vld [vmem:[%s7802_s2 + $0x4c0] sm:$0xff] }
 0x34f   : > { %2310 = vst.msk [vmem:[#allocation2 + $0x8] sm:$0xff] %vm2309_vm13, %v2301_v30  ;;  %v2278_v63 = vmax.f32 %v2167_v26, %v2237_v59  ;;  %v2334_v30 = vld [vmem:[%s7802_s2 + $0x40] sm:$0xff]  ;;  %v2335_v59 = vld [vmem:[%s7802_s2 + $0x48] sm:$0xff] }
 0x350   : > { %v2199_v31 = vpop.f32.mrf.mxu3  ;;  %v2269_v36 = vpop.f32.mrf.mxu2  ;;  %2626 = vmatpush.msra.mxu1 %v2334_v30  ;;  %2684 = vmatpush.msra.mxu0 %v2335_v59  ;;  %v4247_v30 = vld [vmem:[%s7802_s2 + $0x580] sm:$0xff] }
 0x351   : > { %v2292_v6 = vadd.f32 %v6858_v57, %v2278_v63  ;;  %v2281_v23 = vmax.f32 %v2199_v31, %v2269_v36  ;;  %v2332_v31 = vld [vmem:[%s7802_s2 + $0x30] sm:$0xff]  ;;  %v2358_v36 = vld [vmem:[%s7802_s2 + $0x100] sm:$0xff] }
 0x352   : > { %2627 = vmatpush.msra.mxu1 %v2332_v31  ;;  %2659 = vmatpush.msra.mxu3 %v2358_v36  ;;  %v4218_v31 = vld [vmem:[%s7802_s2 + $0x498] sm:$0xff]  ;;  %v4244_v36 = vld [vmem:[%s7802_s2 + $0x568] sm:$0xff] }
 0x353   : > { %v6898_v55 = vmax.f32 %v2292_v6, 0.0  ;;  %v2295_v20 = vadd.f32 %v6822_v51, %v2281_v23  ;;  %2685 = vmatpush.msra.mxu0 %v2333_v15 }
 0x355   : > { %2308 = vst [vmem:[#allocation2] sm:$0xff] %v6898_v55  ;;  %v2303_v54 = vmax.f32 %v2295_v20, 0.0  ;;  %v2330_v20 = vld [vmem:[%s7802_s2 + $0x20] sm:$0xff]  ;;  %2686 = vmatpush.msra.mxu0 %v2331_v50  ;;  %v4213_v50 = vld [vmem:[%s7802_s2 + $0x470] sm:$0xff] }
 0x356   : > { %v2170_v8 = vpop.f32.mrf.mxu1  ;;  %v2240_v49 = vpop.f32.mrf.mxu0  ;;  %v2389_v7 = vld [vmem:[#allocation2 + $0x8] sm:$0xfe]  ;;  %2628 = vmatpush.msra.mxu1 %v2330_v20  ;;  %v4242_v20 = vld [vmem:[%s7802_s2 + $0x558] sm:$0xff] }
 0x357   : > { %2312 = vst.msk [vmem:[#allocation2 + $0x18] sm:$0xff] %vm2309_vm13, %v2303_v54  ;;  %v2280_v19 = vmax.f32 %v2170_v8, %v2240_v49  ;;  %v2466_v18 = vrot.slane %v2389_v7, 1  ;;  %v4254_v7 = vld [vmem:[%s7802_s2 + $0x5b8] sm:$0xff] }
 0x358   : > { %v2202_v46 = vpop.f32.mrf.mxu3  ;;  %v2272_v29 = vpop.f32.mrf.mxu2 }
 0x359   : > { %v2294_v52 = vadd.f32 %v6858_v57, %v2280_v19  ;;  %v2283_v56 = vmax.f32 %v2202_v46, %v2272_v29  ;;  %v2329_v19 = vld [vmem:[%s7802_s2 + $0x18] sm:$0xff]  ;;  %v2326_v46 = vld [vmem:[%s7802_s2] sm:$0xff] }
 0x35a   : > { %2687 = vmatpush.msra.mxu0 %v2329_v19  ;;  %v4235_v19 = vld [vmem:[%s7802_s2 + $0x520] sm:$0xff] }
 0x35b   : > { %v6952_v62 = vmax.f32 %v2294_v52, 0.0  ;;  %v2297_v2 = vadd.f32 %v6822_v51, %v2283_v56 }
 0x35c   : > { %v2388_v38 = vld [vmem:[#allocation2] sm:$0xfe]  ;;  %2688 = vmatpush.msra.mxu0 %v2327_v28  ;;  %v2319_v28 = vld [vmem:[#allocation2 + $0x8] sm:$0xff] }
 0x35d   : > { %v2305_v35 = vmax.f32 %v2297_v2, 0.0  ;;  %v2463_v0 = vrot.slane %v2388_v38, 1  ;;  %v2464_v25 = vrot.slane %v6952_v62, 1  ;;  %v2803_v3 = vrot.slane %v6952_v62, 2  ;;  %v4225_v2 = vld [vmem:[%s7802_s2 + $0x4d0] sm:$0xff] }
 0x35e   : > { %v2173_v9 = vpop.f32.mrf.mxu1  ;;  %v2243_v43 = vpop.f32.mrf.mxu0  ;;  %v6977_v26 = vld [vmem:[#allocation2 + $0x18] sm:$0xff] }
 0x35f   : > { %2314 = vst.msk [vmem:[#allocation2 + $0x28] sm:$0xff] %vm2309_vm13, %v2305_v35  ;;  %v2282_v58 = vmax.f32 %v2173_v9, %v2243_v43  ;;  %v2467_v63 = vrot.slane %v6977_v26, 1  ;;  %v2465_v41 = vsel %vm721_vm0, %v2463_v0, %v2464_v25  ;;  %v2806_v29 = vrot.slane %v6977_v26, 2  ;;  %v4224_v35 = vld [vmem:[%s7802_s2 + $0x4c8] sm:$0xff]  ;;  %v4250_v0 = vld [vmem:[%s7802_s2 + $0x598] sm:$0xff] }
 0x360   : > { %v2205_v16 = vpop.f32.mrf.mxu3  ;;  %v2275_v21 = vpop.f32.mrf.mxu2  ;;  %2505 = vmatmul.f32.vlgmr.msrb.gmra.mxu1 %v2465_v41  ;;  %2563 = vmatmul.f32.vlgmr.msrb.gmra.mxu0 %v2465_v41  ;;  %v4222_v9 = vld [vmem:[%s7802_s2 + $0x4b8] sm:$0xff]  ;;  %v4248_v43 = vld [vmem:[%s7802_s2 + $0x588] sm:$0xff] }
 0x361   : > { %v2296_v6 = vadd.f32 %v6858_v57, %v2282_v58  ;;  %v2285_v23 = vmax.f32 %v2205_v16, %v2275_v21  ;;  %v2468_v40 = vsel %vm721_vm0, %v2466_v18, %v2467_v63  ;;  %v4245_v58 = vld [vmem:[%s7802_s2 + $0x570] sm:$0xff]  ;;  %v4246_v41 = vld [vmem:[%s7802_s2 + $0x578] sm:$0xff]  ;;  %v4243_v21 = vld [vmem:[%s7802_s2 + $0x560] sm:$0xff] }
 0x362   : > { %4179 = vmatmul.msk.f32.vlgmr.msrb.gmra.mxu3 %vm2309_vm13, %v2468_v40  ;;  %4183 = vmatmul.msk.f32.vlgmr.msrb.gmra.mxu2 %vm2309_vm13, %v2468_v40  ;;  %v4217_v16 = vld [vmem:[%s7802_s2 + $0x490] sm:$0xff] }
 0x363   : > { %v7009_v12 = vmax.f32 %v2296_v6, 0.0  ;;  %v2299_v39 = vadd.f32 %v6822_v51, %v2285_v23  ;;  %v2328_v51 = vld [vmem:[%s7802_s2 + $0x10] sm:$0xff]  ;;  %2858 = vmatpush.msrb.mxu3 %v4255_v22  ;;  %2916 = vmatpush.msrb.mxu2 %v4256_v53  ;;  %v4215_v23 = vld [vmem:[%s7802_s2 + $0x480] sm:$0xff]  ;;  %v4214_v53 = vld [vmem:[%s7802_s2 + $0x478] sm:$0xff] }
 0x364   : > { %2629 = vmatpush.msra.mxu1 %v2328_v51  ;;  %v4241_v40 = vld [vmem:[%s7802_s2 + $0x550] sm:$0xff]  ;;  %v4239_v22 = vld [vmem:[%s7802_s2 + $0x540] sm:$0xff]  ;;  %v4240_v51 = vld [vmem:[%s7802_s2 + $0x548] sm:$0xff] }
 0x365   : > { %v2307_v54 = vmax.f32 %v2299_v39, 0.0  ;;  %v2469_v61 = vrot.slane %v7009_v12, 1  ;;  %v2808_v4 = vrot.slane %v7009_v12, 2  ;;  %2859 = vmatpush.msrb.mxu3 %v4253_v42  ;;  %2917 = vmatpush.msrb.mxu2 %v4254_v7  ;;  %v4211_v42 = vld [vmem:[%s7802_s2 + $0x460] sm:$0xff]  ;;  %v4208_v7 = vld [vmem:[%s7802_s2 + $0x448] sm:$0xff] }
 0x366   : > { %v2176_v44 = vpop.f32.mrf.mxu1  ;;  %v2246_v8 = vpop.f32.mrf.mxu0  ;;  %v7029_v49 = vld [vmem:[#allocation2 + $0x28] sm:$0xff]  ;;  %2630 = vmatpush.msra.mxu1 %v2326_v46  ;;  %v4210_v46 = vld [vmem:[%s7802_s2 + $0x458] sm:$0xff] }
 0x367   : > { %2317 = vst.msk [vmem:[#allocation2 + $0x38] sm:$0x7f] %vm2316_vm14, %v2307_v54  ;;  %v2284_v60 = vmax.f32 %v2176_v44, %v2246_v8  ;;  %v2471_v24 = vrot.slane %v7029_v49, 1  ;;  %v2470_v52 = vsel %vm721_vm0, %v2464_v25, %v2469_v61  ;;  %v2810_v56 = vrot.slane %v7029_v49, 2  ;;  %2860 = vmatpush.msrb.mxu3 %v4251_v45  ;;  %2918 = vmatpush.msrb.mxu2 %v4252_v27  ;;  %v4221_v25 = vld [vmem:[%s7802_s2 + $0x4b0] sm:$0xff]  ;;  %v4238_v44 = vld [vmem:[%s7802_s2 + $0x538] sm:$0xff] }
 0x368   : > { %2508 = vmatmul.f32.gmra.mxu1 %v2470_v52  ;;  %2566 = vmatmul.f32.gmra.mxu0 %v2470_v52  ;;  %v7058_v1 = vsel %vm1556_vm2, %v2803_v3, %v2808_v4  ;;  %v4237_v54 = vld [vmem:[%s7802_s2 + $0x530] sm:$0xff]  ;;  %v4206_v45 = vld [vmem:[%s7802_s2 + $0x438] sm:$0xff]  ;;  %v4203_v27 = vld [vmem:[%s7802_s2 + $0x420] sm:$0xff]  ;;  %vm3618_vm14 = vcmask 1041408  }
 0x369   : > { %v2298_v17 = vadd.f32 %v6858_v57, %v2284_v60  ;;  %v2472_v48 = vsel %vm721_vm0, %v2467_v63, %v2471_v24  ;;  %v7073_v37 = vsel %vm1556_vm2, %v2806_v29, %v2810_v56  ;;  %v4226_v57 = vld [vmem:[%s7802_s2 + $0x4d8] sm:$0xff]  ;;  %2828 = vmatpush.msrb.mxu1 %v4225_v2  ;;  %2861 = vmatpush.msrb.mxu3 %v4249_v34  ;;  %v4220_v63 = vld [vmem:[%s7802_s2 + $0x4a8] sm:$0xff]  ;;  %v4209_v8 = vld [vmem:[%s7802_s2 + $0x450] sm:$0xff] }
 0x36a   : > { %4180 = vmatmul.msk.f32.gmra.mxu3 %vm2309_vm13, %v2472_v48  ;;  %4184 = vmatmul.msk.f32.gmra.mxu2 %vm2309_vm13, %v2472_v48  ;;  %v4236_v60 = vld [vmem:[%s7802_s2 + $0x528] sm:$0xff]  ;;  %v4233_v52 = vld [vmem:[%s7802_s2 + $0x510] sm:$0xff]  ;;  %v4231_v2 = vld [vmem:[%s7802_s2 + $0x500] sm:$0xff] }
 0x36b   : > { %v2306_v38 = vmax.f32 %v2298_v17, 0.0  ;;  %2886 = vmatpush.msrb.mxu0 %v4226_v57  ;;  %2829 = vmatpush.msrb.mxu1 %v4223_v13  ;;  %v4234_v17 = vld [vmem:[%s7802_s2 + $0x518] sm:$0xff]  ;;  %v4205_v48 = vld [vmem:[%s7802_s2 + $0x430] sm:$0xff]  ;;  %v4232_v57 = vld [vmem:[%s7802_s2 + $0x508] sm:$0xff] }
 0x36c   : > { %2919 = vmatpush.msrb.mxu2 %v4250_v0  ;;  %2862 = vmatpush.msrb.mxu3 %v4247_v30  ;;  %v4204_v13 = vld [vmem:[%s7802_s2 + $0x428] sm:$0xff]  ;;  %v4230_v34 = vld [vmem:[%s7802_s2 + $0x4f8] sm:$0xff]  ;;  %v4227_v0 = vld [vmem:[%s7802_s2 + $0x4e0] sm:$0xff] }
 0x36d   : > { %2315 = vst [vmem:[#allocation2 + $0x30] sm:$0x7f] %v2306_v38  ;;  %2887 = vmatpush.msrb.mxu0 %v4224_v35  ;;  %2830 = vmatpush.msrb.mxu1 %v4221_v25  ;;  %v4229_v38 = vld [vmem:[%s7802_s2 + $0x4f0] sm:$0xff]  ;;  %v4202_v25 = vld [vmem:[%s7802_s2 + $0x418] sm:$0xff]  ;;  %v4228_v30 = vld [vmem:[%s7802_s2 + $0x4e8] sm:$0xff] }
 0x36e   : > { %v2391_v5 = vld [vmem:[#allocation2 + $0x38] sm:$0x1f]  ;;  %2920 = vmatpush.msrb.mxu2 %v4248_v43  ;;  %2863 = vmatpush.msrb.mxu3 %v4245_v58  ;;  %v4201_v35 = vld [vmem:[%s7802_s2 + $0x410] sm:$0xff] }
 0x36f   : > { %v2475_v59 = vrot.slane %v2391_v5, 1  ;;  %2888 = vmatpush.msrb.mxu0 %v4222_v9  ;;  %2831 = vmatpush.msrb.mxu1 %v4219_v11  ;;  %v4200_v5 = vld [vmem:[%s7802_s2 + $0x408] sm:$0xff]  ;;  %v4197_v9 = vld [vmem:[%s7802_s2 + $0x3f0] sm:$0xff]  ;;  %v4198_v43 = vld [vmem:[%s7802_s2 + $0x3f8] sm:$0xff] }
 0x370   : > { %2921 = vmatpush.msrb.mxu2 %v4246_v41  ;;  %2864 = vmatpush.msrb.mxu3 %v4243_v21  ;;  %v4196_v11 = vld [vmem:[%s7802_s2 + $0x3e8] sm:$0xff]  ;;  %v2325_v58 = vld [vmem:[#allocation2 + $0x38] sm:$0xf] }
 0x371   : > { %v2476_v18 = vsel %vm721_vm0, %v2471_v24, %v2475_v59  ;;  %2889 = vmatpush.msrb.mxu0 %v4220_v63  ;;  %2832 = vmatpush.msrb.mxu1 %v4217_v16  ;;  %v4207_v24 = vld [vmem:[%s7802_s2 + $0x440] sm:$0xff] }
 0x372   : > { %4181 = vmatmul.msk.f32.gmra.mxu3 %vm2309_vm13, %v2476_v18  ;;  %4185 = vmatmul.msk.f32.gmra.mxu2 %vm2309_vm13, %v2476_v18  ;;  %v2732_v18 = vld [vmem:[#allocation2 + $0x8] sm:$0xfc]  ;;  %v2731_v16 = vld [vmem:[#allocation2] sm:$0xfc] }
 0x373   : > { %2890 = vmatpush.msrb.mxu0 %v4218_v31  ;;  %2922 = vmatpush.msrb.mxu2 %v4244_v36  ;;  %v2805_v41 = vrot.slane %v2732_v18, 2  ;;  %v2802_v31 = vrot.slane %v2731_v16, 2 }
 0x374   : > { %v2390_v6 = vld [vmem:[#allocation2 + $0x30] sm:$0x1f]  ;;  %2833 = vmatpush.msrb.mxu1 %v4215_v23  ;;  %2865 = vmatpush.msrb.mxu3 %v4241_v40 }
 0x375   : > { %v2473_v15 = vrot.slane %v2390_v6, 1  ;;  %2891 = vmatpush.msrb.mxu0 %v4216_v32  ;;  %2923 = vmatpush.msrb.mxu2 %v4242_v20  ;;  %v2324_v63 = vld [vmem:[#allocation2 + $0x30] sm:$0xf]  ;;  %v2807_v21 = vsel %vm1556_vm2, %v2805_v41, %v2806_v29  ;;  %v2804_v36 = vsel %vm1556_vm2, %v2802_v31, %v2803_v3 }
 0x376   : > { %2834 = vmatpush.msrb.mxu1 %v4213_v50  ;;  %2866 = vmatpush.msrb.mxu3 %v4239_v22  ;;  %v2733_v29 = vld [vmem:[#allocation2 + $0x30] sm:$0x3f] }
 0x377   : > { %v2474_v39 = vsel %vm721_vm0, %v2469_v61, %v2473_v15  ;;  %v4212_v61 = vld [vmem:[%s7802_s2 + $0x468] sm:$0xff]  ;;  %2892 = vmatpush.msrb.mxu0 %v4214_v53  ;;  %2924 = vmatpush.msrb.mxu2 %v4240_v51  ;;  %v2812_v3 = vrot.slane %v2733_v29, 2  ;;  %vm2994_vm0 = vcmask 1043456  }
 0x378   : > { %2511 = vmatmul.f32.gmra.mxu1 %v2474_v39  ;;  %2569 = vmatmul.f32.gmra.mxu0 %v2474_v39 }
 0x379   : > { %2835 = vmatpush.msrb.mxu1 %v4211_v42  ;;  %2867 = vmatpush.msrb.mxu3 %v4237_v54 }
 0x37a   : > { %4182 = vmatmul.msk.f32.gmra.mxu3 %vm2309_vm13, %v2475_v59  ;;  %4186 = vmatmul.msk.f32.gmra.mxu2 %vm2309_vm13, %v2475_v59  ;;  %v4195_v59 = vld [vmem:[%s7802_s2 + $0x3e0] sm:$0xff] }
 0x37b   : > { %2893 = vmatpush.msrb.mxu0 %v4212_v61  ;;  %2925 = vmatpush.msrb.mxu2 %v4238_v44 }
 0x37c   : > { %2836 = vmatpush.msrb.mxu1 %v4209_v8  ;;  %2868 = vmatpush.msrb.mxu3 %v4235_v19 }
 0x37d   : > { %2894 = vmatpush.msrb.mxu0 %v4210_v46  ;;  %2926 = vmatpush.msrb.mxu2 %v4236_v60 }
 0x37e   : > { %2837 = vmatpush.msrb.mxu1 %v4207_v24  ;;  %2869 = vmatpush.msrb.mxu3 %v4233_v52 }
 0x37f   : > { %2895 = vmatpush.msrb.mxu0 %v4208_v7  ;;  %2927 = vmatpush.msrb.mxu2 %v4234_v17 }
 0x380   : > { %2514 = vmatmul.f32.gmra.mxu1 %v2473_v15  ;;  %2572 = vmatmul.f32.gmra.mxu0 %v2473_v15 }
 0x381   : > { %2838 = vmatpush.msrb.mxu1 %v4205_v48  ;;  %2870 = vmatpush.msrb.mxu3 %v4231_v2 }
 0x382   : > { %4187 = vmatmul.msk.f32.vlgmr.msra.gmra.mxu3 %vm2309_vm13, %v2319_v28  ;;  %4191 = vmatmul.msk.f32.vlgmr.msra.gmra.mxu2 %vm2309_vm13, %v2319_v28 }
 0x383   : > { %2896 = vmatpush.msrb.mxu0 %v4206_v45  ;;  %2928 = vmatpush.msrb.mxu2 %v4232_v57 }
 0x384   : > { %2839 = vmatpush.msrb.mxu1 %v4203_v27  ;;  %2871 = vmatpush.msrb.mxu3 %v4229_v38 }
 0x385   : > { %2897 = vmatpush.msrb.mxu0 %v4204_v13  ;;  %2929 = vmatpush.msrb.mxu2 %v4230_v34 }
 0x386   : > { %2840 = vmatpush.msrb.mxu1 %v4201_v35  ;;  %2872 = vmatpush.msrb.mxu3 %v4227_v0 }
 0x387   : > { %2898 = vmatpush.msrb.mxu0 %v4202_v25  ;;  %2930 = vmatpush.msrb.mxu2 %v4228_v30 }
 0x388   : > { %2631 = vmatmul.f32.vlgmr.msra.gmra.mxu1 %v6898_v55  ;;  %2689 = vmatmul.f32.vlgmr.msra.gmra.mxu0 %v6898_v55  ;;  %v4199_v55 = vld [vmem:[%s7802_s2 + $0x400] sm:$0xff] }
 0x389   : > { %2841 = vmatpush.msrb.mxu1 %v4199_v55  ;;  %2899 = vmatpush.msrb.mxu0 %v4200_v5 }
 0x38a   : > { %4188 = vmatmul.msk.f32.gmra.mxu3 %vm2309_vm13, %v6977_v26  ;;  %4192 = vmatmul.msk.f32.gmra.mxu2 %vm2309_vm13, %v6977_v26  ;;  %v2734_v26 = vld [vmem:[#allocation2 + $0x38] sm:$0x3f] }
 0x38b   : > { %2842 = vmatpush.msrb.mxu1 %v4197_v9  ;;  %2900 = vmatpush.msrb.mxu0 %v4198_v43  ;;  %v2814_v6 = vrot.slane %v2734_v26, 2 }
 0x38d   : > { %2843 = vmatpush.msrb.mxu1 %v4195_v59  ;;  %2901 = vmatpush.msrb.mxu0 %v4196_v11 }
 0x390   : > { %2634 = vmatmul.f32.gmra.mxu1 %v6952_v62  ;;  %2692 = vmatmul.f32.gmra.mxu0 %v6952_v62  ;;  %v2815_v62 = vsel %vm1556_vm2, %v2810_v56, %v2814_v6 }
 0x392   : > { %4189 = vmatmul.msk.f32.gmra.mxu3 %vm2309_vm13, %v7029_v49  ;;  %4193 = vmatmul.msk.f32.gmra.mxu2 %vm2309_vm13, %v7029_v49 }
 0x398   : > { %2637 = vmatmul.f32.gmra.mxu1 %v7009_v12  ;;  %2695 = vmatmul.f32.gmra.mxu0 %v7009_v12 }
 0x39a   : > { %4190 = vmatmul.msk.f32.gmra.mxu3 %vm2309_vm13, %v2325_v58  ;;  %4194 = vmatmul.msk.f32.gmra.mxu2 %vm2309_vm13, %v2325_v58 }
 0x3a0   : > { %2640 = vmatmul.f32.gmra.mxu1 %v2324_v63  ;;  %2698 = vmatmul.f32.gmra.mxu0 %v2324_v63 }
 0x3a2   : > { %4257 = vmatmul.msk.f32.vlgmr.msrb.gmra.mxu3 %vm2309_vm13, %v2807_v21  ;;  %4261 = vmatmul.msk.f32.vlgmr.msrb.gmra.mxu2 %vm2309_vm13, %v2807_v21 }
 0x3a8   : > { %2844 = vmatmul.f32.vlgmr.msrb.gmra.mxu1 %v2804_v36  ;;  %2902 = vmatmul.f32.vlgmr.msrb.gmra.mxu0 %v2804_v36 }
 0x3aa   : > { %4258 = vmatmul.msk.f32.gmra.mxu3 %vm2309_vm13, %v7073_v37  ;;  %4262 = vmatmul.msk.f32.gmra.mxu2 %vm2309_vm13, %v7073_v37  ;;  %v2813_v37 = vsel %vm1556_vm2, %v2808_v4, %v2812_v3  ;;  %vm3058_vm2 = vcmask 916480  }
 0x3b0   : > { %2847 = vmatmul.f32.gmra.mxu1 %v7058_v1  ;;  %2905 = vmatmul.f32.gmra.mxu0 %v7058_v1 }
 0x3b2   : > { %4259 = vmatmul.msk.f32.gmra.mxu3 %vm2309_vm13, %v2815_v62  ;;  %4263 = vmatmul.msk.f32.gmra.mxu2 %vm2309_vm13, %v2815_v62 }
 0x3b8   : > { %2850 = vmatmul.f32.gmra.mxu1 %v2813_v37  ;;  %2908 = vmatmul.f32.gmra.mxu0 %v2813_v37 }
 0x3ba   : > { %4260 = vmatmul.msk.f32.gmra.mxu3 %vm2309_vm13, %v2814_v6  ;;  %4264 = vmatmul.msk.f32.gmra.mxu2 %vm2309_vm13, %v2814_v6  ;;  %vm3580_vm13 = vcmask 254976  }
 0x3c0   : > { %2853 = vmatmul.f32.gmra.mxu1 %v2812_v3  ;;  %2911 = vmatmul.f32.gmra.mxu0 %v2812_v3 }
 0x3dd   : > { %v2506_v49 = vpop.f32.mrf.mxu1  ;;  %v2564_v1 = vpop.f32.mrf.mxu0 }
 0x3e5   : > { %v2535_v56 = vpop.f32.mrf.mxu3  ;;  %v2593_v23 = vpop.f32.mrf.mxu2 }
 0x3e6   : > { %v7295_v40 = vadd.f32 %v2535_v56, %v2506_v49  ;;  %v7297_v15 = vadd.f32 %v2593_v23, %v2564_v1  ;;  %v2509_v32 = vpop.f32.mrf.mxu1  ;;  %v2567_v12 = vpop.f32.mrf.mxu0 }
 0x3ed   : > { %v2538_v20 = vpop.f32.mrf.mxu3  ;;  %v2596_v4 = vpop.f32.mrf.mxu2 }
 0x3ee   : > { %v2539_v39 = vadd.f32 %v2538_v20, %v2509_v32  ;;  %v2597_v50 = vadd.f32 %v2596_v4, %v2567_v12 }
 0x3f5   : > { %v2512_v22 = vpop.f32.mrf.mxu1  ;;  %v2541_v53 = vpop.f32.mrf.mxu3 }
 0x3f6   : > { %v2570_v51 = vpop.f32.mrf.mxu0  ;;  %v2599_v42 = vpop.f32.mrf.mxu2  ;;  %v2542_v59 = vadd.f32 %v2541_v53, %v2512_v22 }
 0x3f7   : > { %v2600_v11 = vadd.f32 %v2599_v42, %v2570_v51 }
 0x3fd   : > { %v2515_v54 = vpop.f32.mrf.mxu1  ;;  %v2544_v61 = vpop.f32.mrf.mxu3 }
 0x3fe   : > { %v2573_v44 = vpop.f32.mrf.mxu0  ;;  %v2602_v8 = vpop.f32.mrf.mxu2  ;;  %v2545_v29 = vadd.f32 %v2544_v61, %v2515_v54 }
 0x3ff   : > { %v2603_v3 = vadd.f32 %v2602_v8, %v2573_v44 }
 0x405   : > { %v2632_v19 = vpop.f32.mrf.mxu1  ;;  %v7299_v46 = vpop.f32.mrf.mxu3 }
 0x406   : > { %v2690_v60 = vpop.f32.mrf.mxu0  ;;  %v7301_v24 = vpop.f32.mrf.mxu2  ;;  %v2633_v42 = vadd.f32 %v2632_v19, %v7295_v40 }
 0x407   : > { %v2691_v54 = vadd.f32 %v2690_v60, %v7297_v15 }
 0x40d   : > { %v2635_v52 = vpop.f32.mrf.mxu1  ;;  %v2664_v28 = vpop.f32.mrf.mxu3 }
 0x40e   : > { %v2693_v7 = vpop.f32.mrf.mxu0  ;;  %v2722_v17 = vpop.f32.mrf.mxu2  ;;  %v2636_v12 = vadd.f32 %v2635_v52, %v2539_v39  ;;  %v2662_v39 = vadd.f32 %v7299_v46, %v2633_v42  ;;  %v4298_v46 = vld [vmem:[%s7803_s3 + $0x1b8] sm:$0xff] }
 0x40f   : > { %v2694_v20 = vadd.f32 %v2693_v7, %v2597_v50  ;;  %v2720_v50 = vadd.f32 %v7301_v24, %v2691_v54  ;;  %v4295_v24 = vld [vmem:[%s7803_s3 + $0x1a0] sm:$0xff]  ;;  %3154 = vmatpush.msra.mxu2 %v4298_v46  ;;  %v4286_v42 = vld [vmem:[%s7803_s3 + $0x158] sm:$0xff] }
 0x410   : > { %v3080_v54 = vld [vmem:[%s7803_s3 + $0x80] sm:$0xff]  ;;  %v3071_v46 = vld [vmem:[%s7803_s3 + $0x38] sm:$0xff] }
 0x415   : > { %v2638_v48 = vpop.f32.mrf.mxu1  ;;  %v2667_v2 = vpop.f32.mrf.mxu3 }
 0x416   : > { %v2696_v45 = vpop.f32.mrf.mxu0  ;;  %v2725_v57 = vpop.f32.mrf.mxu2  ;;  %v2639_v58 = vadd.f32 %v2638_v48, %v2542_v59  ;;  %v2723_v59 = vadd.f32 %v2722_v17, %v2694_v20  ;;  %v4297_v17 = vld [vmem:[%s7803_s3 + $0x1b0] sm:$0xff]  ;;  %v4287_v20 = vld [vmem:[%s7803_s3 + $0x160] sm:$0xff] }
 0x417   : > { %v2697_v18 = vadd.f32 %v2696_v45, %v2600_v11  ;;  %3131 = vmatpush.msra.mxu0 %v4297_v17  ;;  %v4290_v11 = vld [vmem:[%s7803_s3 + $0x178] sm:$0xff]  ;;  %v3070_v17 = vld [vmem:[%s7803_s3 + $0x30] sm:$0xff] }
 0x418   : > { %v2668_v16 = vadd.f32 %v2667_v2, %v2639_v58 }
 0x419   : > { %v2726_v26 = vadd.f32 %v2725_v57, %v2697_v18  ;;  %3132 = vmatpush.msra.mxu0 %v4295_v24  ;;  %v4273_v24 = vld [vmem:[%s7803_s3 + $0xf0] sm:$0xff] }
 0x41d   : > { %v2641_v27 = vpop.f32.mrf.mxu1  ;;  %v2670_v38 = vpop.f32.mrf.mxu3 }
 0x41e   : > { %v2699_v13 = vpop.f32.mrf.mxu0  ;;  %v2728_v34 = vpop.f32.mrf.mxu2  ;;  %v2642_v49 = vadd.f32 %v2641_v27, %v2545_v29 }
 0x41f   : > { %v2700_v1 = vadd.f32 %v2699_v13, %v2603_v3  ;;  %v2665_v13 = vadd.f32 %v2664_v28, %v2636_v12  ;;  %v3085_v12 = vld [vmem:[%s7803_s3 + $0xa8] sm:$0xff] }
 0x420   : > { %v2671_v4 = vadd.f32 %v2670_v38, %v2642_v49  ;;  %v4296_v38 = vld [vmem:[%s7803_s3 + $0x1a8] sm:$0xff] }
 0x421   : > { %v2729_v61 = vadd.f32 %v2728_v34, %v2700_v1  ;;  %v4293_v34 = vld [vmem:[%s7803_s3 + $0x190] sm:$0xff]  ;;  %3155 = vmatpush.msra.mxu2 %v4296_v38  ;;  %v3091_v1 = vld [vmem:[%s7803_s3 + $0xd8] sm:$0xff] }
 0x422   : > { %3133 = vmatpush.msra.mxu0 %v4293_v34  ;;  %v4274_v38 = vld [vmem:[%s7803_s3 + $0xf8] sm:$0xff]  ;;  %v3068_v34 = vld [vmem:[%s7803_s3 + $0x20] sm:$0xff] }
 0x425   : > { %v2845_v35 = vpop.f32.mrf.mxu1  ;;  %v2874_v0 = vpop.f32.mrf.mxu3 }
 0x426   : > { %v2903_v25 = vpop.f32.mrf.mxu0  ;;  %v2932_v30 = vpop.f32.mrf.mxu2  ;;  %v2875_v45 = vadd.f32 %v2874_v0, %v2845_v35  ;;  %v4294_v35 = vld [vmem:[%s7803_s3 + $0x198] sm:$0xff] }
 0x427   : > { %v2933_v57 = vadd.f32 %v2932_v30, %v2903_v25  ;;  %v4291_v25 = vld [vmem:[%s7803_s3 + $0x180] sm:$0xff]  ;;  %v4292_v30 = vld [vmem:[%s7803_s3 + $0x188] sm:$0xff]  ;;  %3156 = vmatpush.msra.mxu2 %v4294_v35 }
 0x428   : > { %v2944_v19 = vadd.f32 %v2875_v45, %v2662_v39  ;;  %3134 = vmatpush.msra.mxu0 %v4291_v25  ;;  %v4281_v45 = vld [vmem:[%s7803_s3 + $0x130] sm:$0xff]  ;;  %v4280_v39 = vld [vmem:[%s7803_s3 + $0x128] sm:$0xff] }
 0x429   : > { %v2945_v60 = vadd.f32 %v2933_v57, %v2720_v50  ;;  %3157 = vmatpush.msra.mxu2 %v4292_v30  ;;  %v4282_v57 = vld [vmem:[%s7803_s3 + $0x138] sm:$0xff]  ;;  %v3074_v50 = vld [vmem:[%s7803_s3 + $0x50] sm:$0xff]  ;;  %v3069_v35 = vld [vmem:[%s7803_s3 + $0x28] sm:$0xff] }
 0x42a   : > { %v4272_v25 = vld [vmem:[%s7803_s3 + $0xe8] sm:$0xff]  ;;  %v4333_v30 = vld [vmem:[%s7803_s3 + $0x290] sm:$0xff] }
 0x42b   : > { %v4489_v7 = vpack.i.bf16 %v2945_v60, %v2944_v19  ;;  %3158 = vmatpush.msra.mxu2 %v4290_v11  ;;  %v3072_v60 = vld [vmem:[%s7803_s3 + $0x40] sm:$0xff]  ;;  %v4332_v11 = vld [vmem:[%s7803_s3 + $0x288] sm:$0xff] }
 0x42d   : > { %v2848_v55 = vpop.f32.mrf.mxu1  ;;  %v2877_v5 = vpop.f32.mrf.mxu3 }
 0x42e   : > { %v2906_v9 = vpop.f32.mrf.mxu0  ;;  %v2935_v43 = vpop.f32.mrf.mxu2  ;;  %v2878_v8 = vadd.f32 %v2877_v5, %v2848_v55 }
 0x42f   : > { %v2936_v48 = vadd.f32 %v2935_v43, %v2906_v9  ;;  %v4289_v43 = vld [vmem:[%s7803_s3 + $0x170] sm:$0xff] }
 0x430   : > { %v2946_v40 = vadd.f32 %v2878_v8, %v2665_v13  ;;  %3135 = vmatpush.msra.mxu0 %v4289_v43  ;;  %v4284_v8 = vld [vmem:[%s7803_s3 + $0x148] sm:$0xff]  ;;  %v4331_v43 = vld [vmem:[%s7803_s3 + $0x280] sm:$0xff] }
 0x431   : > { %v2947_v15 = vadd.f32 %v2936_v48, %v2723_v59  ;;  %v3078_v48 = vld [vmem:[%s7803_s3 + $0x70] sm:$0xff]  ;;  %v3077_v13 = vld [vmem:[%s7803_s3 + $0x68] sm:$0xff]  ;;  %v4279_v59 = vld [vmem:[%s7803_s3 + $0x120] sm:$0xff] }
 0x432   : > { %3136 = vmatpush.msra.mxu0 %v4287_v20 }
 0x433   : > { %v4484_v52 = vpack.i.bf16 %v2947_v15, %v2946_v40  ;;  %v4277_v15 = vld [vmem:[%s7803_s3 + $0x110] sm:$0xff] }
 0x435   : > { %v2851_v63 = vpop.f32.mrf.mxu1  ;;  %v2880_v41 = vpop.f32.mrf.mxu3 }
 0x436   : > { %v2881_v21 = vadd.f32 %v2880_v41, %v2851_v63  ;;  %v2909_v31 = vpop.f32.mrf.mxu0  ;;  %v2938_v36 = vpop.f32.mrf.mxu2 }
 0x437   : > { %v2939_v6 = vadd.f32 %v2938_v36, %v2909_v31 }
 0x438   : > { %v7303_v62 = vadd.f32 %v2881_v21, %v2668_v16 }
 0x439   : > { %v2949_v37 = vadd.f32 %v2939_v6, %v2726_v26 }
 0x43b   : > { %v4479_v56 = vpack.i.bf16 %v2949_v37, %v7303_v62 }
 0x43d   : > { %4480 = vrot.lane.b32.xlu1 %v4479_v56, %s4590_s18  ;;  %v2854_v23 = vpop.f32.mrf.mxu1  ;;  %v2883_v32 = vpop.f32.mrf.mxu3  ;;  %v3088_v56 = vld [vmem:[%s7803_s3 + $0xc0] sm:$0xff] }
 0x43e   : > { %v2884_v22 = vadd.f32 %v2883_v32, %v2854_v23  ;;  %v2912_v53 = vpop.f32.mrf.mxu0  ;;  %v2941_v51 = vpop.f32.mrf.mxu2  ;;  %v3087_v23 = vld [vmem:[%s7803_s3 + $0xb8] sm:$0xff]  ;;  %v3084_v32 = vld [vmem:[%s7803_s3 + $0xa0] sm:$0xff] }
 0x43f   : > { %v2942_v44 = vadd.f32 %v2941_v51, %v2912_v53  ;;  %v3083_v53 = vld [vmem:[%s7803_s3 + $0x98] sm:$0xff]  ;;  %v4285_v51 = vld [vmem:[%s7803_s3 + $0x150] sm:$0xff] }
 0x440   : > { %v2950_v2 = vadd.f32 %v2884_v22, %v2671_v4  ;;  %v4288_v4 = vld [vmem:[%s7803_s3 + $0x168] sm:$0xff]  ;;  %v3082_v22 = vld [vmem:[%s7803_s3 + $0x90] sm:$0xff]  ;;  %3137 = vmatpush.msra.mxu0 %v4285_v51  ;;  %v4311_v51 = vld [vmem:[%s7803_s3 + $0x1e0] sm:$0xff] }
 0x441   : > { %v2951_v27 = vadd.f32 %v2942_v44, %v2729_v61  ;;  %3159 = vmatpush.msra.mxu2 %v4288_v4  ;;  %v3081_v61 = vld [vmem:[%s7803_s3 + $0x88] sm:$0xff]  ;;  %v4283_v44 = vld [vmem:[%s7803_s3 + $0x140] sm:$0xff]  ;;  %v4313_v4 = vld [vmem:[%s7803_s3 + $0x1f0] sm:$0xff] }
 0x442   : > { %2972 = vrot.lane.b32.xlu2 %v2950_v2, %s4590_s18  ;;  %3138 = vmatpush.msra.mxu0 %v4283_v44  ;;  %v4310_v44 = vld [vmem:[%s7803_s3 + $0x1d8] sm:$0xff] }
 0x443   : > { %2974 = vrot.lane.b32.xlu0 %v2951_v27, %s4590_s18  ;;  %3160 = vmatpush.msra.mxu2 %v4286_v42  ;;  %v3076_v27 = vld [vmem:[%s7803_s3 + $0x60] sm:$0xff]  ;;  %v4312_v42 = vld [vmem:[%s7803_s3 + $0x1e8] sm:$0xff] }
 0x444   : > { %3139 = vmatpush.msra.mxu0 %v4281_v45 }
 0x445   : > { %3161 = vmatpush.msra.mxu2 %v4284_v8 }
 0x446   : > { %3140 = vmatpush.msra.mxu0 %v4279_v59 }
 0x447   : > { %3162 = vmatpush.msra.mxu2 %v4282_v57 }
 0x448   : > { %3141 = vmatpush.msra.mxu0 %v4277_v15 }
 0x449   : > { %3163 = vmatpush.msra.mxu2 %v4280_v39 }
 0x44a   : > { %4485 = vrot.lane.b32.xlu2 %v4484_v52, %s4590_s18  ;;  %v3073_v52 = vld [vmem:[%s7803_s3 + $0x48] sm:$0xff] }
 0x44b   : > { %4490 = vrot.lane.b32.xlu0 %v4489_v7, %s4590_s18  ;;  %v4275_v7 = vld [vmem:[%s7803_s3 + $0x100] sm:$0xff] }
 0x44c   : > { %3142 = vmatpush.msra.mxu0 %v4275_v7 }
 0x44e   : > { %3143 = vmatpush.msra.mxu0 %v4273_v24 }
 0x49c   : > { %v2973_v28 = vpop.permute.xlu2 %2972 }
 0x4a4   : > { %v4486_v55 = vpop.permute.xlu2 %4485 }
 0x4a5   : > { %v4488_v58 = vunpack.i.h.bf16 %v4486_v55  ;;  %v4487_v18 = vunpack.i.l.bf16 %v4486_v55  ;;  %v4334_v55 = vld [vmem:[%s7803_s3 + $0x298] sm:$0xff] }
 0x4a7   : > { %v2978_v31 = vsel %vm2976_vm15, %v4487_v18, %v4488_v58  ;;  %v4329_v58 = vld [vmem:[%s7803_s3 + $0x270] sm:$0xff]  ;;  %v4330_v18 = vld [vmem:[%s7803_s3 + $0x278] sm:$0xff] }
 0x4a8   : > { %v2986_v26 = vmax.f32 %v2946_v40, %v2978_v31  ;;  %v3075_v40 = vld [vmem:[%s7803_s3 + $0x58] sm:$0xff]  ;;  %v4325_v31 = vld [vmem:[%s7803_s3 + $0x250] sm:$0xff] }
 0x4af   : > { %v4481_v0 = vpop.permute.xlu1 %4480 }
 0x4b0   : > { %v4483_v5 = vunpack.i.h.bf16 %v4481_v0  ;;  %v4482_v9 = vunpack.i.l.bf16 %v4481_v0  ;;  %v4271_v0 = vld [vmem:[%s7803_s3 + $0xe0] sm:$0xff] }
 0x4b1   : > { %3144 = vmatpush.msra.mxu0 %v4271_v0 }
 0x4b2   : > { %v2979_v16 = vsel %vm2976_vm15, %v4482_v9, %v4483_v5  ;;  %v3066_v5 = vld [vmem:[%s7803_s3 + $0x10] sm:$0xff]  ;;  %v3067_v9 = vld [vmem:[%s7803_s3 + $0x18] sm:$0xff] }
 0x4b3   : > { %v2987_v36 = vmax.f32 %v7303_v62, %v2979_v16  ;;  %v3090_v62 = vld [vmem:[%s7803_s3 + $0xd0] sm:$0xff]  ;;  %3266 = vmatpush.msrb.mxu0 %v4333_v30  ;;  %v3064_v16 = vld [vmem:[%s7803_s3] sm:$0xff] }
 0x4b5   : > { %v2975_v63 = vpop.permute.xlu0 %2974  ;;  %3267 = vmatpush.msrb.mxu0 %v4331_v43 }
 0x4b6   : > { %v2980_v41 = vsel %vm2976_vm15, %v2973_v28, %v2975_v63  ;;  %v4276_v28 = vld [vmem:[%s7803_s3 + $0x108] sm:$0xff]  ;;  %v4327_v63 = vld [vmem:[%s7803_s3 + $0x260] sm:$0xff] }
 0x4b7   : > { %v2988_v21 = vmax.f32 %v2950_v2, %v2980_v41  ;;  %v3079_v2 = vld [vmem:[%s7803_s3 + $0x78] sm:$0xff]  ;;  %v4328_v41 = vld [vmem:[%s7803_s3 + $0x268] sm:$0xff]  ;;  %3268 = vmatpush.msrb.mxu0 %v4329_v58 }
 0x4b9   : > { %4265 = vmatpush.msk.msra.mxu1 %vm2994_vm0, %v2988_v21  ;;  %4268 = vmatpush.msk.msra.mxu3 %vm2994_vm0, %v2988_v21  ;;  %v3065_v21 = vld [vmem:[%s7803_s3 + $0x8] sm:$0xff] }
 0x4ba   : > { %3269 = vmatpush.msrb.mxu0 %v4327_v63 }
 0x4bb   : > { %3011 = vmatpush.msra.mxu1 %v2987_v36  ;;  %3038 = vmatpush.msra.mxu3 %v2987_v36  ;;  %v4326_v36 = vld [vmem:[%s7803_s3 + $0x258] sm:$0xff] }
 0x4bc   : > { %3270 = vmatpush.msrb.mxu0 %v4325_v31 }
 0x4bd   : > { %v4491_v6 = vpop.permute.xlu0 %4490  ;;  %3012 = vmatpush.msra.mxu1 %v2986_v26  ;;  %3039 = vmatpush.msra.mxu3 %v2986_v26  ;;  %v4323_v26 = vld [vmem:[%s7803_s3 + $0x240] sm:$0xff] }
 0x4be   : > { %v4493_v29 = vunpack.i.h.bf16 %v4491_v6  ;;  %v4492_v3 = vunpack.i.l.bf16 %v4491_v6  ;;  %v4324_v6 = vld [vmem:[%s7803_s3 + $0x248] sm:$0xff]  ;;  %3271 = vmatpush.msrb.mxu0 %v4323_v26 }
 0x4c0   : > { %v2977_v37 = vsel %vm2976_vm15, %v4492_v3, %v4493_v29  ;;  %v4321_v3 = vld [vmem:[%s7803_s3 + $0x230] sm:$0xff]  ;;  %vm3615_vm15 = vcmask 15360  }
 0x4c1   : > { %v2985_v49 = vmax.f32 %v2944_v19, %v2977_v37  ;;  %v4278_v19 = vld [vmem:[%s7803_s3 + $0x118] sm:$0xff]  ;;  %3272 = vmatpush.msrb.mxu0 %v4321_v3 }
 0x4c2   : > { %3164 = vmatpush.msra.mxu2 %v4278_v19  ;;  %v4322_v37 = vld [vmem:[%s7803_s3 + $0x238] sm:$0xff] }
 0x4c3   : > { %3013 = vmatpush.msra.mxu1 %v2985_v49  ;;  %3040 = vmatpush.msra.mxu3 %v2985_v49  ;;  %v4319_v49 = vld [vmem:[%s7803_s3 + $0x220] sm:$0xff]  ;;  %v4369_v3 = vld [vmem:[%s7804_s4 + $0x118] sm:$0xff] }
 0x4c4   : > { %4269 = vmatmul.msk.f32.vlgmr.msra.gmra.mxu3 %vm2989_vm1, %v6561_v33  ;;  %4266 = vmatmul.msk.f32.vlgmr.msra.gmra.mxu1 %vm2989_vm1, %v6558_v47 }
 0x4c5   : > { %3183 = vmatpush.msrb.mxu1 %v3090_v62  ;;  %3206 = vmatpush.msrb.mxu3 %v3091_v1  ;;  %v4320_v62 = vld [vmem:[%s7803_s3 + $0x228] sm:$0xff]  ;;  %v4499_v1 = vld [vmem:[%s7807_s7] ss:$0 sm:$0xff] }
 0x4c6   : > { %3165 = vmatpush.msra.mxu2 %v4276_v28  ;;  %3273 = vmatpush.msrb.mxu0 %v4319_v49  ;;  %v3420_v49 = vld [vmem:[%s7804_s4 + $0x58] sm:$0xff] }
 0x4c7   : > { %3184 = vmatpush.msrb.mxu1 %v3088_v56 }
 0x4c8   : > { %3166 = vmatpush.msra.mxu2 %v4274_v38 }
 0x4ca   : > { %3167 = vmatpush.msra.mxu2 %v4272_v25 }
 0x4cc   : > { %4270 = vmatmul.msk.f32.gmra.mxu3 %vm2989_vm1, %v6597_v10  ;;  %4267 = vmatmul.msk.f32.gmra.mxu1 %vm2989_vm1, %v6594_v14  ;;  %v3089_v10 = vld [vmem:[%s7803_s3 + $0xc8] sm:$0xff]  ;;  %v3086_v14 = vld [vmem:[%s7803_s3 + $0xb0] sm:$0xff] }
 0x4cd   : > { %3207 = vmatpush.msrb.mxu3 %v3089_v10  ;;  %3185 = vmatpush.msrb.mxu1 %v3086_v14  ;;  %v4317_v10 = vld [vmem:[%s7803_s3 + $0x210] sm:$0xff]  ;;  %v4318_v14 = vld [vmem:[%s7803_s3 + $0x218] sm:$0xff] }
 0x4ce   : > { %3289 = vmatpush.msrb.mxu2 %v4334_v55  ;;  %3274 = vmatpush.msrb.mxu0 %v4317_v10  ;;  %v4367_v10 = vld [vmem:[%s7804_s4 + $0x108] sm:$0xff] }
 0x4cf   : > { %3208 = vmatpush.msrb.mxu3 %v3087_v23  ;;  %3186 = vmatpush.msrb.mxu1 %v3084_v32  ;;  %v4315_v32 = vld [vmem:[%s7803_s3 + $0x200] sm:$0xff] }
 0x4d0   : > { %3290 = vmatpush.msrb.mxu2 %v4332_v11  ;;  %3275 = vmatpush.msrb.mxu0 %v4315_v32  ;;  %v4366_v32 = vld [vmem:[%s7804_s4 + $0x100] sm:$0xff] }
 0x4d1   : > { %3209 = vmatpush.msrb.mxu3 %v3085_v12  ;;  %3187 = vmatpush.msrb.mxu1 %v3082_v22  ;;  %v4316_v12 = vld [vmem:[%s7803_s3 + $0x208] sm:$0xff]  ;;  %v4314_v22 = vld [vmem:[%s7803_s3 + $0x1f8] sm:$0xff] }
 0x4d2   : > { %3291 = vmatpush.msrb.mxu2 %v4330_v18  ;;  %3276 = vmatpush.msrb.mxu0 %v4313_v4  ;;  %v4365_v4 = vld [vmem:[%s7804_s4 + $0xf8] sm:$0xff] }
 0x4d3   : > { %3210 = vmatpush.msrb.mxu3 %v3083_v53  ;;  %3188 = vmatpush.msrb.mxu1 %v3080_v54 }
 0x4d4   : > { %3292 = vmatpush.msrb.mxu2 %v4328_v41  ;;  %3277 = vmatpush.msrb.mxu0 %v4311_v51  ;;  %v4364_v51 = vld [vmem:[%s7804_s4 + $0xf0] sm:$0xff] }
 0x4d5   : > { %3211 = vmatpush.msrb.mxu3 %v3081_v61  ;;  %3189 = vmatpush.msrb.mxu1 %v3078_v48  ;;  %v4309_v61 = vld [vmem:[%s7803_s3 + $0x1d0] sm:$0xff]  ;;  %v4307_v48 = vld [vmem:[%s7803_s3 + $0x1c0] sm:$0xff] }
 0x4d6   : > { %3293 = vmatpush.msrb.mxu2 %v4326_v36  ;;  %3278 = vmatpush.msrb.mxu0 %v4309_v61 }
 0x4d7   : > { %3212 = vmatpush.msrb.mxu3 %v3079_v2  ;;  %3190 = vmatpush.msrb.mxu1 %v3076_v27  ;;  %v4308_v2 = vld [vmem:[%s7803_s3 + $0x1c8] sm:$0xff] }
 0x4d8   : > { %3294 = vmatpush.msrb.mxu2 %v4324_v6  ;;  %3279 = vmatpush.msrb.mxu0 %v4307_v48  ;;  %v4349_v48 = vld [vmem:[%s7804_s4 + $0x88] sm:$0xff] }
 0x4d9   : > { %3213 = vmatpush.msrb.mxu3 %v3077_v13  ;;  %3191 = vmatpush.msrb.mxu1 %v3074_v50 }
 0x4da   : > { %3295 = vmatpush.msrb.mxu2 %v4322_v37  ;;  %v4355_v37 = vld [vmem:[%s7804_s4 + $0xb8] sm:$0xff] }
 0x4db   : > { %3214 = vmatpush.msrb.mxu3 %v3075_v40  ;;  %3192 = vmatpush.msrb.mxu1 %v3072_v60 }
 0x4dc   : > { %3296 = vmatpush.msrb.mxu2 %v4320_v62  ;;  %v4368_v62 = vld [vmem:[%s7804_s4 + $0x110] sm:$0xff] }
 0x4dd   : > { %3215 = vmatpush.msrb.mxu3 %v3073_v52  ;;  %3193 = vmatpush.msrb.mxu1 %v3070_v17 }
 0x4de   : > { %3297 = vmatpush.msrb.mxu2 %v4318_v14  ;;  %v4353_v14 = vld [vmem:[%s7804_s4 + $0xa8] sm:$0xff] }
 0x4df   : > { %3216 = vmatpush.msrb.mxu3 %v3071_v46  ;;  %3194 = vmatpush.msrb.mxu1 %v3068_v34 }
 0x4e0   : > { %3298 = vmatpush.msrb.mxu2 %v4316_v12  ;;  %v4352_v12 = vld [vmem:[%s7804_s4 + $0xa0] sm:$0xff] }
 0x4e1   : > { %3217 = vmatpush.msrb.mxu3 %v3069_v35  ;;  %3195 = vmatpush.msrb.mxu1 %v3066_v5 }
 0x4e2   : > { %3299 = vmatpush.msrb.mxu2 %v4314_v22  ;;  %v4351_v22 = vld [vmem:[%s7804_s4 + $0x98] sm:$0xff] }
 0x4e3   : > { %3218 = vmatpush.msrb.mxu3 %v3067_v9  ;;  %3196 = vmatpush.msrb.mxu1 %v3064_v16 }
 0x4e4   : > { %3300 = vmatpush.msrb.mxu2 %v4312_v42  ;;  %v4350_v42 = vld [vmem:[%s7804_s4 + $0x90] sm:$0xff] }
 0x4e5   : > { %3219 = vmatpush.msrb.mxu3 %v3065_v21 }
 0x4e6   : > { %3301 = vmatpush.msrb.mxu2 %v4310_v44  ;;  %v4500_v44 = vld [vmem:[%s7808_s8] ss:$0 sm:$0xff] }
 0x4e8   : > { %3302 = vmatpush.msrb.mxu2 %v4308_v2  ;;  %v3414_v2 = vld [vmem:[%s7804_s4 + $0x28] sm:$0xff] }
 0x541   : > { %v3015_v29 = vpop.f32.mrf.mxu1 }
 0x547   : > { %v3042_v56 = vpop.f32.mrf.mxu3 }
 0x548   : > { %v3048_v23 = vmax.f32 %v3015_v29, %v3042_v56  ;;  %v3419_v56 = vld [vmem:[%s7804_s4 + $0x50] sm:$0xff] }
 0x549   : > { %v3018_v53 = vpop.f32.mrf.mxu1 }
 0x54a   : > { %v3054_v20 = vadd.f32 %v4499_v1, %v3048_v23  ;;  %v3418_v23 = vld [vmem:[%s7804_s4 + $0x48] sm:$0xff] }
 0x54c   : > { %4502 = vtanh.f32 %v3054_v20  ;;  %v3417_v20 = vld [vmem:[%s7804_s4 + $0x40] sm:$0xff] }
 0x54f   : > { %v3045_v54 = vpop.f32.mrf.mxu3 }
 0x550   : > { %v3049_v8 = vmax.f32 %v3018_v53, %v3045_v54  ;;  %v3416_v53 = vld [vmem:[%s7804_s4 + $0x38] sm:$0xff]  ;;  %v3415_v54 = vld [vmem:[%s7804_s4 + $0x30] sm:$0xff] }
 0x552   : > { %v4503_v45 = vpop.eup %4502  ;;  %v3055_v57 = vadd.f32 %v4499_v1, %v3049_v8  ;;  %v4354_v1 = vld [vmem:[%s7804_s4 + $0xb0] sm:$0xff]  ;;  %v4363_v8 = vld [vmem:[%s7804_s4 + $0xe8] sm:$0xff] }
 0x553   : > { %3059 = vst.msk [vmem:[#allocation3] sm:$0xff] %vm3058_vm2, %v4503_v45 }
 0x554   : > { %4504 = vtanh.f32 %v3055_v57 }
 0x55a   : > { %v4505_v27 = vpop.eup %4504  ;;  %v3062_v13 = vld [vmem:[#allocation3] sm:$0xff] }
 0x55b   : > { %3061 = vst.msk [vmem:[#allocation3 + $0x8] sm:$0x3f] %vm3060_vm3, %v4505_v27  ;;  %4303 = vmatmul.msk.f32.vlgmr.msrb.gmra.mxu1 %vm3058_vm2, %v3062_v13  ;;  %4305 = vmatmul.msk.f32.vlgmr.msrb.gmra.mxu3 %vm3058_vm2, %v3062_v13  ;;  %v4362_v27 = vld [vmem:[%s7804_s4 + $0xe0] sm:$0xff]  ;;  %v4361_v13 = vld [vmem:[%s7804_s4 + $0xd8] sm:$0xff] }
 0x562   : > { %v3092_v59 = vld [vmem:[#allocation3 + $0x1] sm:$0xff]  ;;  %v3093_v50 = vld [vmem:[#allocation3 + $0x9] sm:$0xf] }
 0x563   : > { %4299 = vmatmul.msk.f32.vlgmr.msra.gmra.mxu0 %vm3058_vm2, %v3092_v59  ;;  %4301 = vmatmul.msk.f32.vlgmr.msra.gmra.mxu2 %vm3058_vm2, %v3092_v59  ;;  %v3063_v39 = vld [vmem:[#allocation3 + $0x8] sm:$0xf]  ;;  %v4348_v59 = vld [vmem:[%s7804_s4 + $0x80] sm:$0xff] }
 0x564   : > { %4304 = vmatmul.msk.f32.gmra.mxu1 %vm3058_vm2, %v3063_v39  ;;  %4306 = vmatmul.msk.f32.gmra.mxu3 %vm3058_vm2, %v3063_v39  ;;  %v3227_v40 = vld [vmem:[#allocation3 + $0x2] sm:$0xff]  ;;  %v3228_v15 = vld [vmem:[#allocation3 + $0xa] sm:$0xf] }
 0x565   : > { %3503 = vmatpush.msra.mxu2 %v4369_v3  ;;  %3443 = vmatpush.msra.mxu0 %v4355_v37  ;;  %v3413_v39 = vld [vmem:[%s7804_s4 + $0x20] sm:$0xff] }
 0x567   : > { %3504 = vmatpush.msra.mxu2 %v4368_v62  ;;  %3444 = vmatpush.msra.mxu0 %v4354_v1  ;;  %v3585_v62 = vld [vmem:[%s7805_s5 + $0x10] sm:$0xff]  ;;  %v3584_v1 = vld [vmem:[%s7805_s5 + $0x8] sm:$0xff] }
 0x569   : > { %3505 = vmatpush.msra.mxu2 %v4367_v10  ;;  %3445 = vmatpush.msra.mxu0 %v4353_v14  ;;  %v4501_v14 = vld [vmem:[%s7809_s9] ss:$0 sm:$0xff] }
 0x56b   : > { %4300 = vmatmul.msk.f32.gmra.mxu0 %vm3058_vm2, %v3093_v50  ;;  %4302 = vmatmul.msk.f32.gmra.mxu2 %vm3058_vm2, %v3093_v50  ;;  %v4347_v50 = vld [vmem:[%s7804_s4 + $0x78] sm:$0xff] }
 0x56c   : > { %3506 = vmatpush.msra.mxu2 %v4366_v32  ;;  %3446 = vmatpush.msra.mxu0 %v4352_v12 }
 0x56e   : > { %3507 = vmatpush.msra.mxu2 %v4365_v4  ;;  %3447 = vmatpush.msra.mxu0 %v4351_v22 }
 0x570   : > { %3508 = vmatpush.msra.mxu2 %v4364_v51  ;;  %3448 = vmatpush.msra.mxu0 %v4350_v42  ;;  %v3671_v42 = vld [vmem:[%s7811_s11 + $0x18] sm:$0xff] }
 0x572   : > { %3509 = vmatpush.msra.mxu2 %v4363_v8  ;;  %3449 = vmatpush.msra.mxu0 %v4349_v48 }
 0x573   : > { %4335 = vmatmul.msk.f32.vlgmr.msrb.gmra.mxu0 %vm3058_vm2, %v3227_v40  ;;  %4337 = vmatmul.msk.f32.vlgmr.msrb.gmra.mxu2 %vm3058_vm2, %v3227_v40 }
 0x574   : > { %3510 = vmatpush.msra.mxu2 %v4362_v27  ;;  %3450 = vmatpush.msra.mxu0 %v4348_v59  ;;  %v3697_v59 = vld [vmem:[%s7813_s13] sm:$0xff] }
 0x576   : > { %3511 = vmatpush.msra.mxu2 %v4361_v13  ;;  %3451 = vmatpush.msra.mxu0 %v4347_v50  ;;  %v3698_v13 = vld [vmem:[%s7813_s13 + $0x8] sm:$0xff] }
 0x57b   : > { %4336 = vmatmul.msk.f32.gmra.mxu0 %vm3058_vm2, %v3228_v15  ;;  %4338 = vmatmul.msk.f32.gmra.mxu2 %vm3058_vm2, %v3228_v15  ;;  %v4360_v15 = vld [vmem:[%s7804_s4 + $0xd0] sm:$0xff] }
 0x57c   : > { %3512 = vmatpush.msra.mxu2 %v4360_v15 }
 0x5d8   : > { %v3198_v7 = vpop.f32.mrf.mxu1 }
 0x5de   : > { %v3221_v46 = vpop.f32.mrf.mxu3 }
 0x5e0   : > { %v3146_v19 = vpop.f32.mrf.mxu0 }
 0x5e1   : > { %v3199_v24 = vadd.f32 %v3198_v7, %v3146_v19  ;;  %v3201_v34 = vpop.f32.mrf.mxu1  ;;  %v3412_v19 = vld [vmem:[%s7804_s4 + $0x18] sm:$0xff] }
 0x5e6   : > { %v3169_v60 = vpop.f32.mrf.mxu2 }
 0x5e7   : > { %v3222_v38 = vadd.f32 %v3221_v46, %v3169_v60  ;;  %v3224_v43 = vpop.f32.mrf.mxu3  ;;  %v4346_v60 = vld [vmem:[%s7804_s4 + $0x70] sm:$0xff]  ;;  %v4345_v46 = vld [vmem:[%s7804_s4 + $0x68] sm:$0xff] }
 0x5e8   : > { %v3149_v52 = vpop.f32.mrf.mxu0  ;;  %3452 = vmatpush.msra.mxu0 %v4346_v60 }
 0x5e9   : > { %v3202_v25 = vadd.f32 %v3201_v34, %v3149_v52  ;;  %v3411_v52 = vld [vmem:[%s7804_s4 + $0x10] sm:$0xff]  ;;  %v3409_v34 = vld [vmem:[%s7804_s4] sm:$0xff] }
 0x5ea   : > { %3453 = vmatpush.msra.mxu0 %v4345_v46 }
 0x5ee   : > { %v3172_v28 = vpop.f32.mrf.mxu2 }
 0x5ef   : > { %v3225_v11 = vadd.f32 %v3224_v43, %v3172_v28  ;;  %v4359_v28 = vld [vmem:[%s7804_s4 + $0xc8] sm:$0xff] }
 0x5f0   : > { %v3281_v17 = vpop.f32.mrf.mxu0  ;;  %3513 = vmatpush.msra.mxu2 %v4359_v28 }
 0x5f1   : > { %v3310_v0 = vadd.f32 %v3281_v17, %v3199_v24  ;;  %v4358_v17 = vld [vmem:[%s7804_s4 + $0xc0] sm:$0xff]  ;;  %v3410_v24 = vld [vmem:[%s7804_s4 + $0x8] sm:$0xff] }
 0x5f2   : > { %3514 = vmatpush.msra.mxu2 %v4358_v17 }
 0x5f4   : > { %3688 = vmatpush.msrb.mxu2 %v3671_v42 }
 0x5f6   : > { %v3304_v35 = vpop.f32.mrf.mxu2 }
 0x5f7   : > { %v3311_v30 = vadd.f32 %v3304_v35, %v3222_v38  ;;  %v4344_v38 = vld [vmem:[%s7804_s4 + $0x60] sm:$0xff] }
 0x5f8   : > { %v3284_v55 = vpop.f32.mrf.mxu0  ;;  %3454 = vmatpush.msra.mxu0 %v4344_v38 }
 0x5f9   : > { %v4494_v5 = vpack.i.bf16 %v3311_v30, %v3310_v0  ;;  %v3312_v9 = vadd.f32 %v3284_v55, %v3202_v25 }
 0x5fb   : > { %4495 = vrot.lane.b32.xlu0 %v4494_v5, %s4591_s23  ;;  %3322 = vrot.lane.b32.xlu1 %v3312_v9, %s4591_s23 }
 0x5fe   : > { %v3307_v58 = vpop.f32.mrf.mxu2 }
 0x5ff   : > { %v3313_v18 = vadd.f32 %v3307_v58, %v3225_v11 }
 0x601   : > { %3324 = vrot.lane.b32.xlu2 %v3313_v18, %s4591_s23  ;;  %s4544_s23 = scalar_lea.hbm %s7815_s15, 2 }
 0x65b   : > { %v3325_v63 = vpop.permute.xlu2 %3324 }
 0x66d   : > { %v4496_v41 = vpop.permute.xlu0 %4495  ;;  %v3323_v16 = vpop.permute.xlu1 %3322 }
 0x66e   : > { %v4498_v21 = vunpack.i.h.bf16 %v4496_v41  ;;  %v4497_v31 = vunpack.i.l.bf16 %v4496_v41  ;;  %v3328_v36 = vsel %vm3326_vm4, %v3323_v16, %v3325_v63 }
 0x66f   : > { %v3332_v26 = vmax.f32 %v3312_v9, %v3328_v36 }
 0x670   : > { %v3327_v6 = vsel %vm3326_vm4, %v4497_v31, %v4498_v21 }
 0x671   : > { %4339 = vmatpush.msk.msra.mxu1 %vm2994_vm0, %v3332_v26  ;;  %4341 = vmatpush.msk.msra.mxu3 %vm2994_vm0, %v3332_v26  ;;  %v3331_v29 = vmax.f32 %v3310_v0, %v3327_v6 }
 0x673   : > { %3354 = vmatpush.msra.mxu1 %v3331_v29  ;;  %3376 = vmatpush.msra.mxu3 %v3331_v29 }
 0x674   : > { %4342 = vmatmul.msk.f32.vlgmr.msra.gmra.mxu3 %vm3333_vm5, %v6561_v33  ;;  %4340 = vmatmul.msk.f32.vlgmr.msra.gmra.mxu1 %vm3333_vm5, %v6558_v47 }
 0x675   : > { %3466 = vmatpush.msrb.mxu1 %v3420_v49  ;;  %v3586_v49 = vld [vmem:[%s7805_s5 + $0x18] sm:$0xff] }
 0x677   : > { %3467 = vmatpush.msrb.mxu1 %v3419_v56  ;;  %v3583_v56 = vld [vmem:[%s7805_s5] sm:$0xff] }
 0x679   : > { %3468 = vmatpush.msrb.mxu1 %v3418_v23 }
 0x67b   : > { %3469 = vmatpush.msrb.mxu1 %v3417_v20 }
 0x67d   : > { %3470 = vmatpush.msrb.mxu1 %v3416_v53 }
 0x67f   : > { %3471 = vmatpush.msrb.mxu1 %v3415_v54  ;;  %v3670_v54 = vld [vmem:[%s7811_s11 + $0x10] sm:$0xff] }
 0x680   : > { %3689 = vmatpush.msrb.mxu2 %v3670_v54 }
 0x681   : > { %3472 = vmatpush.msrb.mxu1 %v3414_v2  ;;  %v3665_v2 = vld [vmem:[%s7810_s10] sm:$0x1] }
 0x683   : > { %3473 = vmatpush.msrb.mxu1 %v3413_v39  ;;  %v3672_v39 = vld [vmem:[%s7812_s12] sm:$0x1] }
 0x685   : > { %3474 = vmatpush.msrb.mxu1 %v3412_v19  ;;  %v3701_v19 = vld [vmem:[%s7814_s14] sm:$0x1] }
 0x687   : > { %3475 = vmatpush.msrb.mxu1 %v3411_v52 }
 0x689   : > { %3476 = vmatpush.msrb.mxu1 %v3410_v24 }
 0x68b   : > { %3477 = vmatpush.msrb.mxu1 %v3409_v34 }
 0x6f1   : > { %v3356_v61 = vpop.f32.mrf.mxu1 }
 0x6f7   : > { %v3378_v45 = vpop.f32.mrf.mxu3 }
 0x6f8   : > { %v3381_v57 = vmax.f32 %v3356_v61, %v3378_v45  ;;  %v3669_v61 = vld [vmem:[%s7811_s11 + $0x8] sm:$0xff] }
 0x6f9   : > { %3690 = vmatpush.msrb.mxu2 %v3669_v61 }
 0x6fa   : > { %v3386_v40 = vadd.f32 %v4500_v44, %v3381_v57  ;;  %v3699_v44 = vld [vmem:[%s7813_s13 + $0x10] sm:$0xff] }
 0x6fc   : > { %v4343_v7 = vmul.f32 -1.442695, %v3386_v40 }
 0x6fe   : > { %4506 = vpow2.f32 %v4343_v7 }
 0x704   : > { %v4507_v35 = vpop.eup %4506 }
 0x705   : > { %v3390_v0 = vadd.f32 1.0, %v4507_v35 }
 0x707   : > { %4508 = vrcp.f32 %v3390_v0  ;;  %v3402_v5 = vand.u32 2147483648, %v3390_v0  ;;  %v3400_v43 = vand.u32 2147483647, %v3390_v0  ;;  %vm3396_vm7 = vweird.f32 %v3390_v0 }
 0x709   : > { %v3403_v58 = vor.u32 1.1754944e-38, %v3402_v5  ;;  %vm3401_vm10 = vcmp.eq.f32.partialorder %v3400_v43, 8.507059e+37 }
 0x70d   : > { %v4509_v25 = vpop.eup %4508 }
 0x70e   : > { %v3392_v30 = vmul.f32 %v4509_v25, %v3390_v0  ;;  %vm3397_vm6 = vweird.f32 %v4509_v25 }
 0x70f   : > { %vm3398_vm8 = vmor %vm3396_vm7, %vm3397_vm6 }
 0x710   : > { %v3393_v55 = vsub.f32 1.0, %v3392_v30 }
 0x712   : > { %v3394_v9 = vmul.f32 %v4509_v25, %v3393_v55 }
 0x714   : > { %v3395_v11 = vadd.f32 %v4509_v25, %v3394_v9 }
 0x716   : > { %v3399_v18 = vsel %vm3398_vm8, %v4509_v25, %v3395_v11 }
 0x717   : > { %v3404_v63 = vsel %vm3401_vm10, %v3403_v58, %v3399_v18 }
 0x718   : > { %3407 = vst.msk [vmem:[#allocation4] sm:$0x3f] %vm3406_vm9, %v3404_v63 }
 0x71f   : > { %v3482_v41 = vld [vmem:[#allocation4 + $0x2] sm:$0xf] }
 0x720   : > { %v3421_v16 = vld [vmem:[#allocation4 + $0x1] sm:$0xf]  ;;  %4370 = vmatmul.msk.f32.vlgmr.msra.gmra.mxu2 %vm3435_vm11, %v3482_v41 }
 0x721   : > { %v3408_v21 = vld [vmem:[#allocation4] sm:$0xf]  ;;  %4356 = vmatmul.msk.f32.vlgmr.msra.gmra.mxu0 %vm3435_vm11, %v3421_v16 }
 0x722   : > { %4357 = vmatmul.msk.f32.vlgmr.msrb.gmra.mxu1 %vm3435_vm11, %v3408_v21 }
 0x79e   : > { %v3456_v31 = vpop.f32.mrf.mxu0 }
 0x79f   : > { %v3479_v36 = vpop.f32.mrf.mxu1 }
 0x7a0   : > { %v3480_v26 = vadd.f32 %v3479_v36, %v3456_v31 }
 0x7a3   : > { %v3516_v6 = vpop.f32.mrf.mxu2 }
 0x7a4   : > { %v3519_v29 = vadd.f32 %v3516_v6, %v3480_v26 }
 0x7a6   : > { %3521 = vrot.lane.b32.xlu1 %v3519_v29, %s4592_s26 }
 0x818   : > { %v3522_v3 = vpop.permute.xlu1 %3521 }
 0x819   : > { %v3524_v37 = vmax.f32 %v3519_v29, %v3522_v3 }
 0x81b   : > { %4371 = vmatpush.msk.msrb.mxu3 %vm2994_vm0, %v3524_v37 }
 0x81c   : > { %4372 = vmatmul.msk.f32.vlgmr.msrb.gmra.mxu3 %vm3525_vm12, %v6558_v47 }
 0x81d   : > { %4373 = vmatpush.msk.msra.mxu3 %vm2994_vm0, %v3524_v37  ;;  %vm3725_vm0 = vcmask 73728  }
 0x81f   : > { %3602 = vmatpush.msrb.mxu3 %v3586_v49 }
 0x821   : > { %3603 = vmatpush.msrb.mxu3 %v3585_v62 }
 0x823   : > { %3604 = vmatpush.msrb.mxu3 %v3584_v1 }
 0x824   : > { %4374 = vmatmul.msk.f32.vlgmr.msra.gmra.mxu3 %vm3525_vm12, %v6561_v33 }
 0x825   : > { %3605 = vmatpush.msrb.mxu3 %v3583_v56 }
 0x89f   : > { %v3548_v10 = vpop.f32.mrf.mxu3 }
 0x8a7   : > { %v3570_v23 = vpop.f32.mrf.mxu3 }
 0x8a8   : > { %v3573_v32 = vmax.f32 %v3548_v10, %v3570_v23 }
 0x8aa   : > { %v3578_v12 = vadd.f32 %v4501_v14, %v3573_v32 }
 0x8ac   : > { %v3579_v20 = vmax.f32 %v3578_v12, 0.0 }
 0x8ae   : > { %3581 = vst.msk [vmem:[#allocation5] sm:$0x3] %vm3580_vm13, %v3579_v20 }
 0x8b5   : > { %v3582_v4 = vld [vmem:[#allocation5] sm:$0x3] }
 0x8b6   : > { %4375 = vmatmul.msk.f32.vlgmr.msrb.gmra.mxu3 %vm3326_vm4, %v3582_v4 }
 0x939   : > { %v3607_v22 = vpop.f32.mrf.mxu3 }
 0x93a   : > { %3611 = vrot.lane.b32.xlu2 %v3607_v22, %s4592_s26  ;;  %s3740_s26 = sshll.u32 %s3736_s25, 4  ;;  %s3741_s26 = int_to_ptr.hbm [resolvable:$true] %s3740_s26 }
 0x93b   : > { %s4538_s29 = sshra.s32 %s3741_s26, 4  ;;  %s4539_s29 = int_to_ptr.hbm [resolvable:$true] %s4538_s29 }
 0x93c   : > { %s4540_s18 = scalar_lea.hbm %s4539_s29, 1  ;;  %p4545_p0 = scmp.lt.s32.totalorder %s4539_s29, %s7815_s15 }
 0x93d   : > { %p4541_p11 = scmp.ne.s32.totalorder %s4539_s29, %s4540_s18  ;;  %p4546_p1 = scmp.lt.s32.totalorder %s4544_s23, %s4540_s18 }
 0x93f   : > { %p4542_p12 = pnand %p4541_p11, %p4711_p5  ;;  %p4547_p2 = por %p4546_p1, %p4545_p0 }
 0x941   : > { %p4543_p13 = pneg %p4542_p12 }
 0x943   : > { %p4548_p3 = pnand %p4547_p2, %p4543_p13 }
 0x994   : > { %v3612_v53 = vpop.permute.xlu2 %3611 }
 0x995   : > { %v3614_v51 = vmax.f32 %v3607_v22, %v3612_v53 }
 0x997   : > { %4376 = vmatpush.msk.msrb.mxu0 %vm3618_vm14, %v3614_v51  ;;  %4378 = vmatpush.msk.msra.mxu1 %vm3618_vm14, %v3614_v51 }
 0x998   : > { %4377 = vmatmul.msk.f32.vlgmr.msrb.gmra.mxu0 %vm3615_vm15, %v6558_v47  ;;  %4379 = vmatmul.msk.f32.vlgmr.msra.gmra.mxu1 %vm3615_vm15, %v6561_v33  ;;  %v3668_v47 = vld [vmem:[%s7811_s11] sm:$0xff]  ;;  %v3700_v33 = vld [vmem:[%s7813_s13 + $0x18] sm:$0xff] }
 0x999   : > { %3691 = vmatpush.msrb.mxu2 %v3668_v47  ;;  %3717 = vmatpush.msra.mxu3 %v3700_v33 }
 0x99b   : > { %3718 = vmatpush.msra.mxu3 %v3699_v44 }
 0x99d   : > { %3719 = vmatpush.msra.mxu3 %v3698_v13 }
 0x99f   : > { %3720 = vmatpush.msra.mxu3 %v3697_v59 }
 0xa15   : > { %v3639_v8 = vpop.f32.mrf.mxu0  ;;  %v3661_v48 = vpop.f32.mrf.mxu1 }
 0xa16   : > { %v3664_v45 = vmax.f32 %v3639_v8, %v3661_v48 }
 0xa18   : > { %v3666_v57 = vadd.f32 %v3665_v2, %v3664_v45 }
 0xa1a   : > { %4510 = vtanh.f32 %v3666_v57 }
 0xa20   : > { %v4511_v27 = vpop.eup %4510 }
 0xa21   : > { %4380 = vmatmul.msk.f32.vlgmr.msrb.gmra.mxu2 %vm3326_vm4, %v4511_v27 }
 0xaa4   : > { %v3693_v50 = vpop.f32.mrf.mxu2 }
 0xaa5   : > { %v3694_v40 = vadd.f32 %v3693_v50, %v3672_v39 }
 0xaa7   : > { %v3696_v15 = vmax.f32 %v3694_v40, 0.0 }
 0xaa9   : > { %4381 = vmatmul.msk.f32.vlgmr.msra.gmra.mxu3 %vm3326_vm4, %v3696_v15 }
 0xb2c   : > { %v3722_v60 = vpop.f32.mrf.mxu3 }
 0xb2d   : > { %v3723_v52 = vadd.f32 %v3722_v60, %v3701_v19 }
 0xb2f   : > { %3726 = vst.msk [vmem:[%s486_s24] sm:$0x1] %vm3725_vm0, %v3723_v52 }
 0xb30   : > { %4551 = shalt.err (!%p4548_p3)
}
 0xb31   : > { %4385 = dma.vmem_to_hbm [thread:$0]  (%p4711_p5), %s3739_s27, 16, %s3741_s26, %s3728_s30  }
 0xb32 PF: > { %s7932_s16 = sld [smem:[#allocation11_spill]] }
 0xb33   : > { %s7933_s20 = sld [smem:[#allocation9_spill]] }
 0xb38   : > { %p4391_p4 = scmp.ge.s32.totalorder %s7932_s16, 2 }
 0xb39   : > { %s3752_s0 = sand.u32 1, %s7933_s20  }
 0xb3a   : > { %p4388_p7 = pnand %p4391_p4, %p4715_p6  ;;  %s3753_s22 = scalar_lea.sflag [#allocation7], %s3752_s0 }
 0xb3c   : > { %p4389_p8 = pneg %p4388_p7 }
 0xb3e   : > { %4569 = dma.done.wait (%p4389_p8), %s3753_s22, 16  }
 0xb3f   : > { %4571 = vsyncadd (%p4389_p8), %s3753_s22, 4294967280  ;;  %s7935_s21 = sld [smem:[#allocation12_spill]]  ;;  %s7938_s18 = smov %s4578_s19 }
 0xb40   : > { %s7936_s29 = sld [smem:[#allocation10_spill]] }
 0xb41   : > { %s7937_s20 = sld [smem:[#allocation13_spill]] }
 0xb45   : > { %p25_p9 = scmp.ge.s32.totalorder %s7935_s21, 4  }
 0xb46   : > { %s7939_s19 = smov %s7936_s29 }
 0xb47   :  { %27 = sbr.rel (!%p25_p9) target bundleno = 5 (0x5), region = 123 }
 0xb4c   :  { %3758 = vsyncpa [#allocation7], 1 }
 0xb4d   :  { %3760 = vsyncpa [#allocation7 + $0x1], 1 }

</bundles_post_ra>
